<compile_context>
chip_gen: v5e
topology: v5e:2x2
jax: 0.10.0
libtpu: 0.0.40
codegen_flags: <defaults>
</compile_context>

<pallas_src>
import jax
import jax.numpy as jnp
from jax.experimental import pallas as pl
from jax.experimental.pallas import tpu as pltpu


def gru_fc_kernel(tok_ref, emb_ref, wih_ref, whh_ref, bgx_ref, bhn_ref,
                  wfc_ref, bfc_ref, out_ref, x_vmem, gx_vmem, gather_sem):
    B, T = tok_ref.shape
    H = whh_ref.shape[0]

    # --- 1. Fused embedding gather: HBM -> time-major VMEM slab --------------
    # One (1, E) row-DMA per (t, b).  All copies share a single DMA semaphore
    # (equal sizes -> aggregate start/wait accounting is exact).  All SMEM
    # scalar token reads happen before any .wait().
    copies = []
    for t in range(T):
        for b in range(B):
            tok = tok_ref[b, t]
            cp = pltpu.make_async_copy(
                emb_ref.at[pl.ds(tok, 1), :],
                x_vmem.at[pl.ds(t * B + b, 1), :],
                gather_sem)
            cp.start()
            copies.append(cp)
    for cp in copies:
        cp.wait()

    # --- 2. Hoisted input projection for ALL timesteps (off the serial path) -
    # bgx already folds b_ih and the r/z parts of b_hh.  Result lives in a
    # VMEM scratch; per-step slices are re-read inside the loop.
    gx_vmem[...] = jnp.dot(x_vmem[...].astype(jnp.bfloat16), wih_ref[...],
                           preferred_element_type=jnp.float32) + bgx_ref[...]

    b_hn = jnp.broadcast_to(bhn_ref[...], (B, H))   # hoisted broadcast (f32)
    h = jnp.zeros((B, H), jnp.float32)              # PyTorch GRU default h0

    # --- 3. Serial GRU recurrence (static T -> fully unrolled) ---------------
    # Gate order [r | z | n] (PyTorch); b_hh_n stays inside the r* term.
    for t in range(T):
        gx = gx_vmem[pl.ds(t * B, B), :]                       # (B, 3H) f32
        gh = jnp.dot(h.astype(jnp.bfloat16), whh_ref[...],
                     preferred_element_type=jnp.float32)       # (B, 3H) f32
        r = jax.nn.sigmoid(gx[:, 0:H] + gh[:, 0:H])
        z = jax.nn.sigmoid(gx[:, H:2 * H] + gh[:, H:2 * H])
        n = jnp.tanh(gx[:, 2 * H:3 * H] + r * (gh[:, 2 * H:3 * H] + b_hn))
        h = n + z * (h - n)     # == (1 - z) * n + z * h, one fewer VPU op

    # --- 4. Classifier head on the final hidden state (lane-dense 128 wide) --
    logits = jnp.dot(h.astype(jnp.bfloat16), wfc_ref[...],
                     preferred_element_type=jnp.float32) + bfc_ref[...]
    out_ref[...] = logits.astype(out_ref.dtype)


def prepare_params(params):
    """One-time parameter prep: bias folding, head padding, bf16 casts."""
    w_ih, w_hh = params["w_ih"], params["w_hh"]
    b_ih, b_hh = params["b_ih"], params["b_hh"]
    w_fc, b_fc = params["w_fc"], params["b_fc"]
    H = w_hh.shape[0]
    C = w_fc.shape[1]
    CP = max(128, ((C + 127) // 128) * 128)     # lane-dense padded head width

    # Fold biases: r/z gates see b_ih + b_hh; for the n gate only b_ih folds
    # into gx (b_hh[:, 2H:] must stay inside the r* term).
    b_gx = b_ih + jnp.concatenate(
        [b_hh[:, :2 * H], jnp.zeros((1, H), b_hh.dtype)], axis=1)
    b_hn = b_hh[:, 2 * H:]

    w_fc_p = jnp.zeros((H, CP), jnp.bfloat16).at[:, :C].set(w_fc.astype(jnp.bfloat16))
    b_fc_p = jnp.zeros((1, CP), jnp.float32).at[:, :C].set(b_fc.astype(jnp.float32))

    return {
        "emb": params["embedding"],                 # f32, stays in HBM (DMA-gathered)
        "w_ih": w_ih.astype(jnp.bfloat16),
        "w_hh": w_hh.astype(jnp.bfloat16),
        "b_gx": b_gx.astype(jnp.float32),
        "b_hn": b_hn.astype(jnp.float32),
        "w_fc": w_fc_p,
        "b_fc": b_fc_p,
        "num_classes": C,
    }


def text_classifier_forward(tokens, prepped):
    """tokens: (B, T) int32 -> logits (B, num_classes)."""
    B, T = tokens.shape
    E = prepped["emb"].shape[1]
    H = prepped["w_hh"].shape[0]
    CP = prepped["w_fc"].shape[1]
    C = prepped["num_classes"]

    out = pl.pallas_call(
        gru_fc_kernel,
        out_shape=jax.ShapeDtypeStruct((B, CP), jnp.float32),
        in_specs=[
            pl.BlockSpec(memory_space=pltpu.MemorySpace.SMEM),   # tokens
            pl.BlockSpec(memory_space=pl.ANY),                   # embedding (HBM)
            pl.BlockSpec(memory_space=pltpu.MemorySpace.VMEM),   # w_ih
            pl.BlockSpec(memory_space=pltpu.MemorySpace.VMEM),   # w_hh
            pl.BlockSpec(memory_space=pltpu.MemorySpace.VMEM),   # b_gx
            pl.BlockSpec(memory_space=pltpu.MemorySpace.VMEM),   # b_hn
            pl.BlockSpec(memory_space=pltpu.MemorySpace.VMEM),   # w_fc (padded)
            pl.BlockSpec(memory_space=pltpu.MemorySpace.VMEM),   # b_fc (padded)
        ],
        out_specs=pl.BlockSpec(memory_space=pltpu.MemorySpace.VMEM),
        scratch_shapes=[
            pltpu.VMEM((T * B, E), jnp.float32),       # gathered x (time-major)
            pltpu.VMEM((T * B, 3 * H), jnp.float32),   # hoisted gx slab
            pltpu.SemaphoreType.DMA,                   # shared gather semaphore
        ],
    )(tokens, prepped["emb"], prepped["w_ih"], prepped["w_hh"],
      prepped["b_gx"], prepped["b_hn"], prepped["w_fc"], prepped["b_fc"])

    return out[:, :C]


def init_params(key, vocab_size, embed_dim, hidden_size, num_classes):
    ks = jax.random.split(key, 7)
    s = 0.05
    return {
        "embedding": s * jax.random.normal(ks[0], (vocab_size, embed_dim), jnp.float32),
        # stored transposed vs. PyTorch ((3H,E) -> (E,3H)) so the kernel does x @ W
        "w_ih": s * jax.random.normal(ks[1], (embed_dim, 3 * hidden_size), jnp.float32),
        "w_hh": s * jax.random.normal(ks[2], (hidden_size, 3 * hidden_size), jnp.float32),
        "b_ih": s * jax.random.normal(ks[3], (1, 3 * hidden_size), jnp.float32),
        "b_hh": s * jax.random.normal(ks[4], (1, 3 * hidden_size), jnp.float32),
        "w_fc": s * jax.random.normal(ks[5], (hidden_size, num_classes), jnp.float32),
        "b_fc": s * jax.random.normal(ks[6], (1, num_classes), jnp.float32),
    }


def reference_forward(tokens, params):
    """Pure-JAX f32 reference mirroring torch.nn.GRU(batch_first=True) semantics."""
    x = jnp.take(params["embedding"], tokens, axis=0)     # (B, T, E)
    B = x.shape[0]
    H = params["w_hh"].shape[0]

    def step(h, x_t):
        gx = x_t @ params["w_ih"] + params["b_ih"]
        gh = h @ params["w_hh"] + params["b_hh"]
        r = jax.nn.sigmoid(gx[:, :H] + gh[:, :H])
        z = jax.nn.sigmoid(gx[:, H:2 * H] + gh[:, H:2 * H])
        n = jnp.tanh(gx[:, 2 * H:] + r * gh[:, 2 * H:])
        h_new = (1.0 - z) * n + z * h
        return h_new, None

    h0 = jnp.zeros((B, H), jnp.float32)
    hn, _ = jax.lax.scan(step, h0, jnp.transpose(x, (1, 0, 2)))
    return hn @ params["w_fc"] + params["b_fc"]


if __name__ == "__main__":
    # Small shapes consistent with the module: batch=8, seq=8,
    # vocab=128, embed_dim=128, hidden_size=128, num_classes=10.
    B, T = 8, 8
    VOCAB, E, H, C = 128, 128, 128, 10

    key = jax.random.PRNGKey(0)
    k_tok, k_par = jax.random.split(key)
    tokens = jax.random.randint(k_tok, (B, T), 0, VOCAB, dtype=jnp.int32)
    params = init_params(k_par, VOCAB, E, H, C)

    prepped = prepare_params(params)   # one-time prep, off the per-call path

    out = jax.block_until_ready(text_classifier_forward(tokens, prepped))
    ref = jax.block_until_ready(reference_forward(tokens, params))

    assert out.shape == (B, C)
    # bf16 matmul operands (f32 accumulation) -> slightly looser tolerance than
    # a pure-f32 implementation.
    assert jnp.allclose(out, ref, atol=5e-3, rtol=5e-3), "mismatch vs. JAX reference"

    print("KERNEL_OK")
</pallas_src>

<mosaic_0001>
module attributes {stable_mosaic.version = 11 : i64} {
  func.func @gru_fc_kernel(%arg0: memref<8x8xi32, #tpu.memory_space<smem>>, %arg1: memref<128x128xf32, #tpu.memory_space<any>>, %arg2: memref<128x384xbf16, #tpu.memory_space<vmem>>, %arg3: memref<128x384xbf16, #tpu.memory_space<vmem>>, %arg4: memref<1x384xf32, #tpu.memory_space<vmem>>, %arg5: memref<1x128xf32, #tpu.memory_space<vmem>>, %arg6: memref<128x128xbf16, #tpu.memory_space<vmem>>, %arg7: memref<1x128xf32, #tpu.memory_space<vmem>>, %arg8: memref<8x128xf32, #tpu.memory_space<vmem>>, %arg9: memref<64x128xf32, #tpu.memory_space<vmem>>, %arg10: memref<64x384xf32, #tpu.memory_space<vmem>>, %arg11: memref<!tpu.dma_semaphore, #tpu.memory_space<semaphore_mem>>) attributes {dimension_semantics = [], scalar_prefetch = 0 : i64, scratch_operands = 3 : i64, tpu.core_type = #tpu.core_type<tc>} {
    %c0 = arith.constant 0 : index
    %c0_0 = arith.constant 0 : index
    %0 = memref.load %arg0[%c0, %c0_0] : memref<8x8xi32, #tpu.memory_space<smem>>
    %c0_i32 = arith.constant 0 : i32
    %1 = tpu.memref_slice %arg1[%0, %c0_i32] : memref<128x128xf32, #tpu.memory_space<any>> -> memref<1x128xf32, #tpu.memory_space<any>>
    %c0_i32_1 = arith.constant 0 : i32
    %c0_i32_2 = arith.constant 0 : i32
    %2 = tpu.memref_slice %arg9[%c0_i32_1, %c0_i32_2] : memref<64x128xf32, #tpu.memory_space<vmem>> -> memref<1x128xf32, #tpu.memory_space<vmem>>
    tpu.enqueue_dma source(%1 : memref<1x128xf32, #tpu.memory_space<any>>) target(%2 : memref<1x128xf32, #tpu.memory_space<vmem>>) target_semaphore(%arg11 : memref<!tpu.dma_semaphore, #tpu.memory_space<semaphore_mem>>)
    %c1 = arith.constant 1 : index
    %c0_3 = arith.constant 0 : index
    %3 = memref.load %arg0[%c1, %c0_3] : memref<8x8xi32, #tpu.memory_space<smem>>
    %c0_i32_4 = arith.constant 0 : i32
    %4 = tpu.memref_slice %arg1[%3, %c0_i32_4] : memref<128x128xf32, #tpu.memory_space<any>> -> memref<1x128xf32, #tpu.memory_space<any>>
    %c1_i32 = arith.constant 1 : i32
    %c0_i32_5 = arith.constant 0 : i32
    %5 = tpu.memref_slice %arg9[%c1_i32, %c0_i32_5] : memref<64x128xf32, #tpu.memory_space<vmem>> -> memref<1x128xf32, #tpu.memory_space<vmem>>
    tpu.enqueue_dma source(%4 : memref<1x128xf32, #tpu.memory_space<any>>) target(%5 : memref<1x128xf32, #tpu.memory_space<vmem>>) target_semaphore(%arg11 : memref<!tpu.dma_semaphore, #tpu.memory_space<semaphore_mem>>)
    %c2 = arith.constant 2 : index
    %c0_6 = arith.constant 0 : index
    %6 = memref.load %arg0[%c2, %c0_6] : memref<8x8xi32, #tpu.memory_space<smem>>
    %c0_i32_7 = arith.constant 0 : i32
    %7 = tpu.memref_slice %arg1[%6, %c0_i32_7] : memref<128x128xf32, #tpu.memory_space<any>> -> memref<1x128xf32, #tpu.memory_space<any>>
    %c2_i32 = arith.constant 2 : i32
    %c0_i32_8 = arith.constant 0 : i32
    %8 = tpu.memref_slice %arg9[%c2_i32, %c0_i32_8] : memref<64x128xf32, #tpu.memory_space<vmem>> -> memref<1x128xf32, #tpu.memory_space<vmem>>
    tpu.enqueue_dma source(%7 : memref<1x128xf32, #tpu.memory_space<any>>) target(%8 : memref<1x128xf32, #tpu.memory_space<vmem>>) target_semaphore(%arg11 : memref<!tpu.dma_semaphore, #tpu.memory_space<semaphore_mem>>)
    %c3 = arith.constant 3 : index
    %c0_9 = arith.constant 0 : index
    %9 = memref.load %arg0[%c3, %c0_9] : memref<8x8xi32, #tpu.memory_space<smem>>
    %c0_i32_10 = arith.constant 0 : i32
    %10 = tpu.memref_slice %arg1[%9, %c0_i32_10] : memref<128x128xf32, #tpu.memory_space<any>> -> memref<1x128xf32, #tpu.memory_space<any>>
    %c3_i32 = arith.constant 3 : i32
    %c0_i32_11 = arith.constant 0 : i32
    %11 = tpu.memref_slice %arg9[%c3_i32, %c0_i32_11] : memref<64x128xf32, #tpu.memory_space<vmem>> -> memref<1x128xf32, #tpu.memory_space<vmem>>
    tpu.enqueue_dma source(%10 : memref<1x128xf32, #tpu.memory_space<any>>) target(%11 : memref<1x128xf32, #tpu.memory_space<vmem>>) target_semaphore(%arg11 : memref<!tpu.dma_semaphore, #tpu.memory_space<semaphore_mem>>)
    %c4 = arith.constant 4 : index
    %c0_12 = arith.constant 0 : index
    %12 = memref.load %arg0[%c4, %c0_12] : memref<8x8xi32, #tpu.memory_space<smem>>
    %c0_i32_13 = arith.constant 0 : i32
    %13 = tpu.memref_slice %arg1[%12, %c0_i32_13] : memref<128x128xf32, #tpu.memory_space<any>> -> memref<1x128xf32, #tpu.memory_space<any>>
    %c4_i32 = arith.constant 4 : i32
    %c0_i32_14 = arith.constant 0 : i32
    %14 = tpu.memref_slice %arg9[%c4_i32, %c0_i32_14] : memref<64x128xf32, #tpu.memory_space<vmem>> -> memref<1x128xf32, #tpu.memory_space<vmem>>
    tpu.enqueue_dma source(%13 : memref<1x128xf32, #tpu.memory_space<any>>) target(%14 : memref<1x128xf32, #tpu.memory_space<vmem>>) target_semaphore(%arg11 : memref<!tpu.dma_semaphore, #tpu.memory_space<semaphore_mem>>)
    %c5 = arith.constant 5 : index
    %c0_15 = arith.constant 0 : index
    %15 = memref.load %arg0[%c5, %c0_15] : memref<8x8xi32, #tpu.memory_space<smem>>
    %c0_i32_16 = arith.constant 0 : i32
    %16 = tpu.memref_slice %arg1[%15, %c0_i32_16] : memref<128x128xf32, #tpu.memory_space<any>> -> memref<1x128xf32, #tpu.memory_space<any>>
    %c5_i32 = arith.constant 5 : i32
    %c0_i32_17 = arith.constant 0 : i32
    %17 = tpu.memref_slice %arg9[%c5_i32, %c0_i32_17] : memref<64x128xf32, #tpu.memory_space<vmem>> -> memref<1x128xf32, #tpu.memory_space<vmem>>
    tpu.enqueue_dma source(%16 : memref<1x128xf32, #tpu.memory_space<any>>) target(%17 : memref<1x128xf32, #tpu.memory_space<vmem>>) target_semaphore(%arg11 : memref<!tpu.dma_semaphore, #tpu.memory_space<semaphore_mem>>)
    %c6 = arith.constant 6 : index
    %c0_18 = arith.constant 0 : index
    %18 = memref.load %arg0[%c6, %c0_18] : memref<8x8xi32, #tpu.memory_space<smem>>
    %c0_i32_19 = arith.constant 0 : i32
    %19 = tpu.memref_slice %arg1[%18, %c0_i32_19] : memref<128x128xf32, #tpu.memory_space<any>> -> memref<1x128xf32, #tpu.memory_space<any>>
    %c6_i32 = arith.constant 6 : i32
    %c0_i32_20 = arith.constant 0 : i32
    %20 = tpu.memref_slice %arg9[%c6_i32, %c0_i32_20] : memref<64x128xf32, #tpu.memory_space<vmem>> -> memref<1x128xf32, #tpu.memory_space<vmem>>
    tpu.enqueue_dma source(%19 : memref<1x128xf32, #tpu.memory_space<any>>) target(%20 : memref<1x128xf32, #tpu.memory_space<vmem>>) target_semaphore(%arg11 : memref<!tpu.dma_semaphore, #tpu.memory_space<semaphore_mem>>)
    %c7 = arith.constant 7 : index
    %c0_21 = arith.constant 0 : index
    %21 = memref.load %arg0[%c7, %c0_21] : memref<8x8xi32, #tpu.memory_space<smem>>
    %c0_i32_22 = arith.constant 0 : i32
    %22 = tpu.memref_slice %arg1[%21, %c0_i32_22] : memref<128x128xf32, #tpu.memory_space<any>> -> memref<1x128xf32, #tpu.memory_space<any>>
    %c7_i32 = arith.constant 7 : i32
    %c0_i32_23 = arith.constant 0 : i32
    %23 = tpu.memref_slice %arg9[%c7_i32, %c0_i32_23] : memref<64x128xf32, #tpu.memory_space<vmem>> -> memref<1x128xf32, #tpu.memory_space<vmem>>
    tpu.enqueue_dma source(%22 : memref<1x128xf32, #tpu.memory_space<any>>) target(%23 : memref<1x128xf32, #tpu.memory_space<vmem>>) target_semaphore(%arg11 : memref<!tpu.dma_semaphore, #tpu.memory_space<semaphore_mem>>)
    %c0_24 = arith.constant 0 : index
    %c1_25 = arith.constant 1 : index
    %24 = memref.load %arg0[%c0_24, %c1_25] : memref<8x8xi32, #tpu.memory_space<smem>>
    %c0_i32_26 = arith.constant 0 : i32
    %25 = tpu.memref_slice %arg1[%24, %c0_i32_26] : memref<128x128xf32, #tpu.memory_space<any>> -> memref<1x128xf32, #tpu.memory_space<any>>
    %c8_i32 = arith.constant 8 : i32
    %c0_i32_27 = arith.constant 0 : i32
    %26 = tpu.memref_slice %arg9[%c8_i32, %c0_i32_27] : memref<64x128xf32, #tpu.memory_space<vmem>> -> memref<1x128xf32, #tpu.memory_space<vmem>>
    tpu.enqueue_dma source(%25 : memref<1x128xf32, #tpu.memory_space<any>>) target(%26 : memref<1x128xf32, #tpu.memory_space<vmem>>) target_semaphore(%arg11 : memref<!tpu.dma_semaphore, #tpu.memory_space<semaphore_mem>>)
    %c1_28 = arith.constant 1 : index
    %c1_29 = arith.constant 1 : index
    %27 = memref.load %arg0[%c1_28, %c1_29] : memref<8x8xi32, #tpu.memory_space<smem>>
    %c0_i32_30 = arith.constant 0 : i32
    %28 = tpu.memref_slice %arg1[%27, %c0_i32_30] : memref<128x128xf32, #tpu.memory_space<any>> -> memref<1x128xf32, #tpu.memory_space<any>>
    %c9_i32 = arith.constant 9 : i32
    %c0_i32_31 = arith.constant 0 : i32
    %29 = tpu.memref_slice %arg9[%c9_i32, %c0_i32_31] : memref<64x128xf32, #tpu.memory_space<vmem>> -> memref<1x128xf32, #tpu.memory_space<vmem>>
    tpu.enqueue_dma source(%28 : memref<1x128xf32, #tpu.memory_space<any>>) target(%29 : memref<1x128xf32, #tpu.memory_space<vmem>>) target_semaphore(%arg11 : memref<!tpu.dma_semaphore, #tpu.memory_space<semaphore_mem>>)
    %c2_32 = arith.constant 2 : index
    %c1_33 = arith.constant 1 : index
    %30 = memref.load %arg0[%c2_32, %c1_33] : memref<8x8xi32, #tpu.memory_space<smem>>
    %c0_i32_34 = arith.constant 0 : i32
    %31 = tpu.memref_slice %arg1[%30, %c0_i32_34] : memref<128x128xf32, #tpu.memory_space<any>> -> memref<1x128xf32, #tpu.memory_space<any>>
    %c10_i32 = arith.constant 10 : i32
    %c0_i32_35 = arith.constant 0 : i32
    %32 = tpu.memref_slice %arg9[%c10_i32, %c0_i32_35] : memref<64x128xf32, #tpu.memory_space<vmem>> -> memref<1x128xf32, #tpu.memory_space<vmem>>
    tpu.enqueue_dma source(%31 : memref<1x128xf32, #tpu.memory_space<any>>) target(%32 : memref<1x128xf32, #tpu.memory_space<vmem>>) target_semaphore(%arg11 : memref<!tpu.dma_semaphore, #tpu.memory_space<semaphore_mem>>)
    %c3_36 = arith.constant 3 : index
    %c1_37 = arith.constant 1 : index
    %33 = memref.load %arg0[%c3_36, %c1_37] : memref<8x8xi32, #tpu.memory_space<smem>>
    %c0_i32_38 = arith.constant 0 : i32
    %34 = tpu.memref_slice %arg1[%33, %c0_i32_38] : memref<128x128xf32, #tpu.memory_space<any>> -> memref<1x128xf32, #tpu.memory_space<any>>
    %c11_i32 = arith.constant 11 : i32
    %c0_i32_39 = arith.constant 0 : i32
    %35 = tpu.memref_slice %arg9[%c11_i32, %c0_i32_39] : memref<64x128xf32, #tpu.memory_space<vmem>> -> memref<1x128xf32, #tpu.memory_space<vmem>>
    tpu.enqueue_dma source(%34 : memref<1x128xf32, #tpu.memory_space<any>>) target(%35 : memref<1x128xf32, #tpu.memory_space<vmem>>) target_semaphore(%arg11 : memref<!tpu.dma_semaphore, #tpu.memory_space<semaphore_mem>>)
    %c4_40 = arith.constant 4 : index
    %c1_41 = arith.constant 1 : index
    %36 = memref.load %arg0[%c4_40, %c1_41] : memref<8x8xi32, #tpu.memory_space<smem>>
    %c0_i32_42 = arith.constant 0 : i32
    %37 = tpu.memref_slice %arg1[%36, %c0_i32_42] : memref<128x128xf32, #tpu.memory_space<any>> -> memref<1x128xf32, #tpu.memory_space<any>>
    %c12_i32 = arith.constant 12 : i32
    %c0_i32_43 = arith.constant 0 : i32
    %38 = tpu.memref_slice %arg9[%c12_i32, %c0_i32_43] : memref<64x128xf32, #tpu.memory_space<vmem>> -> memref<1x128xf32, #tpu.memory_space<vmem>>
    tpu.enqueue_dma source(%37 : memref<1x128xf32, #tpu.memory_space<any>>) target(%38 : memref<1x128xf32, #tpu.memory_space<vmem>>) target_semaphore(%arg11 : memref<!tpu.dma_semaphore, #tpu.memory_space<semaphore_mem>>)
    %c5_44 = arith.constant 5 : index
    %c1_45 = arith.constant 1 : index
    %39 = memref.load %arg0[%c5_44, %c1_45] : memref<8x8xi32, #tpu.memory_space<smem>>
    %c0_i32_46 = arith.constant 0 : i32
    %40 = tpu.memref_slice %arg1[%39, %c0_i32_46] : memref<128x128xf32, #tpu.memory_space<any>> -> memref<1x128xf32, #tpu.memory_space<any>>
    %c13_i32 = arith.constant 13 : i32
    %c0_i32_47 = arith.constant 0 : i32
    %41 = tpu.memref_slice %arg9[%c13_i32, %c0_i32_47] : memref<64x128xf32, #tpu.memory_space<vmem>> -> memref<1x128xf32, #tpu.memory_space<vmem>>
    tpu.enqueue_dma source(%40 : memref<1x128xf32, #tpu.memory_space<any>>) target(%41 : memref<1x128xf32, #tpu.memory_space<vmem>>) target_semaphore(%arg11 : memref<!tpu.dma_semaphore, #tpu.memory_space<semaphore_mem>>)
    %c6_48 = arith.constant 6 : index
    %c1_49 = arith.constant 1 : index
    %42 = memref.load %arg0[%c6_48, %c1_49] : memref<8x8xi32, #tpu.memory_space<smem>>
    %c0_i32_50 = arith.constant 0 : i32
    %43 = tpu.memref_slice %arg1[%42, %c0_i32_50] : memref<128x128xf32, #tpu.memory_space<any>> -> memref<1x128xf32, #tpu.memory_space<any>>
    %c14_i32 = arith.constant 14 : i32
    %c0_i32_51 = arith.constant 0 : i32
    %44 = tpu.memref_slice %arg9[%c14_i32, %c0_i32_51] : memref<64x128xf32, #tpu.memory_space<vmem>> -> memref<1x128xf32, #tpu.memory_space<vmem>>
    tpu.enqueue_dma source(%43 : memref<1x128xf32, #tpu.memory_space<any>>) target(%44 : memref<1x128xf32, #tpu.memory_space<vmem>>) target_semaphore(%arg11 : memref<!tpu.dma_semaphore, #tpu.memory_space<semaphore_mem>>)
    %c7_52 = arith.constant 7 : index
    %c1_53 = arith.constant 1 : index
    %45 = memref.load %arg0[%c7_52, %c1_53] : memref<8x8xi32, #tpu.memory_space<smem>>
    %c0_i32_54 = arith.constant 0 : i32
    %46 = tpu.memref_slice %arg1[%45, %c0_i32_54] : memref<128x128xf32, #tpu.memory_space<any>> -> memref<1x128xf32, #tpu.memory_space<any>>
    %c15_i32 = arith.constant 15 : i32
    %c0_i32_55 = arith.constant 0 : i32
    %47 = tpu.memref_slice %arg9[%c15_i32, %c0_i32_55] : memref<64x128xf32, #tpu.memory_space<vmem>> -> memref<1x128xf32, #tpu.memory_space<vmem>>
    tpu.enqueue_dma source(%46 : memref<1x128xf32, #tpu.memory_space<any>>) target(%47 : memref<1x128xf32, #tpu.memory_space<vmem>>) target_semaphore(%arg11 : memref<!tpu.dma_semaphore, #tpu.memory_space<semaphore_mem>>)
    %c0_56 = arith.constant 0 : index
    %c2_57 = arith.constant 2 : index
    %48 = memref.load %arg0[%c0_56, %c2_57] : memref<8x8xi32, #tpu.memory_space<smem>>
    %c0_i32_58 = arith.constant 0 : i32
    %49 = tpu.memref_slice %arg1[%48, %c0_i32_58] : memref<128x128xf32, #tpu.memory_space<any>> -> memref<1x128xf32, #tpu.memory_space<any>>
    %c16_i32 = arith.constant 16 : i32
    %c0_i32_59 = arith.constant 0 : i32
    %50 = tpu.memref_slice %arg9[%c16_i32, %c0_i32_59] : memref<64x128xf32, #tpu.memory_space<vmem>> -> memref<1x128xf32, #tpu.memory_space<vmem>>
    tpu.enqueue_dma source(%49 : memref<1x128xf32, #tpu.memory_space<any>>) target(%50 : memref<1x128xf32, #tpu.memory_space<vmem>>) target_semaphore(%arg11 : memref<!tpu.dma_semaphore, #tpu.memory_space<semaphore_mem>>)
    %c1_60 = arith.constant 1 : index
    %c2_61 = arith.constant 2 : index
    %51 = memref.load %arg0[%c1_60, %c2_61] : memref<8x8xi32, #tpu.memory_space<smem>>
    %c0_i32_62 = arith.constant 0 : i32
    %52 = tpu.memref_slice %arg1[%51, %c0_i32_62] : memref<128x128xf32, #tpu.memory_space<any>> -> memref<1x128xf32, #tpu.memory_space<any>>
    %c17_i32 = arith.constant 17 : i32
    %c0_i32_63 = arith.constant 0 : i32
    %53 = tpu.memref_slice %arg9[%c17_i32, %c0_i32_63] : memref<64x128xf32, #tpu.memory_space<vmem>> -> memref<1x128xf32, #tpu.memory_space<vmem>>
    tpu.enqueue_dma source(%52 : memref<1x128xf32, #tpu.memory_space<any>>) target(%53 : memref<1x128xf32, #tpu.memory_space<vmem>>) target_semaphore(%arg11 : memref<!tpu.dma_semaphore, #tpu.memory_space<semaphore_mem>>)
    %c2_64 = arith.constant 2 : index
    %c2_65 = arith.constant 2 : index
    %54 = memref.load %arg0[%c2_64, %c2_65] : memref<8x8xi32, #tpu.memory_space<smem>>
    %c0_i32_66 = arith.constant 0 : i32
    %55 = tpu.memref_slice %arg1[%54, %c0_i32_66] : memref<128x128xf32, #tpu.memory_space<any>> -> memref<1x128xf32, #tpu.memory_space<any>>
    %c18_i32 = arith.constant 18 : i32
    %c0_i32_67 = arith.constant 0 : i32
    %56 = tpu.memref_slice %arg9[%c18_i32, %c0_i32_67] : memref<64x128xf32, #tpu.memory_space<vmem>> -> memref<1x128xf32, #tpu.memory_space<vmem>>
    tpu.enqueue_dma source(%55 : memref<1x128xf32, #tpu.memory_space<any>>) target(%56 : memref<1x128xf32, #tpu.memory_space<vmem>>) target_semaphore(%arg11 : memref<!tpu.dma_semaphore, #tpu.memory_space<semaphore_mem>>)
    %c3_68 = arith.constant 3 : index
    %c2_69 = arith.constant 2 : index
    %57 = memref.load %arg0[%c3_68, %c2_69] : memref<8x8xi32, #tpu.memory_space<smem>>
    %c0_i32_70 = arith.constant 0 : i32
    %58 = tpu.memref_slice %arg1[%57, %c0_i32_70] : memref<128x128xf32, #tpu.memory_space<any>> -> memref<1x128xf32, #tpu.memory_space<any>>
    %c19_i32 = arith.constant 19 : i32
    %c0_i32_71 = arith.constant 0 : i32
    %59 = tpu.memref_slice %arg9[%c19_i32, %c0_i32_71] : memref<64x128xf32, #tpu.memory_space<vmem>> -> memref<1x128xf32, #tpu.memory_space<vmem>>
    tpu.enqueue_dma source(%58 : memref<1x128xf32, #tpu.memory_space<any>>) target(%59 : memref<1x128xf32, #tpu.memory_space<vmem>>) target_semaphore(%arg11 : memref<!tpu.dma_semaphore, #tpu.memory_space<semaphore_mem>>)
    %c4_72 = arith.constant 4 : index
    %c2_73 = arith.constant 2 : index
    %60 = memref.load %arg0[%c4_72, %c2_73] : memref<8x8xi32, #tpu.memory_space<smem>>
    %c0_i32_74 = arith.constant 0 : i32
    %61 = tpu.memref_slice %arg1[%60, %c0_i32_74] : memref<128x128xf32, #tpu.memory_space<any>> -> memref<1x128xf32, #tpu.memory_space<any>>
    %c20_i32 = arith.constant 20 : i32
    %c0_i32_75 = arith.constant 0 : i32
    %62 = tpu.memref_slice %arg9[%c20_i32, %c0_i32_75] : memref<64x128xf32, #tpu.memory_space<vmem>> -> memref<1x128xf32, #tpu.memory_space<vmem>>
    tpu.enqueue_dma source(%61 : memref<1x128xf32, #tpu.memory_space<any>>) target(%62 : memref<1x128xf32, #tpu.memory_space<vmem>>) target_semaphore(%arg11 : memref<!tpu.dma_semaphore, #tpu.memory_space<semaphore_mem>>)
    %c5_76 = arith.constant 5 : index
    %c2_77 = arith.constant 2 : index
    %63 = memref.load %arg0[%c5_76, %c2_77] : memref<8x8xi32, #tpu.memory_space<smem>>
    %c0_i32_78 = arith.constant 0 : i32
    %64 = tpu.memref_slice %arg1[%63, %c0_i32_78] : memref<128x128xf32, #tpu.memory_space<any>> -> memref<1x128xf32, #tpu.memory_space<any>>
    %c21_i32 = arith.constant 21 : i32
    %c0_i32_79 = arith.constant 0 : i32
    %65 = tpu.memref_slice %arg9[%c21_i32, %c0_i32_79] : memref<64x128xf32, #tpu.memory_space<vmem>> -> memref<1x128xf32, #tpu.memory_space<vmem>>
    tpu.enqueue_dma source(%64 : memref<1x128xf32, #tpu.memory_space<any>>) target(%65 : memref<1x128xf32, #tpu.memory_space<vmem>>) target_semaphore(%arg11 : memref<!tpu.dma_semaphore, #tpu.memory_space<semaphore_mem>>)
    %c6_80 = arith.constant 6 : index
    %c2_81 = arith.constant 2 : index
    %66 = memref.load %arg0[%c6_80, %c2_81] : memref<8x8xi32, #tpu.memory_space<smem>>
    %c0_i32_82 = arith.constant 0 : i32
    %67 = tpu.memref_slice %arg1[%66, %c0_i32_82] : memref<128x128xf32, #tpu.memory_space<any>> -> memref<1x128xf32, #tpu.memory_space<any>>
    %c22_i32 = arith.constant 22 : i32
    %c0_i32_83 = arith.constant 0 : i32
    %68 = tpu.memref_slice %arg9[%c22_i32, %c0_i32_83] : memref<64x128xf32, #tpu.memory_space<vmem>> -> memref<1x128xf32, #tpu.memory_space<vmem>>
    tpu.enqueue_dma source(%67 : memref<1x128xf32, #tpu.memory_space<any>>) target(%68 : memref<1x128xf32, #tpu.memory_space<vmem>>) target_semaphore(%arg11 : memref<!tpu.dma_semaphore, #tpu.memory_space<semaphore_mem>>)
    %c7_84 = arith.constant 7 : index
    %c2_85 = arith.constant 2 : index
    %69 = memref.load %arg0[%c7_84, %c2_85] : memref<8x8xi32, #tpu.memory_space<smem>>
    %c0_i32_86 = arith.constant 0 : i32
    %70 = tpu.memref_slice %arg1[%69, %c0_i32_86] : memref<128x128xf32, #tpu.memory_space<any>> -> memref<1x128xf32, #tpu.memory_space<any>>
    %c23_i32 = arith.constant 23 : i32
    %c0_i32_87 = arith.constant 0 : i32
    %71 = tpu.memref_slice %arg9[%c23_i32, %c0_i32_87] : memref<64x128xf32, #tpu.memory_space<vmem>> -> memref<1x128xf32, #tpu.memory_space<vmem>>
    tpu.enqueue_dma source(%70 : memref<1x128xf32, #tpu.memory_space<any>>) target(%71 : memref<1x128xf32, #tpu.memory_space<vmem>>) target_semaphore(%arg11 : memref<!tpu.dma_semaphore, #tpu.memory_space<semaphore_mem>>)
    %c0_88 = arith.constant 0 : index
    %c3_89 = arith.constant 3 : index
    %72 = memref.load %arg0[%c0_88, %c3_89] : memref<8x8xi32, #tpu.memory_space<smem>>
    %c0_i32_90 = arith.constant 0 : i32
    %73 = tpu.memref_slice %arg1[%72, %c0_i32_90] : memref<128x128xf32, #tpu.memory_space<any>> -> memref<1x128xf32, #tpu.memory_space<any>>
    %c24_i32 = arith.constant 24 : i32
    %c0_i32_91 = arith.constant 0 : i32
    %74 = tpu.memref_slice %arg9[%c24_i32, %c0_i32_91] : memref<64x128xf32, #tpu.memory_space<vmem>> -> memref<1x128xf32, #tpu.memory_space<vmem>>
    tpu.enqueue_dma source(%73 : memref<1x128xf32, #tpu.memory_space<any>>) target(%74 : memref<1x128xf32, #tpu.memory_space<vmem>>) target_semaphore(%arg11 : memref<!tpu.dma_semaphore, #tpu.memory_space<semaphore_mem>>)
    %c1_92 = arith.constant 1 : index
    %c3_93 = arith.constant 3 : index
    %75 = memref.load %arg0[%c1_92, %c3_93] : memref<8x8xi32, #tpu.memory_space<smem>>
    %c0_i32_94 = arith.constant 0 : i32
    %76 = tpu.memref_slice %arg1[%75, %c0_i32_94] : memref<128x128xf32, #tpu.memory_space<any>> -> memref<1x128xf32, #tpu.memory_space<any>>
    %c25_i32 = arith.constant 25 : i32
    %c0_i32_95 = arith.constant 0 : i32
    %77 = tpu.memref_slice %arg9[%c25_i32, %c0_i32_95] : memref<64x128xf32, #tpu.memory_space<vmem>> -> memref<1x128xf32, #tpu.memory_space<vmem>>
    tpu.enqueue_dma source(%76 : memref<1x128xf32, #tpu.memory_space<any>>) target(%77 : memref<1x128xf32, #tpu.memory_space<vmem>>) target_semaphore(%arg11 : memref<!tpu.dma_semaphore, #tpu.memory_space<semaphore_mem>>)
    %c2_96 = arith.constant 2 : index
    %c3_97 = arith.constant 3 : index
    %78 = memref.load %arg0[%c2_96, %c3_97] : memref<8x8xi32, #tpu.memory_space<smem>>
    %c0_i32_98 = arith.constant 0 : i32
    %79 = tpu.memref_slice %arg1[%78, %c0_i32_98] : memref<128x128xf32, #tpu.memory_space<any>> -> memref<1x128xf32, #tpu.memory_space<any>>
    %c26_i32 = arith.constant 26 : i32
    %c0_i32_99 = arith.constant 0 : i32
    %80 = tpu.memref_slice %arg9[%c26_i32, %c0_i32_99] : memref<64x128xf32, #tpu.memory_space<vmem>> -> memref<1x128xf32, #tpu.memory_space<vmem>>
    tpu.enqueue_dma source(%79 : memref<1x128xf32, #tpu.memory_space<any>>) target(%80 : memref<1x128xf32, #tpu.memory_space<vmem>>) target_semaphore(%arg11 : memref<!tpu.dma_semaphore, #tpu.memory_space<semaphore_mem>>)
    %c3_100 = arith.constant 3 : index
    %c3_101 = arith.constant 3 : index
    %81 = memref.load %arg0[%c3_100, %c3_101] : memref<8x8xi32, #tpu.memory_space<smem>>
    %c0_i32_102 = arith.constant 0 : i32
    %82 = tpu.memref_slice %arg1[%81, %c0_i32_102] : memref<128x128xf32, #tpu.memory_space<any>> -> memref<1x128xf32, #tpu.memory_space<any>>
    %c27_i32 = arith.constant 27 : i32
    %c0_i32_103 = arith.constant 0 : i32
    %83 = tpu.memref_slice %arg9[%c27_i32, %c0_i32_103] : memref<64x128xf32, #tpu.memory_space<vmem>> -> memref<1x128xf32, #tpu.memory_space<vmem>>
    tpu.enqueue_dma source(%82 : memref<1x128xf32, #tpu.memory_space<any>>) target(%83 : memref<1x128xf32, #tpu.memory_space<vmem>>) target_semaphore(%arg11 : memref<!tpu.dma_semaphore, #tpu.memory_space<semaphore_mem>>)
    %c4_104 = arith.constant 4 : index
    %c3_105 = arith.constant 3 : index
    %84 = memref.load %arg0[%c4_104, %c3_105] : memref<8x8xi32, #tpu.memory_space<smem>>
    %c0_i32_106 = arith.constant 0 : i32
    %85 = tpu.memref_slice %arg1[%84, %c0_i32_106] : memref<128x128xf32, #tpu.memory_space<any>> -> memref<1x128xf32, #tpu.memory_space<any>>
    %c28_i32 = arith.constant 28 : i32
    %c0_i32_107 = arith.constant 0 : i32
    %86 = tpu.memref_slice %arg9[%c28_i32, %c0_i32_107] : memref<64x128xf32, #tpu.memory_space<vmem>> -> memref<1x128xf32, #tpu.memory_space<vmem>>
    tpu.enqueue_dma source(%85 : memref<1x128xf32, #tpu.memory_space<any>>) target(%86 : memref<1x128xf32, #tpu.memory_space<vmem>>) target_semaphore(%arg11 : memref<!tpu.dma_semaphore, #tpu.memory_space<semaphore_mem>>)
    %c5_108 = arith.constant 5 : index
    %c3_109 = arith.constant 3 : index
    %87 = memref.load %arg0[%c5_108, %c3_109] : memref<8x8xi32, #tpu.memory_space<smem>>
    %c0_i32_110 = arith.constant 0 : i32
    %88 = tpu.memref_slice %arg1[%87, %c0_i32_110] : memref<128x128xf32, #tpu.memory_space<any>> -> memref<1x128xf32, #tpu.memory_space<any>>
    %c29_i32 = arith.constant 29 : i32
    %c0_i32_111 = arith.constant 0 : i32
    %89 = tpu.memref_slice %arg9[%c29_i32, %c0_i32_111] : memref<64x128xf32, #tpu.memory_space<vmem>> -> memref<1x128xf32, #tpu.memory_space<vmem>>
    tpu.enqueue_dma source(%88 : memref<1x128xf32, #tpu.memory_space<any>>) target(%89 : memref<1x128xf32, #tpu.memory_space<vmem>>) target_semaphore(%arg11 : memref<!tpu.dma_semaphore, #tpu.memory_space<semaphore_mem>>)
    %c6_112 = arith.constant 6 : index
    %c3_113 = arith.constant 3 : index
    %90 = memref.load %arg0[%c6_112, %c3_113] : memref<8x8xi32, #tpu.memory_space<smem>>
    %c0_i32_114 = arith.constant 0 : i32
    %91 = tpu.memref_slice %arg1[%90, %c0_i32_114] : memref<128x128xf32, #tpu.memory_space<any>> -> memref<1x128xf32, #tpu.memory_space<any>>
    %c30_i32 = arith.constant 30 : i32
    %c0_i32_115 = arith.constant 0 : i32
    %92 = tpu.memref_slice %arg9[%c30_i32, %c0_i32_115] : memref<64x128xf32, #tpu.memory_space<vmem>> -> memref<1x128xf32, #tpu.memory_space<vmem>>
    tpu.enqueue_dma source(%91 : memref<1x128xf32, #tpu.memory_space<any>>) target(%92 : memref<1x128xf32, #tpu.memory_space<vmem>>) target_semaphore(%arg11 : memref<!tpu.dma_semaphore, #tpu.memory_space<semaphore_mem>>)
    %c7_116 = arith.constant 7 : index
    %c3_117 = arith.constant 3 : index
    %93 = memref.load %arg0[%c7_116, %c3_117] : memref<8x8xi32, #tpu.memory_space<smem>>
    %c0_i32_118 = arith.constant 0 : i32
    %94 = tpu.memref_slice %arg1[%93, %c0_i32_118] : memref<128x128xf32, #tpu.memory_space<any>> -> memref<1x128xf32, #tpu.memory_space<any>>
    %c31_i32 = arith.constant 31 : i32
    %c0_i32_119 = arith.constant 0 : i32
    %95 = tpu.memref_slice %arg9[%c31_i32, %c0_i32_119] : memref<64x128xf32, #tpu.memory_space<vmem>> -> memref<1x128xf32, #tpu.memory_space<vmem>>
    tpu.enqueue_dma source(%94 : memref<1x128xf32, #tpu.memory_space<any>>) target(%95 : memref<1x128xf32, #tpu.memory_space<vmem>>) target_semaphore(%arg11 : memref<!tpu.dma_semaphore, #tpu.memory_space<semaphore_mem>>)
    %c0_120 = arith.constant 0 : index
    %c4_121 = arith.constant 4 : index
    %96 = memref.load %arg0[%c0_120, %c4_121] : memref<8x8xi32, #tpu.memory_space<smem>>
    %c0_i32_122 = arith.constant 0 : i32
    %97 = tpu.memref_slice %arg1[%96, %c0_i32_122] : memref<128x128xf32, #tpu.memory_space<any>> -> memref<1x128xf32, #tpu.memory_space<any>>
    %c32_i32 = arith.constant 32 : i32
    %c0_i32_123 = arith.constant 0 : i32
    %98 = tpu.memref_slice %arg9[%c32_i32, %c0_i32_123] : memref<64x128xf32, #tpu.memory_space<vmem>> -> memref<1x128xf32, #tpu.memory_space<vmem>>
    tpu.enqueue_dma source(%97 : memref<1x128xf32, #tpu.memory_space<any>>) target(%98 : memref<1x128xf32, #tpu.memory_space<vmem>>) target_semaphore(%arg11 : memref<!tpu.dma_semaphore, #tpu.memory_space<semaphore_mem>>)
    %c1_124 = arith.constant 1 : index
    %c4_125 = arith.constant 4 : index
    %99 = memref.load %arg0[%c1_124, %c4_125] : memref<8x8xi32, #tpu.memory_space<smem>>
    %c0_i32_126 = arith.constant 0 : i32
    %100 = tpu.memref_slice %arg1[%99, %c0_i32_126] : memref<128x128xf32, #tpu.memory_space<any>> -> memref<1x128xf32, #tpu.memory_space<any>>
    %c33_i32 = arith.constant 33 : i32
    %c0_i32_127 = arith.constant 0 : i32
    %101 = tpu.memref_slice %arg9[%c33_i32, %c0_i32_127] : memref<64x128xf32, #tpu.memory_space<vmem>> -> memref<1x128xf32, #tpu.memory_space<vmem>>
    tpu.enqueue_dma source(%100 : memref<1x128xf32, #tpu.memory_space<any>>) target(%101 : memref<1x128xf32, #tpu.memory_space<vmem>>) target_semaphore(%arg11 : memref<!tpu.dma_semaphore, #tpu.memory_space<semaphore_mem>>)
    %c2_128 = arith.constant 2 : index
    %c4_129 = arith.constant 4 : index
    %102 = memref.load %arg0[%c2_128, %c4_129] : memref<8x8xi32, #tpu.memory_space<smem>>
    %c0_i32_130 = arith.constant 0 : i32
    %103 = tpu.memref_slice %arg1[%102, %c0_i32_130] : memref<128x128xf32, #tpu.memory_space<any>> -> memref<1x128xf32, #tpu.memory_space<any>>
    %c34_i32 = arith.constant 34 : i32
    %c0_i32_131 = arith.constant 0 : i32
    %104 = tpu.memref_slice %arg9[%c34_i32, %c0_i32_131] : memref<64x128xf32, #tpu.memory_space<vmem>> -> memref<1x128xf32, #tpu.memory_space<vmem>>
    tpu.enqueue_dma source(%103 : memref<1x128xf32, #tpu.memory_space<any>>) target(%104 : memref<1x128xf32, #tpu.memory_space<vmem>>) target_semaphore(%arg11 : memref<!tpu.dma_semaphore, #tpu.memory_space<semaphore_mem>>)
    %c3_132 = arith.constant 3 : index
    %c4_133 = arith.constant 4 : index
    %105 = memref.load %arg0[%c3_132, %c4_133] : memref<8x8xi32, #tpu.memory_space<smem>>
    %c0_i32_134 = arith.constant 0 : i32
    %106 = tpu.memref_slice %arg1[%105, %c0_i32_134] : memref<128x128xf32, #tpu.memory_space<any>> -> memref<1x128xf32, #tpu.memory_space<any>>
    %c35_i32 = arith.constant 35 : i32
    %c0_i32_135 = arith.constant 0 : i32
    %107 = tpu.memref_slice %arg9[%c35_i32, %c0_i32_135] : memref<64x128xf32, #tpu.memory_space<vmem>> -> memref<1x128xf32, #tpu.memory_space<vmem>>
    tpu.enqueue_dma source(%106 : memref<1x128xf32, #tpu.memory_space<any>>) target(%107 : memref<1x128xf32, #tpu.memory_space<vmem>>) target_semaphore(%arg11 : memref<!tpu.dma_semaphore, #tpu.memory_space<semaphore_mem>>)
    %c4_136 = arith.constant 4 : index
    %c4_137 = arith.constant 4 : index
    %108 = memref.load %arg0[%c4_136, %c4_137] : memref<8x8xi32, #tpu.memory_space<smem>>
    %c0_i32_138 = arith.constant 0 : i32
    %109 = tpu.memref_slice %arg1[%108, %c0_i32_138] : memref<128x128xf32, #tpu.memory_space<any>> -> memref<1x128xf32, #tpu.memory_space<any>>
    %c36_i32 = arith.constant 36 : i32
    %c0_i32_139 = arith.constant 0 : i32
    %110 = tpu.memref_slice %arg9[%c36_i32, %c0_i32_139] : memref<64x128xf32, #tpu.memory_space<vmem>> -> memref<1x128xf32, #tpu.memory_space<vmem>>
    tpu.enqueue_dma source(%109 : memref<1x128xf32, #tpu.memory_space<any>>) target(%110 : memref<1x128xf32, #tpu.memory_space<vmem>>) target_semaphore(%arg11 : memref<!tpu.dma_semaphore, #tpu.memory_space<semaphore_mem>>)
    %c5_140 = arith.constant 5 : index
    %c4_141 = arith.constant 4 : index
    %111 = memref.load %arg0[%c5_140, %c4_141] : memref<8x8xi32, #tpu.memory_space<smem>>
    %c0_i32_142 = arith.constant 0 : i32
    %112 = tpu.memref_slice %arg1[%111, %c0_i32_142] : memref<128x128xf32, #tpu.memory_space<any>> -> memref<1x128xf32, #tpu.memory_space<any>>
    %c37_i32 = arith.constant 37 : i32
    %c0_i32_143 = arith.constant 0 : i32
    %113 = tpu.memref_slice %arg9[%c37_i32, %c0_i32_143] : memref<64x128xf32, #tpu.memory_space<vmem>> -> memref<1x128xf32, #tpu.memory_space<vmem>>
    tpu.enqueue_dma source(%112 : memref<1x128xf32, #tpu.memory_space<any>>) target(%113 : memref<1x128xf32, #tpu.memory_space<vmem>>) target_semaphore(%arg11 : memref<!tpu.dma_semaphore, #tpu.memory_space<semaphore_mem>>)
    %c6_144 = arith.constant 6 : index
    %c4_145 = arith.constant 4 : index
    %114 = memref.load %arg0[%c6_144, %c4_145] : memref<8x8xi32, #tpu.memory_space<smem>>
    %c0_i32_146 = arith.constant 0 : i32
    %115 = tpu.memref_slice %arg1[%114, %c0_i32_146] : memref<128x128xf32, #tpu.memory_space<any>> -> memref<1x128xf32, #tpu.memory_space<any>>
    %c38_i32 = arith.constant 38 : i32
    %c0_i32_147 = arith.constant 0 : i32
    %116 = tpu.memref_slice %arg9[%c38_i32, %c0_i32_147] : memref<64x128xf32, #tpu.memory_space<vmem>> -> memref<1x128xf32, #tpu.memory_space<vmem>>
    tpu.enqueue_dma source(%115 : memref<1x128xf32, #tpu.memory_space<any>>) target(%116 : memref<1x128xf32, #tpu.memory_space<vmem>>) target_semaphore(%arg11 : memref<!tpu.dma_semaphore, #tpu.memory_space<semaphore_mem>>)
    %c7_148 = arith.constant 7 : index
    %c4_149 = arith.constant 4 : index
    %117 = memref.load %arg0[%c7_148, %c4_149] : memref<8x8xi32, #tpu.memory_space<smem>>
    %c0_i32_150 = arith.constant 0 : i32
    %118 = tpu.memref_slice %arg1[%117, %c0_i32_150] : memref<128x128xf32, #tpu.memory_space<any>> -> memref<1x128xf32, #tpu.memory_space<any>>
    %c39_i32 = arith.constant 39 : i32
    %c0_i32_151 = arith.constant 0 : i32
    %119 = tpu.memref_slice %arg9[%c39_i32, %c0_i32_151] : memref<64x128xf32, #tpu.memory_space<vmem>> -> memref<1x128xf32, #tpu.memory_space<vmem>>
    tpu.enqueue_dma source(%118 : memref<1x128xf32, #tpu.memory_space<any>>) target(%119 : memref<1x128xf32, #tpu.memory_space<vmem>>) target_semaphore(%arg11 : memref<!tpu.dma_semaphore, #tpu.memory_space<semaphore_mem>>)
    %c0_152 = arith.constant 0 : index
    %c5_153 = arith.constant 5 : index
    %120 = memref.load %arg0[%c0_152, %c5_153] : memref<8x8xi32, #tpu.memory_space<smem>>
    %c0_i32_154 = arith.constant 0 : i32
    %121 = tpu.memref_slice %arg1[%120, %c0_i32_154] : memref<128x128xf32, #tpu.memory_space<any>> -> memref<1x128xf32, #tpu.memory_space<any>>
    %c40_i32 = arith.constant 40 : i32
    %c0_i32_155 = arith.constant 0 : i32
    %122 = tpu.memref_slice %arg9[%c40_i32, %c0_i32_155] : memref<64x128xf32, #tpu.memory_space<vmem>> -> memref<1x128xf32, #tpu.memory_space<vmem>>
    tpu.enqueue_dma source(%121 : memref<1x128xf32, #tpu.memory_space<any>>) target(%122 : memref<1x128xf32, #tpu.memory_space<vmem>>) target_semaphore(%arg11 : memref<!tpu.dma_semaphore, #tpu.memory_space<semaphore_mem>>)
    %c1_156 = arith.constant 1 : index
    %c5_157 = arith.constant 5 : index
    %123 = memref.load %arg0[%c1_156, %c5_157] : memref<8x8xi32, #tpu.memory_space<smem>>
    %c0_i32_158 = arith.constant 0 : i32
    %124 = tpu.memref_slice %arg1[%123, %c0_i32_158] : memref<128x128xf32, #tpu.memory_space<any>> -> memref<1x128xf32, #tpu.memory_space<any>>
    %c41_i32 = arith.constant 41 : i32
    %c0_i32_159 = arith.constant 0 : i32
    %125 = tpu.memref_slice %arg9[%c41_i32, %c0_i32_159] : memref<64x128xf32, #tpu.memory_space<vmem>> -> memref<1x128xf32, #tpu.memory_space<vmem>>
    tpu.enqueue_dma source(%124 : memref<1x128xf32, #tpu.memory_space<any>>) target(%125 : memref<1x128xf32, #tpu.memory_space<vmem>>) target_semaphore(%arg11 : memref<!tpu.dma_semaphore, #tpu.memory_space<semaphore_mem>>)
    %c2_160 = arith.constant 2 : index
    %c5_161 = arith.constant 5 : index
    %126 = memref.load %arg0[%c2_160, %c5_161] : memref<8x8xi32, #tpu.memory_space<smem>>
    %c0_i32_162 = arith.constant 0 : i32
    %127 = tpu.memref_slice %arg1[%126, %c0_i32_162] : memref<128x128xf32, #tpu.memory_space<any>> -> memref<1x128xf32, #tpu.memory_space<any>>
    %c42_i32 = arith.constant 42 : i32
    %c0_i32_163 = arith.constant 0 : i32
    %128 = tpu.memref_slice %arg9[%c42_i32, %c0_i32_163] : memref<64x128xf32, #tpu.memory_space<vmem>> -> memref<1x128xf32, #tpu.memory_space<vmem>>
    tpu.enqueue_dma source(%127 : memref<1x128xf32, #tpu.memory_space<any>>) target(%128 : memref<1x128xf32, #tpu.memory_space<vmem>>) target_semaphore(%arg11 : memref<!tpu.dma_semaphore, #tpu.memory_space<semaphore_mem>>)
    %c3_164 = arith.constant 3 : index
    %c5_165 = arith.constant 5 : index
    %129 = memref.load %arg0[%c3_164, %c5_165] : memref<8x8xi32, #tpu.memory_space<smem>>
    %c0_i32_166 = arith.constant 0 : i32
    %130 = tpu.memref_slice %arg1[%129, %c0_i32_166] : memref<128x128xf32, #tpu.memory_space<any>> -> memref<1x128xf32, #tpu.memory_space<any>>
    %c43_i32 = arith.constant 43 : i32
    %c0_i32_167 = arith.constant 0 : i32
    %131 = tpu.memref_slice %arg9[%c43_i32, %c0_i32_167] : memref<64x128xf32, #tpu.memory_space<vmem>> -> memref<1x128xf32, #tpu.memory_space<vmem>>
    tpu.enqueue_dma source(%130 : memref<1x128xf32, #tpu.memory_space<any>>) target(%131 : memref<1x128xf32, #tpu.memory_space<vmem>>) target_semaphore(%arg11 : memref<!tpu.dma_semaphore, #tpu.memory_space<semaphore_mem>>)
    %c4_168 = arith.constant 4 : index
    %c5_169 = arith.constant 5 : index
    %132 = memref.load %arg0[%c4_168, %c5_169] : memref<8x8xi32, #tpu.memory_space<smem>>
    %c0_i32_170 = arith.constant 0 : i32
    %133 = tpu.memref_slice %arg1[%132, %c0_i32_170] : memref<128x128xf32, #tpu.memory_space<any>> -> memref<1x128xf32, #tpu.memory_space<any>>
    %c44_i32 = arith.constant 44 : i32
    %c0_i32_171 = arith.constant 0 : i32
    %134 = tpu.memref_slice %arg9[%c44_i32, %c0_i32_171] : memref<64x128xf32, #tpu.memory_space<vmem>> -> memref<1x128xf32, #tpu.memory_space<vmem>>
    tpu.enqueue_dma source(%133 : memref<1x128xf32, #tpu.memory_space<any>>) target(%134 : memref<1x128xf32, #tpu.memory_space<vmem>>) target_semaphore(%arg11 : memref<!tpu.dma_semaphore, #tpu.memory_space<semaphore_mem>>)
    %c5_172 = arith.constant 5 : index
    %c5_173 = arith.constant 5 : index
    %135 = memref.load %arg0[%c5_172, %c5_173] : memref<8x8xi32, #tpu.memory_space<smem>>
    %c0_i32_174 = arith.constant 0 : i32
    %136 = tpu.memref_slice %arg1[%135, %c0_i32_174] : memref<128x128xf32, #tpu.memory_space<any>> -> memref<1x128xf32, #tpu.memory_space<any>>
    %c45_i32 = arith.constant 45 : i32
    %c0_i32_175 = arith.constant 0 : i32
    %137 = tpu.memref_slice %arg9[%c45_i32, %c0_i32_175] : memref<64x128xf32, #tpu.memory_space<vmem>> -> memref<1x128xf32, #tpu.memory_space<vmem>>
    tpu.enqueue_dma source(%136 : memref<1x128xf32, #tpu.memory_space<any>>) target(%137 : memref<1x128xf32, #tpu.memory_space<vmem>>) target_semaphore(%arg11 : memref<!tpu.dma_semaphore, #tpu.memory_space<semaphore_mem>>)
    %c6_176 = arith.constant 6 : index
    %c5_177 = arith.constant 5 : index
    %138 = memref.load %arg0[%c6_176, %c5_177] : memref<8x8xi32, #tpu.memory_space<smem>>
    %c0_i32_178 = arith.constant 0 : i32
    %139 = tpu.memref_slice %arg1[%138, %c0_i32_178] : memref<128x128xf32, #tpu.memory_space<any>> -> memref<1x128xf32, #tpu.memory_space<any>>
    %c46_i32 = arith.constant 46 : i32
    %c0_i32_179 = arith.constant 0 : i32
    %140 = tpu.memref_slice %arg9[%c46_i32, %c0_i32_179] : memref<64x128xf32, #tpu.memory_space<vmem>> -> memref<1x128xf32, #tpu.memory_space<vmem>>
    tpu.enqueue_dma source(%139 : memref<1x128xf32, #tpu.memory_space<any>>) target(%140 : memref<1x128xf32, #tpu.memory_space<vmem>>) target_semaphore(%arg11 : memref<!tpu.dma_semaphore, #tpu.memory_space<semaphore_mem>>)
    %c7_180 = arith.constant 7 : index
    %c5_181 = arith.constant 5 : index
    %141 = memref.load %arg0[%c7_180, %c5_181] : memref<8x8xi32, #tpu.memory_space<smem>>
    %c0_i32_182 = arith.constant 0 : i32
    %142 = tpu.memref_slice %arg1[%141, %c0_i32_182] : memref<128x128xf32, #tpu.memory_space<any>> -> memref<1x128xf32, #tpu.memory_space<any>>
    %c47_i32 = arith.constant 47 : i32
    %c0_i32_183 = arith.constant 0 : i32
    %143 = tpu.memref_slice %arg9[%c47_i32, %c0_i32_183] : memref<64x128xf32, #tpu.memory_space<vmem>> -> memref<1x128xf32, #tpu.memory_space<vmem>>
    tpu.enqueue_dma source(%142 : memref<1x128xf32, #tpu.memory_space<any>>) target(%143 : memref<1x128xf32, #tpu.memory_space<vmem>>) target_semaphore(%arg11 : memref<!tpu.dma_semaphore, #tpu.memory_space<semaphore_mem>>)
    %c0_184 = arith.constant 0 : index
    %c6_185 = arith.constant 6 : index
    %144 = memref.load %arg0[%c0_184, %c6_185] : memref<8x8xi32, #tpu.memory_space<smem>>
    %c0_i32_186 = arith.constant 0 : i32
    %145 = tpu.memref_slice %arg1[%144, %c0_i32_186] : memref<128x128xf32, #tpu.memory_space<any>> -> memref<1x128xf32, #tpu.memory_space<any>>
    %c48_i32 = arith.constant 48 : i32
    %c0_i32_187 = arith.constant 0 : i32
    %146 = tpu.memref_slice %arg9[%c48_i32, %c0_i32_187] : memref<64x128xf32, #tpu.memory_space<vmem>> -> memref<1x128xf32, #tpu.memory_space<vmem>>
    tpu.enqueue_dma source(%145 : memref<1x128xf32, #tpu.memory_space<any>>) target(%146 : memref<1x128xf32, #tpu.memory_space<vmem>>) target_semaphore(%arg11 : memref<!tpu.dma_semaphore, #tpu.memory_space<semaphore_mem>>)
    %c1_188 = arith.constant 1 : index
    %c6_189 = arith.constant 6 : index
    %147 = memref.load %arg0[%c1_188, %c6_189] : memref<8x8xi32, #tpu.memory_space<smem>>
    %c0_i32_190 = arith.constant 0 : i32
    %148 = tpu.memref_slice %arg1[%147, %c0_i32_190] : memref<128x128xf32, #tpu.memory_space<any>> -> memref<1x128xf32, #tpu.memory_space<any>>
    %c49_i32 = arith.constant 49 : i32
    %c0_i32_191 = arith.constant 0 : i32
    %149 = tpu.memref_slice %arg9[%c49_i32, %c0_i32_191] : memref<64x128xf32, #tpu.memory_space<vmem>> -> memref<1x128xf32, #tpu.memory_space<vmem>>
    tpu.enqueue_dma source(%148 : memref<1x128xf32, #tpu.memory_space<any>>) target(%149 : memref<1x128xf32, #tpu.memory_space<vmem>>) target_semaphore(%arg11 : memref<!tpu.dma_semaphore, #tpu.memory_space<semaphore_mem>>)
    %c2_192 = arith.constant 2 : index
    %c6_193 = arith.constant 6 : index
    %150 = memref.load %arg0[%c2_192, %c6_193] : memref<8x8xi32, #tpu.memory_space<smem>>
    %c0_i32_194 = arith.constant 0 : i32
    %151 = tpu.memref_slice %arg1[%150, %c0_i32_194] : memref<128x128xf32, #tpu.memory_space<any>> -> memref<1x128xf32, #tpu.memory_space<any>>
    %c50_i32 = arith.constant 50 : i32
    %c0_i32_195 = arith.constant 0 : i32
    %152 = tpu.memref_slice %arg9[%c50_i32, %c0_i32_195] : memref<64x128xf32, #tpu.memory_space<vmem>> -> memref<1x128xf32, #tpu.memory_space<vmem>>
    tpu.enqueue_dma source(%151 : memref<1x128xf32, #tpu.memory_space<any>>) target(%152 : memref<1x128xf32, #tpu.memory_space<vmem>>) target_semaphore(%arg11 : memref<!tpu.dma_semaphore, #tpu.memory_space<semaphore_mem>>)
    %c3_196 = arith.constant 3 : index
    %c6_197 = arith.constant 6 : index
    %153 = memref.load %arg0[%c3_196, %c6_197] : memref<8x8xi32, #tpu.memory_space<smem>>
    %c0_i32_198 = arith.constant 0 : i32
    %154 = tpu.memref_slice %arg1[%153, %c0_i32_198] : memref<128x128xf32, #tpu.memory_space<any>> -> memref<1x128xf32, #tpu.memory_space<any>>
    %c51_i32 = arith.constant 51 : i32
    %c0_i32_199 = arith.constant 0 : i32
    %155 = tpu.memref_slice %arg9[%c51_i32, %c0_i32_199] : memref<64x128xf32, #tpu.memory_space<vmem>> -> memref<1x128xf32, #tpu.memory_space<vmem>>
    tpu.enqueue_dma source(%154 : memref<1x128xf32, #tpu.memory_space<any>>) target(%155 : memref<1x128xf32, #tpu.memory_space<vmem>>) target_semaphore(%arg11 : memref<!tpu.dma_semaphore, #tpu.memory_space<semaphore_mem>>)
    %c4_200 = arith.constant 4 : index
    %c6_201 = arith.constant 6 : index
    %156 = memref.load %arg0[%c4_200, %c6_201] : memref<8x8xi32, #tpu.memory_space<smem>>
    %c0_i32_202 = arith.constant 0 : i32
    %157 = tpu.memref_slice %arg1[%156, %c0_i32_202] : memref<128x128xf32, #tpu.memory_space<any>> -> memref<1x128xf32, #tpu.memory_space<any>>
    %c52_i32 = arith.constant 52 : i32
    %c0_i32_203 = arith.constant 0 : i32
    %158 = tpu.memref_slice %arg9[%c52_i32, %c0_i32_203] : memref<64x128xf32, #tpu.memory_space<vmem>> -> memref<1x128xf32, #tpu.memory_space<vmem>>
    tpu.enqueue_dma source(%157 : memref<1x128xf32, #tpu.memory_space<any>>) target(%158 : memref<1x128xf32, #tpu.memory_space<vmem>>) target_semaphore(%arg11 : memref<!tpu.dma_semaphore, #tpu.memory_space<semaphore_mem>>)
    %c5_204 = arith.constant 5 : index
    %c6_205 = arith.constant 6 : index
    %159 = memref.load %arg0[%c5_204, %c6_205] : memref<8x8xi32, #tpu.memory_space<smem>>
    %c0_i32_206 = arith.constant 0 : i32
    %160 = tpu.memref_slice %arg1[%159, %c0_i32_206] : memref<128x128xf32, #tpu.memory_space<any>> -> memref<1x128xf32, #tpu.memory_space<any>>
    %c53_i32 = arith.constant 53 : i32
    %c0_i32_207 = arith.constant 0 : i32
    %161 = tpu.memref_slice %arg9[%c53_i32, %c0_i32_207] : memref<64x128xf32, #tpu.memory_space<vmem>> -> memref<1x128xf32, #tpu.memory_space<vmem>>
    tpu.enqueue_dma source(%160 : memref<1x128xf32, #tpu.memory_space<any>>) target(%161 : memref<1x128xf32, #tpu.memory_space<vmem>>) target_semaphore(%arg11 : memref<!tpu.dma_semaphore, #tpu.memory_space<semaphore_mem>>)
    %c6_208 = arith.constant 6 : index
    %c6_209 = arith.constant 6 : index
    %162 = memref.load %arg0[%c6_208, %c6_209] : memref<8x8xi32, #tpu.memory_space<smem>>
    %c0_i32_210 = arith.constant 0 : i32
    %163 = tpu.memref_slice %arg1[%162, %c0_i32_210] : memref<128x128xf32, #tpu.memory_space<any>> -> memref<1x128xf32, #tpu.memory_space<any>>
    %c54_i32 = arith.constant 54 : i32
    %c0_i32_211 = arith.constant 0 : i32
    %164 = tpu.memref_slice %arg9[%c54_i32, %c0_i32_211] : memref<64x128xf32, #tpu.memory_space<vmem>> -> memref<1x128xf32, #tpu.memory_space<vmem>>
    tpu.enqueue_dma source(%163 : memref<1x128xf32, #tpu.memory_space<any>>) target(%164 : memref<1x128xf32, #tpu.memory_space<vmem>>) target_semaphore(%arg11 : memref<!tpu.dma_semaphore, #tpu.memory_space<semaphore_mem>>)
    %c7_212 = arith.constant 7 : index
    %c6_213 = arith.constant 6 : index
    %165 = memref.load %arg0[%c7_212, %c6_213] : memref<8x8xi32, #tpu.memory_space<smem>>
    %c0_i32_214 = arith.constant 0 : i32
    %166 = tpu.memref_slice %arg1[%165, %c0_i32_214] : memref<128x128xf32, #tpu.memory_space<any>> -> memref<1x128xf32, #tpu.memory_space<any>>
    %c55_i32 = arith.constant 55 : i32
    %c0_i32_215 = arith.constant 0 : i32
    %167 = tpu.memref_slice %arg9[%c55_i32, %c0_i32_215] : memref<64x128xf32, #tpu.memory_space<vmem>> -> memref<1x128xf32, #tpu.memory_space<vmem>>
    tpu.enqueue_dma source(%166 : memref<1x128xf32, #tpu.memory_space<any>>) target(%167 : memref<1x128xf32, #tpu.memory_space<vmem>>) target_semaphore(%arg11 : memref<!tpu.dma_semaphore, #tpu.memory_space<semaphore_mem>>)
    %c0_216 = arith.constant 0 : index
    %c7_217 = arith.constant 7 : index
    %168 = memref.load %arg0[%c0_216, %c7_217] : memref<8x8xi32, #tpu.memory_space<smem>>
    %c0_i32_218 = arith.constant 0 : i32
    %169 = tpu.memref_slice %arg1[%168, %c0_i32_218] : memref<128x128xf32, #tpu.memory_space<any>> -> memref<1x128xf32, #tpu.memory_space<any>>
    %c56_i32 = arith.constant 56 : i32
    %c0_i32_219 = arith.constant 0 : i32
    %170 = tpu.memref_slice %arg9[%c56_i32, %c0_i32_219] : memref<64x128xf32, #tpu.memory_space<vmem>> -> memref<1x128xf32, #tpu.memory_space<vmem>>
    tpu.enqueue_dma source(%169 : memref<1x128xf32, #tpu.memory_space<any>>) target(%170 : memref<1x128xf32, #tpu.memory_space<vmem>>) target_semaphore(%arg11 : memref<!tpu.dma_semaphore, #tpu.memory_space<semaphore_mem>>)
    %c1_220 = arith.constant 1 : index
    %c7_221 = arith.constant 7 : index
    %171 = memref.load %arg0[%c1_220, %c7_221] : memref<8x8xi32, #tpu.memory_space<smem>>
    %c0_i32_222 = arith.constant 0 : i32
    %172 = tpu.memref_slice %arg1[%171, %c0_i32_222] : memref<128x128xf32, #tpu.memory_space<any>> -> memref<1x128xf32, #tpu.memory_space<any>>
    %c57_i32 = arith.constant 57 : i32
    %c0_i32_223 = arith.constant 0 : i32
    %173 = tpu.memref_slice %arg9[%c57_i32, %c0_i32_223] : memref<64x128xf32, #tpu.memory_space<vmem>> -> memref<1x128xf32, #tpu.memory_space<vmem>>
    tpu.enqueue_dma source(%172 : memref<1x128xf32, #tpu.memory_space<any>>) target(%173 : memref<1x128xf32, #tpu.memory_space<vmem>>) target_semaphore(%arg11 : memref<!tpu.dma_semaphore, #tpu.memory_space<semaphore_mem>>)
    %c2_224 = arith.constant 2 : index
    %c7_225 = arith.constant 7 : index
    %174 = memref.load %arg0[%c2_224, %c7_225] : memref<8x8xi32, #tpu.memory_space<smem>>
    %c0_i32_226 = arith.constant 0 : i32
    %175 = tpu.memref_slice %arg1[%174, %c0_i32_226] : memref<128x128xf32, #tpu.memory_space<any>> -> memref<1x128xf32, #tpu.memory_space<any>>
    %c58_i32 = arith.constant 58 : i32
    %c0_i32_227 = arith.constant 0 : i32
    %176 = tpu.memref_slice %arg9[%c58_i32, %c0_i32_227] : memref<64x128xf32, #tpu.memory_space<vmem>> -> memref<1x128xf32, #tpu.memory_space<vmem>>
    tpu.enqueue_dma source(%175 : memref<1x128xf32, #tpu.memory_space<any>>) target(%176 : memref<1x128xf32, #tpu.memory_space<vmem>>) target_semaphore(%arg11 : memref<!tpu.dma_semaphore, #tpu.memory_space<semaphore_mem>>)
    %c3_228 = arith.constant 3 : index
    %c7_229 = arith.constant 7 : index
    %177 = memref.load %arg0[%c3_228, %c7_229] : memref<8x8xi32, #tpu.memory_space<smem>>
    %c0_i32_230 = arith.constant 0 : i32
    %178 = tpu.memref_slice %arg1[%177, %c0_i32_230] : memref<128x128xf32, #tpu.memory_space<any>> -> memref<1x128xf32, #tpu.memory_space<any>>
    %c59_i32 = arith.constant 59 : i32
    %c0_i32_231 = arith.constant 0 : i32
    %179 = tpu.memref_slice %arg9[%c59_i32, %c0_i32_231] : memref<64x128xf32, #tpu.memory_space<vmem>> -> memref<1x128xf32, #tpu.memory_space<vmem>>
    tpu.enqueue_dma source(%178 : memref<1x128xf32, #tpu.memory_space<any>>) target(%179 : memref<1x128xf32, #tpu.memory_space<vmem>>) target_semaphore(%arg11 : memref<!tpu.dma_semaphore, #tpu.memory_space<semaphore_mem>>)
    %c4_232 = arith.constant 4 : index
    %c7_233 = arith.constant 7 : index
    %180 = memref.load %arg0[%c4_232, %c7_233] : memref<8x8xi32, #tpu.memory_space<smem>>
    %c0_i32_234 = arith.constant 0 : i32
    %181 = tpu.memref_slice %arg1[%180, %c0_i32_234] : memref<128x128xf32, #tpu.memory_space<any>> -> memref<1x128xf32, #tpu.memory_space<any>>
    %c60_i32 = arith.constant 60 : i32
    %c0_i32_235 = arith.constant 0 : i32
    %182 = tpu.memref_slice %arg9[%c60_i32, %c0_i32_235] : memref<64x128xf32, #tpu.memory_space<vmem>> -> memref<1x128xf32, #tpu.memory_space<vmem>>
    tpu.enqueue_dma source(%181 : memref<1x128xf32, #tpu.memory_space<any>>) target(%182 : memref<1x128xf32, #tpu.memory_space<vmem>>) target_semaphore(%arg11 : memref<!tpu.dma_semaphore, #tpu.memory_space<semaphore_mem>>)
    %c5_236 = arith.constant 5 : index
    %c7_237 = arith.constant 7 : index
    %183 = memref.load %arg0[%c5_236, %c7_237] : memref<8x8xi32, #tpu.memory_space<smem>>
    %c0_i32_238 = arith.constant 0 : i32
    %184 = tpu.memref_slice %arg1[%183, %c0_i32_238] : memref<128x128xf32, #tpu.memory_space<any>> -> memref<1x128xf32, #tpu.memory_space<any>>
    %c61_i32 = arith.constant 61 : i32
    %c0_i32_239 = arith.constant 0 : i32
    %185 = tpu.memref_slice %arg9[%c61_i32, %c0_i32_239] : memref<64x128xf32, #tpu.memory_space<vmem>> -> memref<1x128xf32, #tpu.memory_space<vmem>>
    tpu.enqueue_dma source(%184 : memref<1x128xf32, #tpu.memory_space<any>>) target(%185 : memref<1x128xf32, #tpu.memory_space<vmem>>) target_semaphore(%arg11 : memref<!tpu.dma_semaphore, #tpu.memory_space<semaphore_mem>>)
    %c6_240 = arith.constant 6 : index
    %c7_241 = arith.constant 7 : index
    %186 = memref.load %arg0[%c6_240, %c7_241] : memref<8x8xi32, #tpu.memory_space<smem>>
    %c0_i32_242 = arith.constant 0 : i32
    %187 = tpu.memref_slice %arg1[%186, %c0_i32_242] : memref<128x128xf32, #tpu.memory_space<any>> -> memref<1x128xf32, #tpu.memory_space<any>>
    %c62_i32 = arith.constant 62 : i32
    %c0_i32_243 = arith.constant 0 : i32
    %188 = tpu.memref_slice %arg9[%c62_i32, %c0_i32_243] : memref<64x128xf32, #tpu.memory_space<vmem>> -> memref<1x128xf32, #tpu.memory_space<vmem>>
    tpu.enqueue_dma source(%187 : memref<1x128xf32, #tpu.memory_space<any>>) target(%188 : memref<1x128xf32, #tpu.memory_space<vmem>>) target_semaphore(%arg11 : memref<!tpu.dma_semaphore, #tpu.memory_space<semaphore_mem>>)
    %c7_244 = arith.constant 7 : index
    %c7_245 = arith.constant 7 : index
    %189 = memref.load %arg0[%c7_244, %c7_245] : memref<8x8xi32, #tpu.memory_space<smem>>
    %c0_i32_246 = arith.constant 0 : i32
    %190 = tpu.memref_slice %arg1[%189, %c0_i32_246] : memref<128x128xf32, #tpu.memory_space<any>> -> memref<1x128xf32, #tpu.memory_space<any>>
    %c63_i32 = arith.constant 63 : i32
    %c0_i32_247 = arith.constant 0 : i32
    %191 = tpu.memref_slice %arg9[%c63_i32, %c0_i32_247] : memref<64x128xf32, #tpu.memory_space<vmem>> -> memref<1x128xf32, #tpu.memory_space<vmem>>
    tpu.enqueue_dma source(%190 : memref<1x128xf32, #tpu.memory_space<any>>) target(%191 : memref<1x128xf32, #tpu.memory_space<vmem>>) target_semaphore(%arg11 : memref<!tpu.dma_semaphore, #tpu.memory_space<semaphore_mem>>)
    %c0_i32_248 = arith.constant 0 : i32
    %192 = tpu.memref_slice %arg1[%0, %c0_i32_248] : memref<128x128xf32, #tpu.memory_space<any>> -> memref<1x128xf32, #tpu.memory_space<any>>
    %c0_i32_249 = arith.constant 0 : i32
    %c0_i32_250 = arith.constant 0 : i32
    %193 = tpu.memref_slice %arg9[%c0_i32_249, %c0_i32_250] : memref<64x128xf32, #tpu.memory_space<vmem>> -> memref<1x128xf32, #tpu.memory_space<vmem>>
    tpu.wait_dma2 semaphore(%arg11 : memref<!tpu.dma_semaphore, #tpu.memory_space<semaphore_mem>>) src(%192 : memref<1x128xf32, #tpu.memory_space<any>>) dst(%193 : memref<1x128xf32, #tpu.memory_space<vmem>>)
    %c0_i32_251 = arith.constant 0 : i32
    %194 = tpu.memref_slice %arg1[%3, %c0_i32_251] : memref<128x128xf32, #tpu.memory_space<any>> -> memref<1x128xf32, #tpu.memory_space<any>>
    %c1_i32_252 = arith.constant 1 : i32
    %c0_i32_253 = arith.constant 0 : i32
    %195 = tpu.memref_slice %arg9[%c1_i32_252, %c0_i32_253] : memref<64x128xf32, #tpu.memory_space<vmem>> -> memref<1x128xf32, #tpu.memory_space<vmem>>
    tpu.wait_dma2 semaphore(%arg11 : memref<!tpu.dma_semaphore, #tpu.memory_space<semaphore_mem>>) src(%194 : memref<1x128xf32, #tpu.memory_space<any>>) dst(%195 : memref<1x128xf32, #tpu.memory_space<vmem>>)
    %c0_i32_254 = arith.constant 0 : i32
    %196 = tpu.memref_slice %arg1[%6, %c0_i32_254] : memref<128x128xf32, #tpu.memory_space<any>> -> memref<1x128xf32, #tpu.memory_space<any>>
    %c2_i32_255 = arith.constant 2 : i32
    %c0_i32_256 = arith.constant 0 : i32
    %197 = tpu.memref_slice %arg9[%c2_i32_255, %c0_i32_256] : memref<64x128xf32, #tpu.memory_space<vmem>> -> memref<1x128xf32, #tpu.memory_space<vmem>>
    tpu.wait_dma2 semaphore(%arg11 : memref<!tpu.dma_semaphore, #tpu.memory_space<semaphore_mem>>) src(%196 : memref<1x128xf32, #tpu.memory_space<any>>) dst(%197 : memref<1x128xf32, #tpu.memory_space<vmem>>)
    %c0_i32_257 = arith.constant 0 : i32
    %198 = tpu.memref_slice %arg1[%9, %c0_i32_257] : memref<128x128xf32, #tpu.memory_space<any>> -> memref<1x128xf32, #tpu.memory_space<any>>
    %c3_i32_258 = arith.constant 3 : i32
    %c0_i32_259 = arith.constant 0 : i32
    %199 = tpu.memref_slice %arg9[%c3_i32_258, %c0_i32_259] : memref<64x128xf32, #tpu.memory_space<vmem>> -> memref<1x128xf32, #tpu.memory_space<vmem>>
    tpu.wait_dma2 semaphore(%arg11 : memref<!tpu.dma_semaphore, #tpu.memory_space<semaphore_mem>>) src(%198 : memref<1x128xf32, #tpu.memory_space<any>>) dst(%199 : memref<1x128xf32, #tpu.memory_space<vmem>>)
    %c0_i32_260 = arith.constant 0 : i32
    %200 = tpu.memref_slice %arg1[%12, %c0_i32_260] : memref<128x128xf32, #tpu.memory_space<any>> -> memref<1x128xf32, #tpu.memory_space<any>>
    %c4_i32_261 = arith.constant 4 : i32
    %c0_i32_262 = arith.constant 0 : i32
    %201 = tpu.memref_slice %arg9[%c4_i32_261, %c0_i32_262] : memref<64x128xf32, #tpu.memory_space<vmem>> -> memref<1x128xf32, #tpu.memory_space<vmem>>
    tpu.wait_dma2 semaphore(%arg11 : memref<!tpu.dma_semaphore, #tpu.memory_space<semaphore_mem>>) src(%200 : memref<1x128xf32, #tpu.memory_space<any>>) dst(%201 : memref<1x128xf32, #tpu.memory_space<vmem>>)
    %c0_i32_263 = arith.constant 0 : i32
    %202 = tpu.memref_slice %arg1[%15, %c0_i32_263] : memref<128x128xf32, #tpu.memory_space<any>> -> memref<1x128xf32, #tpu.memory_space<any>>
    %c5_i32_264 = arith.constant 5 : i32
    %c0_i32_265 = arith.constant 0 : i32
    %203 = tpu.memref_slice %arg9[%c5_i32_264, %c0_i32_265] : memref<64x128xf32, #tpu.memory_space<vmem>> -> memref<1x128xf32, #tpu.memory_space<vmem>>
    tpu.wait_dma2 semaphore(%arg11 : memref<!tpu.dma_semaphore, #tpu.memory_space<semaphore_mem>>) src(%202 : memref<1x128xf32, #tpu.memory_space<any>>) dst(%203 : memref<1x128xf32, #tpu.memory_space<vmem>>)
    %c0_i32_266 = arith.constant 0 : i32
    %204 = tpu.memref_slice %arg1[%18, %c0_i32_266] : memref<128x128xf32, #tpu.memory_space<any>> -> memref<1x128xf32, #tpu.memory_space<any>>
    %c6_i32_267 = arith.constant 6 : i32
    %c0_i32_268 = arith.constant 0 : i32
    %205 = tpu.memref_slice %arg9[%c6_i32_267, %c0_i32_268] : memref<64x128xf32, #tpu.memory_space<vmem>> -> memref<1x128xf32, #tpu.memory_space<vmem>>
    tpu.wait_dma2 semaphore(%arg11 : memref<!tpu.dma_semaphore, #tpu.memory_space<semaphore_mem>>) src(%204 : memref<1x128xf32, #tpu.memory_space<any>>) dst(%205 : memref<1x128xf32, #tpu.memory_space<vmem>>)
    %c0_i32_269 = arith.constant 0 : i32
    %206 = tpu.memref_slice %arg1[%21, %c0_i32_269] : memref<128x128xf32, #tpu.memory_space<any>> -> memref<1x128xf32, #tpu.memory_space<any>>
    %c7_i32_270 = arith.constant 7 : i32
    %c0_i32_271 = arith.constant 0 : i32
    %207 = tpu.memref_slice %arg9[%c7_i32_270, %c0_i32_271] : memref<64x128xf32, #tpu.memory_space<vmem>> -> memref<1x128xf32, #tpu.memory_space<vmem>>
    tpu.wait_dma2 semaphore(%arg11 : memref<!tpu.dma_semaphore, #tpu.memory_space<semaphore_mem>>) src(%206 : memref<1x128xf32, #tpu.memory_space<any>>) dst(%207 : memref<1x128xf32, #tpu.memory_space<vmem>>)
    %c0_i32_272 = arith.constant 0 : i32
    %208 = tpu.memref_slice %arg1[%24, %c0_i32_272] : memref<128x128xf32, #tpu.memory_space<any>> -> memref<1x128xf32, #tpu.memory_space<any>>
    %c8_i32_273 = arith.constant 8 : i32
    %c0_i32_274 = arith.constant 0 : i32
    %209 = tpu.memref_slice %arg9[%c8_i32_273, %c0_i32_274] : memref<64x128xf32, #tpu.memory_space<vmem>> -> memref<1x128xf32, #tpu.memory_space<vmem>>
    tpu.wait_dma2 semaphore(%arg11 : memref<!tpu.dma_semaphore, #tpu.memory_space<semaphore_mem>>) src(%208 : memref<1x128xf32, #tpu.memory_space<any>>) dst(%209 : memref<1x128xf32, #tpu.memory_space<vmem>>)
    %c0_i32_275 = arith.constant 0 : i32
    %210 = tpu.memref_slice %arg1[%27, %c0_i32_275] : memref<128x128xf32, #tpu.memory_space<any>> -> memref<1x128xf32, #tpu.memory_space<any>>
    %c9_i32_276 = arith.constant 9 : i32
    %c0_i32_277 = arith.constant 0 : i32
    %211 = tpu.memref_slice %arg9[%c9_i32_276, %c0_i32_277] : memref<64x128xf32, #tpu.memory_space<vmem>> -> memref<1x128xf32, #tpu.memory_space<vmem>>
    tpu.wait_dma2 semaphore(%arg11 : memref<!tpu.dma_semaphore, #tpu.memory_space<semaphore_mem>>) src(%210 : memref<1x128xf32, #tpu.memory_space<any>>) dst(%211 : memref<1x128xf32, #tpu.memory_space<vmem>>)
    %c0_i32_278 = arith.constant 0 : i32
    %212 = tpu.memref_slice %arg1[%30, %c0_i32_278] : memref<128x128xf32, #tpu.memory_space<any>> -> memref<1x128xf32, #tpu.memory_space<any>>
    %c10_i32_279 = arith.constant 10 : i32
    %c0_i32_280 = arith.constant 0 : i32
    %213 = tpu.memref_slice %arg9[%c10_i32_279, %c0_i32_280] : memref<64x128xf32, #tpu.memory_space<vmem>> -> memref<1x128xf32, #tpu.memory_space<vmem>>
    tpu.wait_dma2 semaphore(%arg11 : memref<!tpu.dma_semaphore, #tpu.memory_space<semaphore_mem>>) src(%212 : memref<1x128xf32, #tpu.memory_space<any>>) dst(%213 : memref<1x128xf32, #tpu.memory_space<vmem>>)
    %c0_i32_281 = arith.constant 0 : i32
    %214 = tpu.memref_slice %arg1[%33, %c0_i32_281] : memref<128x128xf32, #tpu.memory_space<any>> -> memref<1x128xf32, #tpu.memory_space<any>>
    %c11_i32_282 = arith.constant 11 : i32
    %c0_i32_283 = arith.constant 0 : i32
    %215 = tpu.memref_slice %arg9[%c11_i32_282, %c0_i32_283] : memref<64x128xf32, #tpu.memory_space<vmem>> -> memref<1x128xf32, #tpu.memory_space<vmem>>
    tpu.wait_dma2 semaphore(%arg11 : memref<!tpu.dma_semaphore, #tpu.memory_space<semaphore_mem>>) src(%214 : memref<1x128xf32, #tpu.memory_space<any>>) dst(%215 : memref<1x128xf32, #tpu.memory_space<vmem>>)
    %c0_i32_284 = arith.constant 0 : i32
    %216 = tpu.memref_slice %arg1[%36, %c0_i32_284] : memref<128x128xf32, #tpu.memory_space<any>> -> memref<1x128xf32, #tpu.memory_space<any>>
    %c12_i32_285 = arith.constant 12 : i32
    %c0_i32_286 = arith.constant 0 : i32
    %217 = tpu.memref_slice %arg9[%c12_i32_285, %c0_i32_286] : memref<64x128xf32, #tpu.memory_space<vmem>> -> memref<1x128xf32, #tpu.memory_space<vmem>>
    tpu.wait_dma2 semaphore(%arg11 : memref<!tpu.dma_semaphore, #tpu.memory_space<semaphore_mem>>) src(%216 : memref<1x128xf32, #tpu.memory_space<any>>) dst(%217 : memref<1x128xf32, #tpu.memory_space<vmem>>)
    %c0_i32_287 = arith.constant 0 : i32
    %218 = tpu.memref_slice %arg1[%39, %c0_i32_287] : memref<128x128xf32, #tpu.memory_space<any>> -> memref<1x128xf32, #tpu.memory_space<any>>
    %c13_i32_288 = arith.constant 13 : i32
    %c0_i32_289 = arith.constant 0 : i32
    %219 = tpu.memref_slice %arg9[%c13_i32_288, %c0_i32_289] : memref<64x128xf32, #tpu.memory_space<vmem>> -> memref<1x128xf32, #tpu.memory_space<vmem>>
    tpu.wait_dma2 semaphore(%arg11 : memref<!tpu.dma_semaphore, #tpu.memory_space<semaphore_mem>>) src(%218 : memref<1x128xf32, #tpu.memory_space<any>>) dst(%219 : memref<1x128xf32, #tpu.memory_space<vmem>>)
    %c0_i32_290 = arith.constant 0 : i32
    %220 = tpu.memref_slice %arg1[%42, %c0_i32_290] : memref<128x128xf32, #tpu.memory_space<any>> -> memref<1x128xf32, #tpu.memory_space<any>>
    %c14_i32_291 = arith.constant 14 : i32
    %c0_i32_292 = arith.constant 0 : i32
    %221 = tpu.memref_slice %arg9[%c14_i32_291, %c0_i32_292] : memref<64x128xf32, #tpu.memory_space<vmem>> -> memref<1x128xf32, #tpu.memory_space<vmem>>
    tpu.wait_dma2 semaphore(%arg11 : memref<!tpu.dma_semaphore, #tpu.memory_space<semaphore_mem>>) src(%220 : memref<1x128xf32, #tpu.memory_space<any>>) dst(%221 : memref<1x128xf32, #tpu.memory_space<vmem>>)
    %c0_i32_293 = arith.constant 0 : i32
    %222 = tpu.memref_slice %arg1[%45, %c0_i32_293] : memref<128x128xf32, #tpu.memory_space<any>> -> memref<1x128xf32, #tpu.memory_space<any>>
    %c15_i32_294 = arith.constant 15 : i32
    %c0_i32_295 = arith.constant 0 : i32
    %223 = tpu.memref_slice %arg9[%c15_i32_294, %c0_i32_295] : memref<64x128xf32, #tpu.memory_space<vmem>> -> memref<1x128xf32, #tpu.memory_space<vmem>>
    tpu.wait_dma2 semaphore(%arg11 : memref<!tpu.dma_semaphore, #tpu.memory_space<semaphore_mem>>) src(%222 : memref<1x128xf32, #tpu.memory_space<any>>) dst(%223 : memref<1x128xf32, #tpu.memory_space<vmem>>)
    %c0_i32_296 = arith.constant 0 : i32
    %224 = tpu.memref_slice %arg1[%48, %c0_i32_296] : memref<128x128xf32, #tpu.memory_space<any>> -> memref<1x128xf32, #tpu.memory_space<any>>
    %c16_i32_297 = arith.constant 16 : i32
    %c0_i32_298 = arith.constant 0 : i32
    %225 = tpu.memref_slice %arg9[%c16_i32_297, %c0_i32_298] : memref<64x128xf32, #tpu.memory_space<vmem>> -> memref<1x128xf32, #tpu.memory_space<vmem>>
    tpu.wait_dma2 semaphore(%arg11 : memref<!tpu.dma_semaphore, #tpu.memory_space<semaphore_mem>>) src(%224 : memref<1x128xf32, #tpu.memory_space<any>>) dst(%225 : memref<1x128xf32, #tpu.memory_space<vmem>>)
    %c0_i32_299 = arith.constant 0 : i32
    %226 = tpu.memref_slice %arg1[%51, %c0_i32_299] : memref<128x128xf32, #tpu.memory_space<any>> -> memref<1x128xf32, #tpu.memory_space<any>>
    %c17_i32_300 = arith.constant 17 : i32
    %c0_i32_301 = arith.constant 0 : i32
    %227 = tpu.memref_slice %arg9[%c17_i32_300, %c0_i32_301] : memref<64x128xf32, #tpu.memory_space<vmem>> -> memref<1x128xf32, #tpu.memory_space<vmem>>
    tpu.wait_dma2 semaphore(%arg11 : memref<!tpu.dma_semaphore, #tpu.memory_space<semaphore_mem>>) src(%226 : memref<1x128xf32, #tpu.memory_space<any>>) dst(%227 : memref<1x128xf32, #tpu.memory_space<vmem>>)
    %c0_i32_302 = arith.constant 0 : i32
    %228 = tpu.memref_slice %arg1[%54, %c0_i32_302] : memref<128x128xf32, #tpu.memory_space<any>> -> memref<1x128xf32, #tpu.memory_space<any>>
    %c18_i32_303 = arith.constant 18 : i32
    %c0_i32_304 = arith.constant 0 : i32
    %229 = tpu.memref_slice %arg9[%c18_i32_303, %c0_i32_304] : memref<64x128xf32, #tpu.memory_space<vmem>> -> memref<1x128xf32, #tpu.memory_space<vmem>>
    tpu.wait_dma2 semaphore(%arg11 : memref<!tpu.dma_semaphore, #tpu.memory_space<semaphore_mem>>) src(%228 : memref<1x128xf32, #tpu.memory_space<any>>) dst(%229 : memref<1x128xf32, #tpu.memory_space<vmem>>)
    %c0_i32_305 = arith.constant 0 : i32
    %230 = tpu.memref_slice %arg1[%57, %c0_i32_305] : memref<128x128xf32, #tpu.memory_space<any>> -> memref<1x128xf32, #tpu.memory_space<any>>
    %c19_i32_306 = arith.constant 19 : i32
    %c0_i32_307 = arith.constant 0 : i32
    %231 = tpu.memref_slice %arg9[%c19_i32_306, %c0_i32_307] : memref<64x128xf32, #tpu.memory_space<vmem>> -> memref<1x128xf32, #tpu.memory_space<vmem>>
    tpu.wait_dma2 semaphore(%arg11 : memref<!tpu.dma_semaphore, #tpu.memory_space<semaphore_mem>>) src(%230 : memref<1x128xf32, #tpu.memory_space<any>>) dst(%231 : memref<1x128xf32, #tpu.memory_space<vmem>>)
    %c0_i32_308 = arith.constant 0 : i32
    %232 = tpu.memref_slice %arg1[%60, %c0_i32_308] : memref<128x128xf32, #tpu.memory_space<any>> -> memref<1x128xf32, #tpu.memory_space<any>>
    %c20_i32_309 = arith.constant 20 : i32
    %c0_i32_310 = arith.constant 0 : i32
    %233 = tpu.memref_slice %arg9[%c20_i32_309, %c0_i32_310] : memref<64x128xf32, #tpu.memory_space<vmem>> -> memref<1x128xf32, #tpu.memory_space<vmem>>
    tpu.wait_dma2 semaphore(%arg11 : memref<!tpu.dma_semaphore, #tpu.memory_space<semaphore_mem>>) src(%232 : memref<1x128xf32, #tpu.memory_space<any>>) dst(%233 : memref<1x128xf32, #tpu.memory_space<vmem>>)
    %c0_i32_311 = arith.constant 0 : i32
    %234 = tpu.memref_slice %arg1[%63, %c0_i32_311] : memref<128x128xf32, #tpu.memory_space<any>> -> memref<1x128xf32, #tpu.memory_space<any>>
    %c21_i32_312 = arith.constant 21 : i32
    %c0_i32_313 = arith.constant 0 : i32
    %235 = tpu.memref_slice %arg9[%c21_i32_312, %c0_i32_313] : memref<64x128xf32, #tpu.memory_space<vmem>> -> memref<1x128xf32, #tpu.memory_space<vmem>>
    tpu.wait_dma2 semaphore(%arg11 : memref<!tpu.dma_semaphore, #tpu.memory_space<semaphore_mem>>) src(%234 : memref<1x128xf32, #tpu.memory_space<any>>) dst(%235 : memref<1x128xf32, #tpu.memory_space<vmem>>)
    %c0_i32_314 = arith.constant 0 : i32
    %236 = tpu.memref_slice %arg1[%66, %c0_i32_314] : memref<128x128xf32, #tpu.memory_space<any>> -> memref<1x128xf32, #tpu.memory_space<any>>
    %c22_i32_315 = arith.constant 22 : i32
    %c0_i32_316 = arith.constant 0 : i32
    %237 = tpu.memref_slice %arg9[%c22_i32_315, %c0_i32_316] : memref<64x128xf32, #tpu.memory_space<vmem>> -> memref<1x128xf32, #tpu.memory_space<vmem>>
    tpu.wait_dma2 semaphore(%arg11 : memref<!tpu.dma_semaphore, #tpu.memory_space<semaphore_mem>>) src(%236 : memref<1x128xf32, #tpu.memory_space<any>>) dst(%237 : memref<1x128xf32, #tpu.memory_space<vmem>>)
    %c0_i32_317 = arith.constant 0 : i32
    %238 = tpu.memref_slice %arg1[%69, %c0_i32_317] : memref<128x128xf32, #tpu.memory_space<any>> -> memref<1x128xf32, #tpu.memory_space<any>>
    %c23_i32_318 = arith.constant 23 : i32
    %c0_i32_319 = arith.constant 0 : i32
    %239 = tpu.memref_slice %arg9[%c23_i32_318, %c0_i32_319] : memref<64x128xf32, #tpu.memory_space<vmem>> -> memref<1x128xf32, #tpu.memory_space<vmem>>
    tpu.wait_dma2 semaphore(%arg11 : memref<!tpu.dma_semaphore, #tpu.memory_space<semaphore_mem>>) src(%238 : memref<1x128xf32, #tpu.memory_space<any>>) dst(%239 : memref<1x128xf32, #tpu.memory_space<vmem>>)
    %c0_i32_320 = arith.constant 0 : i32
    %240 = tpu.memref_slice %arg1[%72, %c0_i32_320] : memref<128x128xf32, #tpu.memory_space<any>> -> memref<1x128xf32, #tpu.memory_space<any>>
    %c24_i32_321 = arith.constant 24 : i32
    %c0_i32_322 = arith.constant 0 : i32
    %241 = tpu.memref_slice %arg9[%c24_i32_321, %c0_i32_322] : memref<64x128xf32, #tpu.memory_space<vmem>> -> memref<1x128xf32, #tpu.memory_space<vmem>>
    tpu.wait_dma2 semaphore(%arg11 : memref<!tpu.dma_semaphore, #tpu.memory_space<semaphore_mem>>) src(%240 : memref<1x128xf32, #tpu.memory_space<any>>) dst(%241 : memref<1x128xf32, #tpu.memory_space<vmem>>)
    %c0_i32_323 = arith.constant 0 : i32
    %242 = tpu.memref_slice %arg1[%75, %c0_i32_323] : memref<128x128xf32, #tpu.memory_space<any>> -> memref<1x128xf32, #tpu.memory_space<any>>
    %c25_i32_324 = arith.constant 25 : i32
    %c0_i32_325 = arith.constant 0 : i32
    %243 = tpu.memref_slice %arg9[%c25_i32_324, %c0_i32_325] : memref<64x128xf32, #tpu.memory_space<vmem>> -> memref<1x128xf32, #tpu.memory_space<vmem>>
    tpu.wait_dma2 semaphore(%arg11 : memref<!tpu.dma_semaphore, #tpu.memory_space<semaphore_mem>>) src(%242 : memref<1x128xf32, #tpu.memory_space<any>>) dst(%243 : memref<1x128xf32, #tpu.memory_space<vmem>>)
    %c0_i32_326 = arith.constant 0 : i32
    %244 = tpu.memref_slice %arg1[%78, %c0_i32_326] : memref<128x128xf32, #tpu.memory_space<any>> -> memref<1x128xf32, #tpu.memory_space<any>>
    %c26_i32_327 = arith.constant 26 : i32
    %c0_i32_328 = arith.constant 0 : i32
    %245 = tpu.memref_slice %arg9[%c26_i32_327, %c0_i32_328] : memref<64x128xf32, #tpu.memory_space<vmem>> -> memref<1x128xf32, #tpu.memory_space<vmem>>
    tpu.wait_dma2 semaphore(%arg11 : memref<!tpu.dma_semaphore, #tpu.memory_space<semaphore_mem>>) src(%244 : memref<1x128xf32, #tpu.memory_space<any>>) dst(%245 : memref<1x128xf32, #tpu.memory_space<vmem>>)
    %c0_i32_329 = arith.constant 0 : i32
    %246 = tpu.memref_slice %arg1[%81, %c0_i32_329] : memref<128x128xf32, #tpu.memory_space<any>> -> memref<1x128xf32, #tpu.memory_space<any>>
    %c27_i32_330 = arith.constant 27 : i32
    %c0_i32_331 = arith.constant 0 : i32
    %247 = tpu.memref_slice %arg9[%c27_i32_330, %c0_i32_331] : memref<64x128xf32, #tpu.memory_space<vmem>> -> memref<1x128xf32, #tpu.memory_space<vmem>>
    tpu.wait_dma2 semaphore(%arg11 : memref<!tpu.dma_semaphore, #tpu.memory_space<semaphore_mem>>) src(%246 : memref<1x128xf32, #tpu.memory_space<any>>) dst(%247 : memref<1x128xf32, #tpu.memory_space<vmem>>)
    %c0_i32_332 = arith.constant 0 : i32
    %248 = tpu.memref_slice %arg1[%84, %c0_i32_332] : memref<128x128xf32, #tpu.memory_space<any>> -> memref<1x128xf32, #tpu.memory_space<any>>
    %c28_i32_333 = arith.constant 28 : i32
    %c0_i32_334 = arith.constant 0 : i32
    %249 = tpu.memref_slice %arg9[%c28_i32_333, %c0_i32_334] : memref<64x128xf32, #tpu.memory_space<vmem>> -> memref<1x128xf32, #tpu.memory_space<vmem>>
    tpu.wait_dma2 semaphore(%arg11 : memref<!tpu.dma_semaphore, #tpu.memory_space<semaphore_mem>>) src(%248 : memref<1x128xf32, #tpu.memory_space<any>>) dst(%249 : memref<1x128xf32, #tpu.memory_space<vmem>>)
    %c0_i32_335 = arith.constant 0 : i32
    %250 = tpu.memref_slice %arg1[%87, %c0_i32_335] : memref<128x128xf32, #tpu.memory_space<any>> -> memref<1x128xf32, #tpu.memory_space<any>>
    %c29_i32_336 = arith.constant 29 : i32
    %c0_i32_337 = arith.constant 0 : i32
    %251 = tpu.memref_slice %arg9[%c29_i32_336, %c0_i32_337] : memref<64x128xf32, #tpu.memory_space<vmem>> -> memref<1x128xf32, #tpu.memory_space<vmem>>
    tpu.wait_dma2 semaphore(%arg11 : memref<!tpu.dma_semaphore, #tpu.memory_space<semaphore_mem>>) src(%250 : memref<1x128xf32, #tpu.memory_space<any>>) dst(%251 : memref<1x128xf32, #tpu.memory_space<vmem>>)
    %c0_i32_338 = arith.constant 0 : i32
    %252 = tpu.memref_slice %arg1[%90, %c0_i32_338] : memref<128x128xf32, #tpu.memory_space<any>> -> memref<1x128xf32, #tpu.memory_space<any>>
    %c30_i32_339 = arith.constant 30 : i32
    %c0_i32_340 = arith.constant 0 : i32
    %253 = tpu.memref_slice %arg9[%c30_i32_339, %c0_i32_340] : memref<64x128xf32, #tpu.memory_space<vmem>> -> memref<1x128xf32, #tpu.memory_space<vmem>>
    tpu.wait_dma2 semaphore(%arg11 : memref<!tpu.dma_semaphore, #tpu.memory_space<semaphore_mem>>) src(%252 : memref<1x128xf32, #tpu.memory_space<any>>) dst(%253 : memref<1x128xf32, #tpu.memory_space<vmem>>)
    %c0_i32_341 = arith.constant 0 : i32
    %254 = tpu.memref_slice %arg1[%93, %c0_i32_341] : memref<128x128xf32, #tpu.memory_space<any>> -> memref<1x128xf32, #tpu.memory_space<any>>
    %c31_i32_342 = arith.constant 31 : i32
    %c0_i32_343 = arith.constant 0 : i32
    %255 = tpu.memref_slice %arg9[%c31_i32_342, %c0_i32_343] : memref<64x128xf32, #tpu.memory_space<vmem>> -> memref<1x128xf32, #tpu.memory_space<vmem>>
    tpu.wait_dma2 semaphore(%arg11 : memref<!tpu.dma_semaphore, #tpu.memory_space<semaphore_mem>>) src(%254 : memref<1x128xf32, #tpu.memory_space<any>>) dst(%255 : memref<1x128xf32, #tpu.memory_space<vmem>>)
    %c0_i32_344 = arith.constant 0 : i32
    %256 = tpu.memref_slice %arg1[%96, %c0_i32_344] : memref<128x128xf32, #tpu.memory_space<any>> -> memref<1x128xf32, #tpu.memory_space<any>>
    %c32_i32_345 = arith.constant 32 : i32
    %c0_i32_346 = arith.constant 0 : i32
    %257 = tpu.memref_slice %arg9[%c32_i32_345, %c0_i32_346] : memref<64x128xf32, #tpu.memory_space<vmem>> -> memref<1x128xf32, #tpu.memory_space<vmem>>
    tpu.wait_dma2 semaphore(%arg11 : memref<!tpu.dma_semaphore, #tpu.memory_space<semaphore_mem>>) src(%256 : memref<1x128xf32, #tpu.memory_space<any>>) dst(%257 : memref<1x128xf32, #tpu.memory_space<vmem>>)
    %c0_i32_347 = arith.constant 0 : i32
    %258 = tpu.memref_slice %arg1[%99, %c0_i32_347] : memref<128x128xf32, #tpu.memory_space<any>> -> memref<1x128xf32, #tpu.memory_space<any>>
    %c33_i32_348 = arith.constant 33 : i32
    %c0_i32_349 = arith.constant 0 : i32
    %259 = tpu.memref_slice %arg9[%c33_i32_348, %c0_i32_349] : memref<64x128xf32, #tpu.memory_space<vmem>> -> memref<1x128xf32, #tpu.memory_space<vmem>>
    tpu.wait_dma2 semaphore(%arg11 : memref<!tpu.dma_semaphore, #tpu.memory_space<semaphore_mem>>) src(%258 : memref<1x128xf32, #tpu.memory_space<any>>) dst(%259 : memref<1x128xf32, #tpu.memory_space<vmem>>)
    %c0_i32_350 = arith.constant 0 : i32
    %260 = tpu.memref_slice %arg1[%102, %c0_i32_350] : memref<128x128xf32, #tpu.memory_space<any>> -> memref<1x128xf32, #tpu.memory_space<any>>
    %c34_i32_351 = arith.constant 34 : i32
    %c0_i32_352 = arith.constant 0 : i32
    %261 = tpu.memref_slice %arg9[%c34_i32_351, %c0_i32_352] : memref<64x128xf32, #tpu.memory_space<vmem>> -> memref<1x128xf32, #tpu.memory_space<vmem>>
    tpu.wait_dma2 semaphore(%arg11 : memref<!tpu.dma_semaphore, #tpu.memory_space<semaphore_mem>>) src(%260 : memref<1x128xf32, #tpu.memory_space<any>>) dst(%261 : memref<1x128xf32, #tpu.memory_space<vmem>>)
    %c0_i32_353 = arith.constant 0 : i32
    %262 = tpu.memref_slice %arg1[%105, %c0_i32_353] : memref<128x128xf32, #tpu.memory_space<any>> -> memref<1x128xf32, #tpu.memory_space<any>>
    %c35_i32_354 = arith.constant 35 : i32
    %c0_i32_355 = arith.constant 0 : i32
    %263 = tpu.memref_slice %arg9[%c35_i32_354, %c0_i32_355] : memref<64x128xf32, #tpu.memory_space<vmem>> -> memref<1x128xf32, #tpu.memory_space<vmem>>
    tpu.wait_dma2 semaphore(%arg11 : memref<!tpu.dma_semaphore, #tpu.memory_space<semaphore_mem>>) src(%262 : memref<1x128xf32, #tpu.memory_space<any>>) dst(%263 : memref<1x128xf32, #tpu.memory_space<vmem>>)
    %c0_i32_356 = arith.constant 0 : i32
    %264 = tpu.memref_slice %arg1[%108, %c0_i32_356] : memref<128x128xf32, #tpu.memory_space<any>> -> memref<1x128xf32, #tpu.memory_space<any>>
    %c36_i32_357 = arith.constant 36 : i32
    %c0_i32_358 = arith.constant 0 : i32
    %265 = tpu.memref_slice %arg9[%c36_i32_357, %c0_i32_358] : memref<64x128xf32, #tpu.memory_space<vmem>> -> memref<1x128xf32, #tpu.memory_space<vmem>>
    tpu.wait_dma2 semaphore(%arg11 : memref<!tpu.dma_semaphore, #tpu.memory_space<semaphore_mem>>) src(%264 : memref<1x128xf32, #tpu.memory_space<any>>) dst(%265 : memref<1x128xf32, #tpu.memory_space<vmem>>)
    %c0_i32_359 = arith.constant 0 : i32
    %266 = tpu.memref_slice %arg1[%111, %c0_i32_359] : memref<128x128xf32, #tpu.memory_space<any>> -> memref<1x128xf32, #tpu.memory_space<any>>
    %c37_i32_360 = arith.constant 37 : i32
    %c0_i32_361 = arith.constant 0 : i32
    %267 = tpu.memref_slice %arg9[%c37_i32_360, %c0_i32_361] : memref<64x128xf32, #tpu.memory_space<vmem>> -> memref<1x128xf32, #tpu.memory_space<vmem>>
    tpu.wait_dma2 semaphore(%arg11 : memref<!tpu.dma_semaphore, #tpu.memory_space<semaphore_mem>>) src(%266 : memref<1x128xf32, #tpu.memory_space<any>>) dst(%267 : memref<1x128xf32, #tpu.memory_space<vmem>>)
    %c0_i32_362 = arith.constant 0 : i32
    %268 = tpu.memref_slice %arg1[%114, %c0_i32_362] : memref<128x128xf32, #tpu.memory_space<any>> -> memref<1x128xf32, #tpu.memory_space<any>>
    %c38_i32_363 = arith.constant 38 : i32
    %c0_i32_364 = arith.constant 0 : i32
    %269 = tpu.memref_slice %arg9[%c38_i32_363, %c0_i32_364] : memref<64x128xf32, #tpu.memory_space<vmem>> -> memref<1x128xf32, #tpu.memory_space<vmem>>
    tpu.wait_dma2 semaphore(%arg11 : memref<!tpu.dma_semaphore, #tpu.memory_space<semaphore_mem>>) src(%268 : memref<1x128xf32, #tpu.memory_space<any>>) dst(%269 : memref<1x128xf32, #tpu.memory_space<vmem>>)
    %c0_i32_365 = arith.constant 0 : i32
    %270 = tpu.memref_slice %arg1[%117, %c0_i32_365] : memref<128x128xf32, #tpu.memory_space<any>> -> memref<1x128xf32, #tpu.memory_space<any>>
    %c39_i32_366 = arith.constant 39 : i32
    %c0_i32_367 = arith.constant 0 : i32
    %271 = tpu.memref_slice %arg9[%c39_i32_366, %c0_i32_367] : memref<64x128xf32, #tpu.memory_space<vmem>> -> memref<1x128xf32, #tpu.memory_space<vmem>>
    tpu.wait_dma2 semaphore(%arg11 : memref<!tpu.dma_semaphore, #tpu.memory_space<semaphore_mem>>) src(%270 : memref<1x128xf32, #tpu.memory_space<any>>) dst(%271 : memref<1x128xf32, #tpu.memory_space<vmem>>)
    %c0_i32_368 = arith.constant 0 : i32
    %272 = tpu.memref_slice %arg1[%120, %c0_i32_368] : memref<128x128xf32, #tpu.memory_space<any>> -> memref<1x128xf32, #tpu.memory_space<any>>
    %c40_i32_369 = arith.constant 40 : i32
    %c0_i32_370 = arith.constant 0 : i32
    %273 = tpu.memref_slice %arg9[%c40_i32_369, %c0_i32_370] : memref<64x128xf32, #tpu.memory_space<vmem>> -> memref<1x128xf32, #tpu.memory_space<vmem>>
    tpu.wait_dma2 semaphore(%arg11 : memref<!tpu.dma_semaphore, #tpu.memory_space<semaphore_mem>>) src(%272 : memref<1x128xf32, #tpu.memory_space<any>>) dst(%273 : memref<1x128xf32, #tpu.memory_space<vmem>>)
    %c0_i32_371 = arith.constant 0 : i32
    %274 = tpu.memref_slice %arg1[%123, %c0_i32_371] : memref<128x128xf32, #tpu.memory_space<any>> -> memref<1x128xf32, #tpu.memory_space<any>>
    %c41_i32_372 = arith.constant 41 : i32
    %c0_i32_373 = arith.constant 0 : i32
    %275 = tpu.memref_slice %arg9[%c41_i32_372, %c0_i32_373] : memref<64x128xf32, #tpu.memory_space<vmem>> -> memref<1x128xf32, #tpu.memory_space<vmem>>
    tpu.wait_dma2 semaphore(%arg11 : memref<!tpu.dma_semaphore, #tpu.memory_space<semaphore_mem>>) src(%274 : memref<1x128xf32, #tpu.memory_space<any>>) dst(%275 : memref<1x128xf32, #tpu.memory_space<vmem>>)
    %c0_i32_374 = arith.constant 0 : i32
    %276 = tpu.memref_slice %arg1[%126, %c0_i32_374] : memref<128x128xf32, #tpu.memory_space<any>> -> memref<1x128xf32, #tpu.memory_space<any>>
    %c42_i32_375 = arith.constant 42 : i32
    %c0_i32_376 = arith.constant 0 : i32
    %277 = tpu.memref_slice %arg9[%c42_i32_375, %c0_i32_376] : memref<64x128xf32, #tpu.memory_space<vmem>> -> memref<1x128xf32, #tpu.memory_space<vmem>>
    tpu.wait_dma2 semaphore(%arg11 : memref<!tpu.dma_semaphore, #tpu.memory_space<semaphore_mem>>) src(%276 : memref<1x128xf32, #tpu.memory_space<any>>) dst(%277 : memref<1x128xf32, #tpu.memory_space<vmem>>)
    %c0_i32_377 = arith.constant 0 : i32
    %278 = tpu.memref_slice %arg1[%129, %c0_i32_377] : memref<128x128xf32, #tpu.memory_space<any>> -> memref<1x128xf32, #tpu.memory_space<any>>
    %c43_i32_378 = arith.constant 43 : i32
    %c0_i32_379 = arith.constant 0 : i32
    %279 = tpu.memref_slice %arg9[%c43_i32_378, %c0_i32_379] : memref<64x128xf32, #tpu.memory_space<vmem>> -> memref<1x128xf32, #tpu.memory_space<vmem>>
    tpu.wait_dma2 semaphore(%arg11 : memref<!tpu.dma_semaphore, #tpu.memory_space<semaphore_mem>>) src(%278 : memref<1x128xf32, #tpu.memory_space<any>>) dst(%279 : memref<1x128xf32, #tpu.memory_space<vmem>>)
    %c0_i32_380 = arith.constant 0 : i32
    %280 = tpu.memref_slice %arg1[%132, %c0_i32_380] : memref<128x128xf32, #tpu.memory_space<any>> -> memref<1x128xf32, #tpu.memory_space<any>>
    %c44_i32_381 = arith.constant 44 : i32
    %c0_i32_382 = arith.constant 0 : i32
    %281 = tpu.memref_slice %arg9[%c44_i32_381, %c0_i32_382] : memref<64x128xf32, #tpu.memory_space<vmem>> -> memref<1x128xf32, #tpu.memory_space<vmem>>
    tpu.wait_dma2 semaphore(%arg11 : memref<!tpu.dma_semaphore, #tpu.memory_space<semaphore_mem>>) src(%280 : memref<1x128xf32, #tpu.memory_space<any>>) dst(%281 : memref<1x128xf32, #tpu.memory_space<vmem>>)
    %c0_i32_383 = arith.constant 0 : i32
    %282 = tpu.memref_slice %arg1[%135, %c0_i32_383] : memref<128x128xf32, #tpu.memory_space<any>> -> memref<1x128xf32, #tpu.memory_space<any>>
    %c45_i32_384 = arith.constant 45 : i32
    %c0_i32_385 = arith.constant 0 : i32
    %283 = tpu.memref_slice %arg9[%c45_i32_384, %c0_i32_385] : memref<64x128xf32, #tpu.memory_space<vmem>> -> memref<1x128xf32, #tpu.memory_space<vmem>>
    tpu.wait_dma2 semaphore(%arg11 : memref<!tpu.dma_semaphore, #tpu.memory_space<semaphore_mem>>) src(%282 : memref<1x128xf32, #tpu.memory_space<any>>) dst(%283 : memref<1x128xf32, #tpu.memory_space<vmem>>)
    %c0_i32_386 = arith.constant 0 : i32
    %284 = tpu.memref_slice %arg1[%138, %c0_i32_386] : memref<128x128xf32, #tpu.memory_space<any>> -> memref<1x128xf32, #tpu.memory_space<any>>
    %c46_i32_387 = arith.constant 46 : i32
    %c0_i32_388 = arith.constant 0 : i32
    %285 = tpu.memref_slice %arg9[%c46_i32_387, %c0_i32_388] : memref<64x128xf32, #tpu.memory_space<vmem>> -> memref<1x128xf32, #tpu.memory_space<vmem>>
    tpu.wait_dma2 semaphore(%arg11 : memref<!tpu.dma_semaphore, #tpu.memory_space<semaphore_mem>>) src(%284 : memref<1x128xf32, #tpu.memory_space<any>>) dst(%285 : memref<1x128xf32, #tpu.memory_space<vmem>>)
    %c0_i32_389 = arith.constant 0 : i32
    %286 = tpu.memref_slice %arg1[%141, %c0_i32_389] : memref<128x128xf32, #tpu.memory_space<any>> -> memref<1x128xf32, #tpu.memory_space<any>>
    %c47_i32_390 = arith.constant 47 : i32
    %c0_i32_391 = arith.constant 0 : i32
    %287 = tpu.memref_slice %arg9[%c47_i32_390, %c0_i32_391] : memref<64x128xf32, #tpu.memory_space<vmem>> -> memref<1x128xf32, #tpu.memory_space<vmem>>
    tpu.wait_dma2 semaphore(%arg11 : memref<!tpu.dma_semaphore, #tpu.memory_space<semaphore_mem>>) src(%286 : memref<1x128xf32, #tpu.memory_space<any>>) dst(%287 : memref<1x128xf32, #tpu.memory_space<vmem>>)
    %c0_i32_392 = arith.constant 0 : i32
    %288 = tpu.memref_slice %arg1[%144, %c0_i32_392] : memref<128x128xf32, #tpu.memory_space<any>> -> memref<1x128xf32, #tpu.memory_space<any>>
    %c48_i32_393 = arith.constant 48 : i32
    %c0_i32_394 = arith.constant 0 : i32
    %289 = tpu.memref_slice %arg9[%c48_i32_393, %c0_i32_394] : memref<64x128xf32, #tpu.memory_space<vmem>> -> memref<1x128xf32, #tpu.memory_space<vmem>>
    tpu.wait_dma2 semaphore(%arg11 : memref<!tpu.dma_semaphore, #tpu.memory_space<semaphore_mem>>) src(%288 : memref<1x128xf32, #tpu.memory_space<any>>) dst(%289 : memref<1x128xf32, #tpu.memory_space<vmem>>)
    %c0_i32_395 = arith.constant 0 : i32
    %290 = tpu.memref_slice %arg1[%147, %c0_i32_395] : memref<128x128xf32, #tpu.memory_space<any>> -> memref<1x128xf32, #tpu.memory_space<any>>
    %c49_i32_396 = arith.constant 49 : i32
    %c0_i32_397 = arith.constant 0 : i32
    %291 = tpu.memref_slice %arg9[%c49_i32_396, %c0_i32_397] : memref<64x128xf32, #tpu.memory_space<vmem>> -> memref<1x128xf32, #tpu.memory_space<vmem>>
    tpu.wait_dma2 semaphore(%arg11 : memref<!tpu.dma_semaphore, #tpu.memory_space<semaphore_mem>>) src(%290 : memref<1x128xf32, #tpu.memory_space<any>>) dst(%291 : memref<1x128xf32, #tpu.memory_space<vmem>>)
    %c0_i32_398 = arith.constant 0 : i32
    %292 = tpu.memref_slice %arg1[%150, %c0_i32_398] : memref<128x128xf32, #tpu.memory_space<any>> -> memref<1x128xf32, #tpu.memory_space<any>>
    %c50_i32_399 = arith.constant 50 : i32
    %c0_i32_400 = arith.constant 0 : i32
    %293 = tpu.memref_slice %arg9[%c50_i32_399, %c0_i32_400] : memref<64x128xf32, #tpu.memory_space<vmem>> -> memref<1x128xf32, #tpu.memory_space<vmem>>
    tpu.wait_dma2 semaphore(%arg11 : memref<!tpu.dma_semaphore, #tpu.memory_space<semaphore_mem>>) src(%292 : memref<1x128xf32, #tpu.memory_space<any>>) dst(%293 : memref<1x128xf32, #tpu.memory_space<vmem>>)
    %c0_i32_401 = arith.constant 0 : i32
    %294 = tpu.memref_slice %arg1[%153, %c0_i32_401] : memref<128x128xf32, #tpu.memory_space<any>> -> memref<1x128xf32, #tpu.memory_space<any>>
    %c51_i32_402 = arith.constant 51 : i32
    %c0_i32_403 = arith.constant 0 : i32
    %295 = tpu.memref_slice %arg9[%c51_i32_402, %c0_i32_403] : memref<64x128xf32, #tpu.memory_space<vmem>> -> memref<1x128xf32, #tpu.memory_space<vmem>>
    tpu.wait_dma2 semaphore(%arg11 : memref<!tpu.dma_semaphore, #tpu.memory_space<semaphore_mem>>) src(%294 : memref<1x128xf32, #tpu.memory_space<any>>) dst(%295 : memref<1x128xf32, #tpu.memory_space<vmem>>)
    %c0_i32_404 = arith.constant 0 : i32
    %296 = tpu.memref_slice %arg1[%156, %c0_i32_404] : memref<128x128xf32, #tpu.memory_space<any>> -> memref<1x128xf32, #tpu.memory_space<any>>
    %c52_i32_405 = arith.constant 52 : i32
    %c0_i32_406 = arith.constant 0 : i32
    %297 = tpu.memref_slice %arg9[%c52_i32_405, %c0_i32_406] : memref<64x128xf32, #tpu.memory_space<vmem>> -> memref<1x128xf32, #tpu.memory_space<vmem>>
    tpu.wait_dma2 semaphore(%arg11 : memref<!tpu.dma_semaphore, #tpu.memory_space<semaphore_mem>>) src(%296 : memref<1x128xf32, #tpu.memory_space<any>>) dst(%297 : memref<1x128xf32, #tpu.memory_space<vmem>>)
    %c0_i32_407 = arith.constant 0 : i32
    %298 = tpu.memref_slice %arg1[%159, %c0_i32_407] : memref<128x128xf32, #tpu.memory_space<any>> -> memref<1x128xf32, #tpu.memory_space<any>>
    %c53_i32_408 = arith.constant 53 : i32
    %c0_i32_409 = arith.constant 0 : i32
    %299 = tpu.memref_slice %arg9[%c53_i32_408, %c0_i32_409] : memref<64x128xf32, #tpu.memory_space<vmem>> -> memref<1x128xf32, #tpu.memory_space<vmem>>
    tpu.wait_dma2 semaphore(%arg11 : memref<!tpu.dma_semaphore, #tpu.memory_space<semaphore_mem>>) src(%298 : memref<1x128xf32, #tpu.memory_space<any>>) dst(%299 : memref<1x128xf32, #tpu.memory_space<vmem>>)
    %c0_i32_410 = arith.constant 0 : i32
    %300 = tpu.memref_slice %arg1[%162, %c0_i32_410] : memref<128x128xf32, #tpu.memory_space<any>> -> memref<1x128xf32, #tpu.memory_space<any>>
    %c54_i32_411 = arith.constant 54 : i32
    %c0_i32_412 = arith.constant 0 : i32
    %301 = tpu.memref_slice %arg9[%c54_i32_411, %c0_i32_412] : memref<64x128xf32, #tpu.memory_space<vmem>> -> memref<1x128xf32, #tpu.memory_space<vmem>>
    tpu.wait_dma2 semaphore(%arg11 : memref<!tpu.dma_semaphore, #tpu.memory_space<semaphore_mem>>) src(%300 : memref<1x128xf32, #tpu.memory_space<any>>) dst(%301 : memref<1x128xf32, #tpu.memory_space<vmem>>)
    %c0_i32_413 = arith.constant 0 : i32
    %302 = tpu.memref_slice %arg1[%165, %c0_i32_413] : memref<128x128xf32, #tpu.memory_space<any>> -> memref<1x128xf32, #tpu.memory_space<any>>
    %c55_i32_414 = arith.constant 55 : i32
    %c0_i32_415 = arith.constant 0 : i32
    %303 = tpu.memref_slice %arg9[%c55_i32_414, %c0_i32_415] : memref<64x128xf32, #tpu.memory_space<vmem>> -> memref<1x128xf32, #tpu.memory_space<vmem>>
    tpu.wait_dma2 semaphore(%arg11 : memref<!tpu.dma_semaphore, #tpu.memory_space<semaphore_mem>>) src(%302 : memref<1x128xf32, #tpu.memory_space<any>>) dst(%303 : memref<1x128xf32, #tpu.memory_space<vmem>>)
    %c0_i32_416 = arith.constant 0 : i32
    %304 = tpu.memref_slice %arg1[%168, %c0_i32_416] : memref<128x128xf32, #tpu.memory_space<any>> -> memref<1x128xf32, #tpu.memory_space<any>>
    %c56_i32_417 = arith.constant 56 : i32
    %c0_i32_418 = arith.constant 0 : i32
    %305 = tpu.memref_slice %arg9[%c56_i32_417, %c0_i32_418] : memref<64x128xf32, #tpu.memory_space<vmem>> -> memref<1x128xf32, #tpu.memory_space<vmem>>
    tpu.wait_dma2 semaphore(%arg11 : memref<!tpu.dma_semaphore, #tpu.memory_space<semaphore_mem>>) src(%304 : memref<1x128xf32, #tpu.memory_space<any>>) dst(%305 : memref<1x128xf32, #tpu.memory_space<vmem>>)
    %c0_i32_419 = arith.constant 0 : i32
    %306 = tpu.memref_slice %arg1[%171, %c0_i32_419] : memref<128x128xf32, #tpu.memory_space<any>> -> memref<1x128xf32, #tpu.memory_space<any>>
    %c57_i32_420 = arith.constant 57 : i32
    %c0_i32_421 = arith.constant 0 : i32
    %307 = tpu.memref_slice %arg9[%c57_i32_420, %c0_i32_421] : memref<64x128xf32, #tpu.memory_space<vmem>> -> memref<1x128xf32, #tpu.memory_space<vmem>>
    tpu.wait_dma2 semaphore(%arg11 : memref<!tpu.dma_semaphore, #tpu.memory_space<semaphore_mem>>) src(%306 : memref<1x128xf32, #tpu.memory_space<any>>) dst(%307 : memref<1x128xf32, #tpu.memory_space<vmem>>)
    %c0_i32_422 = arith.constant 0 : i32
    %308 = tpu.memref_slice %arg1[%174, %c0_i32_422] : memref<128x128xf32, #tpu.memory_space<any>> -> memref<1x128xf32, #tpu.memory_space<any>>
    %c58_i32_423 = arith.constant 58 : i32
    %c0_i32_424 = arith.constant 0 : i32
    %309 = tpu.memref_slice %arg9[%c58_i32_423, %c0_i32_424] : memref<64x128xf32, #tpu.memory_space<vmem>> -> memref<1x128xf32, #tpu.memory_space<vmem>>
    tpu.wait_dma2 semaphore(%arg11 : memref<!tpu.dma_semaphore, #tpu.memory_space<semaphore_mem>>) src(%308 : memref<1x128xf32, #tpu.memory_space<any>>) dst(%309 : memref<1x128xf32, #tpu.memory_space<vmem>>)
    %c0_i32_425 = arith.constant 0 : i32
    %310 = tpu.memref_slice %arg1[%177, %c0_i32_425] : memref<128x128xf32, #tpu.memory_space<any>> -> memref<1x128xf32, #tpu.memory_space<any>>
    %c59_i32_426 = arith.constant 59 : i32
    %c0_i32_427 = arith.constant 0 : i32
    %311 = tpu.memref_slice %arg9[%c59_i32_426, %c0_i32_427] : memref<64x128xf32, #tpu.memory_space<vmem>> -> memref<1x128xf32, #tpu.memory_space<vmem>>
    tpu.wait_dma2 semaphore(%arg11 : memref<!tpu.dma_semaphore, #tpu.memory_space<semaphore_mem>>) src(%310 : memref<1x128xf32, #tpu.memory_space<any>>) dst(%311 : memref<1x128xf32, #tpu.memory_space<vmem>>)
    %c0_i32_428 = arith.constant 0 : i32
    %312 = tpu.memref_slice %arg1[%180, %c0_i32_428] : memref<128x128xf32, #tpu.memory_space<any>> -> memref<1x128xf32, #tpu.memory_space<any>>
    %c60_i32_429 = arith.constant 60 : i32
    %c0_i32_430 = arith.constant 0 : i32
    %313 = tpu.memref_slice %arg9[%c60_i32_429, %c0_i32_430] : memref<64x128xf32, #tpu.memory_space<vmem>> -> memref<1x128xf32, #tpu.memory_space<vmem>>
    tpu.wait_dma2 semaphore(%arg11 : memref<!tpu.dma_semaphore, #tpu.memory_space<semaphore_mem>>) src(%312 : memref<1x128xf32, #tpu.memory_space<any>>) dst(%313 : memref<1x128xf32, #tpu.memory_space<vmem>>)
    %c0_i32_431 = arith.constant 0 : i32
    %314 = tpu.memref_slice %arg1[%183, %c0_i32_431] : memref<128x128xf32, #tpu.memory_space<any>> -> memref<1x128xf32, #tpu.memory_space<any>>
    %c61_i32_432 = arith.constant 61 : i32
    %c0_i32_433 = arith.constant 0 : i32
    %315 = tpu.memref_slice %arg9[%c61_i32_432, %c0_i32_433] : memref<64x128xf32, #tpu.memory_space<vmem>> -> memref<1x128xf32, #tpu.memory_space<vmem>>
    tpu.wait_dma2 semaphore(%arg11 : memref<!tpu.dma_semaphore, #tpu.memory_space<semaphore_mem>>) src(%314 : memref<1x128xf32, #tpu.memory_space<any>>) dst(%315 : memref<1x128xf32, #tpu.memory_space<vmem>>)
    %c0_i32_434 = arith.constant 0 : i32
    %316 = tpu.memref_slice %arg1[%186, %c0_i32_434] : memref<128x128xf32, #tpu.memory_space<any>> -> memref<1x128xf32, #tpu.memory_space<any>>
    %c62_i32_435 = arith.constant 62 : i32
    %c0_i32_436 = arith.constant 0 : i32
    %317 = tpu.memref_slice %arg9[%c62_i32_435, %c0_i32_436] : memref<64x128xf32, #tpu.memory_space<vmem>> -> memref<1x128xf32, #tpu.memory_space<vmem>>
    tpu.wait_dma2 semaphore(%arg11 : memref<!tpu.dma_semaphore, #tpu.memory_space<semaphore_mem>>) src(%316 : memref<1x128xf32, #tpu.memory_space<any>>) dst(%317 : memref<1x128xf32, #tpu.memory_space<vmem>>)
    %c0_i32_437 = arith.constant 0 : i32
    %318 = tpu.memref_slice %arg1[%189, %c0_i32_437] : memref<128x128xf32, #tpu.memory_space<any>> -> memref<1x128xf32, #tpu.memory_space<any>>
    %c63_i32_438 = arith.constant 63 : i32
    %c0_i32_439 = arith.constant 0 : i32
    %319 = tpu.memref_slice %arg9[%c63_i32_438, %c0_i32_439] : memref<64x128xf32, #tpu.memory_space<vmem>> -> memref<1x128xf32, #tpu.memory_space<vmem>>
    tpu.wait_dma2 semaphore(%arg11 : memref<!tpu.dma_semaphore, #tpu.memory_space<semaphore_mem>>) src(%318 : memref<1x128xf32, #tpu.memory_space<any>>) dst(%319 : memref<1x128xf32, #tpu.memory_space<vmem>>)
    %c0_440 = arith.constant 0 : index
    %c0_441 = arith.constant 0 : index
    %320 = vector.load %arg9[%c0_440, %c0_441] : memref<64x128xf32, #tpu.memory_space<vmem>>, vector<64x128xf32>
    %321 = arith.truncf %320 : vector<64x128xf32> to vector<64x128xbf16>
    %c0_442 = arith.constant 0 : index
    %c0_443 = arith.constant 0 : index
    %322 = vector.load %arg2[%c0_442, %c0_443] : memref<128x384xbf16, #tpu.memory_space<vmem>>, vector<128x384xbf16>
    %cst = arith.constant dense<0.000000e+00> : vector<64x384xf32>
    %323 = tpu.matmul %321, %322, %cst {dimension_numbers = #tpu.dot_dimension_numbers<[1], [0], [0], [1], [0, 0, 1, 1], [], []>} : vector<64x128xbf16>, vector<128x384xbf16>, vector<64x384xf32> -> vector<64x384xf32>
    %c0_444 = arith.constant 0 : index
    %c0_445 = arith.constant 0 : index
    %324 = vector.load %arg4[%c0_444, %c0_445] : memref<1x384xf32, #tpu.memory_space<vmem>>, vector<1x384xf32>
    %325 = vector.broadcast %324 : vector<1x384xf32> to vector<64x384xf32>
    %326 = arith.addf %323, %325 : vector<64x384xf32>
    %c0_446 = arith.constant 0 : index
    %c0_447 = arith.constant 0 : index
    %327 = vector.load %arg10[%c0_446, %c0_447] : memref<64x384xf32, #tpu.memory_space<vmem>>, vector<64x384xf32>
    tpu.vector_store %arg10[%c0_446, %c0_447], %326 {strides = array<i32>} : memref<64x384xf32, #tpu.memory_space<vmem>>, vector<64x384xf32>,
    %c0_448 = arith.constant 0 : index
    %c0_449 = arith.constant 0 : index
    %328 = vector.load %arg5[%c0_448, %c0_449] : memref<1x128xf32, #tpu.memory_space<vmem>>, vector<1x128xf32>
    %329 = vector.shape_cast %328 : vector<1x128xf32> to vector<1x128xf32>
    %330 = vector.broadcast %329 : vector<1x128xf32> to vector<8x128xf32>
    %cst_450 = arith.constant 0.000000e+00 : f32
    %331 = vector.broadcast %cst_450 : f32 to vector<8x128xf32>
    %c0_451 = arith.constant 0 : index
    %c0_452 = arith.constant 0 : index
    %332 = vector.load %arg10[%c0_451, %c0_452] : memref<64x384xf32, #tpu.memory_space<vmem>>, vector<8x384xf32>
    %333 = arith.truncf %331 : vector<8x128xf32> to vector<8x128xbf16>
    %c0_453 = arith.constant 0 : index
    %c0_454 = arith.constant 0 : index
    %334 = vector.load %arg3[%c0_453, %c0_454] : memref<128x384xbf16, #tpu.memory_space<vmem>>, vector<128x384xbf16>
    %cst_455 = arith.constant dense<0.000000e+00> : vector<8x384xf32>
    %335 = tpu.matmul %333, %334, %cst_455 {dimension_numbers = #tpu.dot_dimension_numbers<[1], [0], [0], [1], [0, 0, 1, 1], [], []>} : vector<8x128xbf16>, vector<128x384xbf16>, vector<8x384xf32> -> vector<8x384xf32>
    %336 = vector.extract_strided_slice %332 {offsets = [0, 0], sizes = [8, 128], strides = [1, 1]} : vector<8x384xf32> to vector<8x128xf32>
    %337 = vector.extract_strided_slice %335 {offsets = [0, 0], sizes = [8, 128], strides = [1, 1]} : vector<8x384xf32> to vector<8x128xf32>
    %338 = arith.addf %336, %337 : vector<8x128xf32>
    %339 = arith.negf %338 : vector<8x128xf32>
    %340 = math.exp %339 : vector<8x128xf32>
    %cst_456 = arith.constant 1.000000e+00 : f32
    %341 = vector.broadcast %cst_456 : f32 to vector<8x128xf32>
    %342 = arith.addf %341, %340 : vector<8x128xf32>
    %343 = arith.divf %341, %342 : vector<8x128xf32>
    %344 = vector.extract_strided_slice %332 {offsets = [0, 128], sizes = [8, 128], strides = [1, 1]} : vector<8x384xf32> to vector<8x128xf32>
    %345 = vector.extract_strided_slice %335 {offsets = [0, 128], sizes = [8, 128], strides = [1, 1]} : vector<8x384xf32> to vector<8x128xf32>
    %346 = arith.addf %344, %345 : vector<8x128xf32>
    %347 = arith.negf %346 : vector<8x128xf32>
    %348 = math.exp %347 : vector<8x128xf32>
    %cst_457 = arith.constant 1.000000e+00 : f32
    %349 = vector.broadcast %cst_457 : f32 to vector<8x128xf32>
    %350 = arith.addf %349, %348 : vector<8x128xf32>
    %351 = arith.divf %349, %350 : vector<8x128xf32>
    %352 = vector.extract_strided_slice %332 {offsets = [0, 256], sizes = [8, 128], strides = [1, 1]} : vector<8x384xf32> to vector<8x128xf32>
    %353 = vector.extract_strided_slice %335 {offsets = [0, 256], sizes = [8, 128], strides = [1, 1]} : vector<8x384xf32> to vector<8x128xf32>
    %354 = arith.addf %353, %330 : vector<8x128xf32>
    %355 = arith.mulf %343, %354 : vector<8x128xf32>
    %356 = arith.addf %352, %355 : vector<8x128xf32>
    %357 = math.tanh %356 : vector<8x128xf32>
    %358 = arith.subf %331, %357 : vector<8x128xf32>
    %359 = arith.mulf %351, %358 : vector<8x128xf32>
    %360 = arith.addf %357, %359 : vector<8x128xf32>
    %c8 = arith.constant 8 : index
    %c0_458 = arith.constant 0 : index
    %361 = vector.load %arg10[%c8, %c0_458] : memref<64x384xf32, #tpu.memory_space<vmem>>, vector<8x384xf32>
    %362 = arith.truncf %360 : vector<8x128xf32> to vector<8x128xbf16>
    %c0_459 = arith.constant 0 : index
    %c0_460 = arith.constant 0 : index
    %363 = vector.load %arg3[%c0_459, %c0_460] : memref<128x384xbf16, #tpu.memory_space<vmem>>, vector<128x384xbf16>
    %cst_461 = arith.constant dense<0.000000e+00> : vector<8x384xf32>
    %364 = tpu.matmul %362, %363, %cst_461 {dimension_numbers = #tpu.dot_dimension_numbers<[1], [0], [0], [1], [0, 0, 1, 1], [], []>} : vector<8x128xbf16>, vector<128x384xbf16>, vector<8x384xf32> -> vector<8x384xf32>
    %365 = vector.extract_strided_slice %361 {offsets = [0, 0], sizes = [8, 128], strides = [1, 1]} : vector<8x384xf32> to vector<8x128xf32>
    %366 = vector.extract_strided_slice %364 {offsets = [0, 0], sizes = [8, 128], strides = [1, 1]} : vector<8x384xf32> to vector<8x128xf32>
    %367 = arith.addf %365, %366 : vector<8x128xf32>
    %368 = arith.negf %367 : vector<8x128xf32>
    %369 = math.exp %368 : vector<8x128xf32>
    %cst_462 = arith.constant 1.000000e+00 : f32
    %370 = vector.broadcast %cst_462 : f32 to vector<8x128xf32>
    %371 = arith.addf %370, %369 : vector<8x128xf32>
    %372 = arith.divf %370, %371 : vector<8x128xf32>
    %373 = vector.extract_strided_slice %361 {offsets = [0, 128], sizes = [8, 128], strides = [1, 1]} : vector<8x384xf32> to vector<8x128xf32>
    %374 = vector.extract_strided_slice %364 {offsets = [0, 128], sizes = [8, 128], strides = [1, 1]} : vector<8x384xf32> to vector<8x128xf32>
    %375 = arith.addf %373, %374 : vector<8x128xf32>
    %376 = arith.negf %375 : vector<8x128xf32>
    %377 = math.exp %376 : vector<8x128xf32>
    %cst_463 = arith.constant 1.000000e+00 : f32
    %378 = vector.broadcast %cst_463 : f32 to vector<8x128xf32>
    %379 = arith.addf %378, %377 : vector<8x128xf32>
    %380 = arith.divf %378, %379 : vector<8x128xf32>
    %381 = vector.extract_strided_slice %361 {offsets = [0, 256], sizes = [8, 128], strides = [1, 1]} : vector<8x384xf32> to vector<8x128xf32>
    %382 = vector.extract_strided_slice %364 {offsets = [0, 256], sizes = [8, 128], strides = [1, 1]} : vector<8x384xf32> to vector<8x128xf32>
    %383 = arith.addf %382, %330 : vector<8x128xf32>
    %384 = arith.mulf %372, %383 : vector<8x128xf32>
    %385 = arith.addf %381, %384 : vector<8x128xf32>
    %386 = math.tanh %385 : vector<8x128xf32>
    %387 = arith.subf %360, %386 : vector<8x128xf32>
    %388 = arith.mulf %380, %387 : vector<8x128xf32>
    %389 = arith.addf %386, %388 : vector<8x128xf32>
    %c16 = arith.constant 16 : index
    %c0_464 = arith.constant 0 : index
    %390 = vector.load %arg10[%c16, %c0_464] : memref<64x384xf32, #tpu.memory_space<vmem>>, vector<8x384xf32>
    %391 = arith.truncf %389 : vector<8x128xf32> to vector<8x128xbf16>
    %c0_465 = arith.constant 0 : index
    %c0_466 = arith.constant 0 : index
    %392 = vector.load %arg3[%c0_465, %c0_466] : memref<128x384xbf16, #tpu.memory_space<vmem>>, vector<128x384xbf16>
    %cst_467 = arith.constant dense<0.000000e+00> : vector<8x384xf32>
    %393 = tpu.matmul %391, %392, %cst_467 {dimension_numbers = #tpu.dot_dimension_numbers<[1], [0], [0], [1], [0, 0, 1, 1], [], []>} : vector<8x128xbf16>, vector<128x384xbf16>, vector<8x384xf32> -> vector<8x384xf32>
    %394 = vector.extract_strided_slice %390 {offsets = [0, 0], sizes = [8, 128], strides = [1, 1]} : vector<8x384xf32> to vector<8x128xf32>
    %395 = vector.extract_strided_slice %393 {offsets = [0, 0], sizes = [8, 128], strides = [1, 1]} : vector<8x384xf32> to vector<8x128xf32>
    %396 = arith.addf %394, %395 : vector<8x128xf32>
    %397 = arith.negf %396 : vector<8x128xf32>
    %398 = math.exp %397 : vector<8x128xf32>
    %cst_468 = arith.constant 1.000000e+00 : f32
    %399 = vector.broadcast %cst_468 : f32 to vector<8x128xf32>
    %400 = arith.addf %399, %398 : vector<8x128xf32>
    %401 = arith.divf %399, %400 : vector<8x128xf32>
    %402 = vector.extract_strided_slice %390 {offsets = [0, 128], sizes = [8, 128], strides = [1, 1]} : vector<8x384xf32> to vector<8x128xf32>
    %403 = vector.extract_strided_slice %393 {offsets = [0, 128], sizes = [8, 128], strides = [1, 1]} : vector<8x384xf32> to vector<8x128xf32>
    %404 = arith.addf %402, %403 : vector<8x128xf32>
    %405 = arith.negf %404 : vector<8x128xf32>
    %406 = math.exp %405 : vector<8x128xf32>
    %cst_469 = arith.constant 1.000000e+00 : f32
    %407 = vector.broadcast %cst_469 : f32 to vector<8x128xf32>
    %408 = arith.addf %407, %406 : vector<8x128xf32>
    %409 = arith.divf %407, %408 : vector<8x128xf32>
    %410 = vector.extract_strided_slice %390 {offsets = [0, 256], sizes = [8, 128], strides = [1, 1]} : vector<8x384xf32> to vector<8x128xf32>
    %411 = vector.extract_strided_slice %393 {offsets = [0, 256], sizes = [8, 128], strides = [1, 1]} : vector<8x384xf32> to vector<8x128xf32>
    %412 = arith.addf %411, %330 : vector<8x128xf32>
    %413 = arith.mulf %401, %412 : vector<8x128xf32>
    %414 = arith.addf %410, %413 : vector<8x128xf32>
    %415 = math.tanh %414 : vector<8x128xf32>
    %416 = arith.subf %389, %415 : vector<8x128xf32>
    %417 = arith.mulf %409, %416 : vector<8x128xf32>
    %418 = arith.addf %415, %417 : vector<8x128xf32>
    %c24 = arith.constant 24 : index
    %c0_470 = arith.constant 0 : index
    %419 = vector.load %arg10[%c24, %c0_470] : memref<64x384xf32, #tpu.memory_space<vmem>>, vector<8x384xf32>
    %420 = arith.truncf %418 : vector<8x128xf32> to vector<8x128xbf16>
    %c0_471 = arith.constant 0 : index
    %c0_472 = arith.constant 0 : index
    %421 = vector.load %arg3[%c0_471, %c0_472] : memref<128x384xbf16, #tpu.memory_space<vmem>>, vector<128x384xbf16>
    %cst_473 = arith.constant dense<0.000000e+00> : vector<8x384xf32>
    %422 = tpu.matmul %420, %421, %cst_473 {dimension_numbers = #tpu.dot_dimension_numbers<[1], [0], [0], [1], [0, 0, 1, 1], [], []>} : vector<8x128xbf16>, vector<128x384xbf16>, vector<8x384xf32> -> vector<8x384xf32>
    %423 = vector.extract_strided_slice %419 {offsets = [0, 0], sizes = [8, 128], strides = [1, 1]} : vector<8x384xf32> to vector<8x128xf32>
    %424 = vector.extract_strided_slice %422 {offsets = [0, 0], sizes = [8, 128], strides = [1, 1]} : vector<8x384xf32> to vector<8x128xf32>
    %425 = arith.addf %423, %424 : vector<8x128xf32>
    %426 = arith.negf %425 : vector<8x128xf32>
    %427 = math.exp %426 : vector<8x128xf32>
    %cst_474 = arith.constant 1.000000e+00 : f32
    %428 = vector.broadcast %cst_474 : f32 to vector<8x128xf32>
    %429 = arith.addf %428, %427 : vector<8x128xf32>
    %430 = arith.divf %428, %429 : vector<8x128xf32>
    %431 = vector.extract_strided_slice %419 {offsets = [0, 128], sizes = [8, 128], strides = [1, 1]} : vector<8x384xf32> to vector<8x128xf32>
    %432 = vector.extract_strided_slice %422 {offsets = [0, 128], sizes = [8, 128], strides = [1, 1]} : vector<8x384xf32> to vector<8x128xf32>
    %433 = arith.addf %431, %432 : vector<8x128xf32>
    %434 = arith.negf %433 : vector<8x128xf32>
    %435 = math.exp %434 : vector<8x128xf32>
    %cst_475 = arith.constant 1.000000e+00 : f32
    %436 = vector.broadcast %cst_475 : f32 to vector<8x128xf32>
    %437 = arith.addf %436, %435 : vector<8x128xf32>
    %438 = arith.divf %436, %437 : vector<8x128xf32>
    %439 = vector.extract_strided_slice %419 {offsets = [0, 256], sizes = [8, 128], strides = [1, 1]} : vector<8x384xf32> to vector<8x128xf32>
    %440 = vector.extract_strided_slice %422 {offsets = [0, 256], sizes = [8, 128], strides = [1, 1]} : vector<8x384xf32> to vector<8x128xf32>
    %441 = arith.addf %440, %330 : vector<8x128xf32>
    %442 = arith.mulf %430, %441 : vector<8x128xf32>
    %443 = arith.addf %439, %442 : vector<8x128xf32>
    %444 = math.tanh %443 : vector<8x128xf32>
    %445 = arith.subf %418, %444 : vector<8x128xf32>
    %446 = arith.mulf %438, %445 : vector<8x128xf32>
    %447 = arith.addf %444, %446 : vector<8x128xf32>
    %c32 = arith.constant 32 : index
    %c0_476 = arith.constant 0 : index
    %448 = vector.load %arg10[%c32, %c0_476] : memref<64x384xf32, #tpu.memory_space<vmem>>, vector<8x384xf32>
    %449 = arith.truncf %447 : vector<8x128xf32> to vector<8x128xbf16>
    %c0_477 = arith.constant 0 : index
    %c0_478 = arith.constant 0 : index
    %450 = vector.load %arg3[%c0_477, %c0_478] : memref<128x384xbf16, #tpu.memory_space<vmem>>, vector<128x384xbf16>
    %cst_479 = arith.constant dense<0.000000e+00> : vector<8x384xf32>
    %451 = tpu.matmul %449, %450, %cst_479 {dimension_numbers = #tpu.dot_dimension_numbers<[1], [0], [0], [1], [0, 0, 1, 1], [], []>} : vector<8x128xbf16>, vector<128x384xbf16>, vector<8x384xf32> -> vector<8x384xf32>
    %452 = vector.extract_strided_slice %448 {offsets = [0, 0], sizes = [8, 128], strides = [1, 1]} : vector<8x384xf32> to vector<8x128xf32>
    %453 = vector.extract_strided_slice %451 {offsets = [0, 0], sizes = [8, 128], strides = [1, 1]} : vector<8x384xf32> to vector<8x128xf32>
    %454 = arith.addf %452, %453 : vector<8x128xf32>
    %455 = arith.negf %454 : vector<8x128xf32>
    %456 = math.exp %455 : vector<8x128xf32>
    %cst_480 = arith.constant 1.000000e+00 : f32
    %457 = vector.broadcast %cst_480 : f32 to vector<8x128xf32>
    %458 = arith.addf %457, %456 : vector<8x128xf32>
    %459 = arith.divf %457, %458 : vector<8x128xf32>
    %460 = vector.extract_strided_slice %448 {offsets = [0, 128], sizes = [8, 128], strides = [1, 1]} : vector<8x384xf32> to vector<8x128xf32>
    %461 = vector.extract_strided_slice %451 {offsets = [0, 128], sizes = [8, 128], strides = [1, 1]} : vector<8x384xf32> to vector<8x128xf32>
    %462 = arith.addf %460, %461 : vector<8x128xf32>
    %463 = arith.negf %462 : vector<8x128xf32>
    %464 = math.exp %463 : vector<8x128xf32>
    %cst_481 = arith.constant 1.000000e+00 : f32
    %465 = vector.broadcast %cst_481 : f32 to vector<8x128xf32>
    %466 = arith.addf %465, %464 : vector<8x128xf32>
    %467 = arith.divf %465, %466 : vector<8x128xf32>
    %468 = vector.extract_strided_slice %448 {offsets = [0, 256], sizes = [8, 128], strides = [1, 1]} : vector<8x384xf32> to vector<8x128xf32>
    %469 = vector.extract_strided_slice %451 {offsets = [0, 256], sizes = [8, 128], strides = [1, 1]} : vector<8x384xf32> to vector<8x128xf32>
    %470 = arith.addf %469, %330 : vector<8x128xf32>
    %471 = arith.mulf %459, %470 : vector<8x128xf32>
    %472 = arith.addf %468, %471 : vector<8x128xf32>
    %473 = math.tanh %472 : vector<8x128xf32>
    %474 = arith.subf %447, %473 : vector<8x128xf32>
    %475 = arith.mulf %467, %474 : vector<8x128xf32>
    %476 = arith.addf %473, %475 : vector<8x128xf32>
    %c40 = arith.constant 40 : index
    %c0_482 = arith.constant 0 : index
    %477 = vector.load %arg10[%c40, %c0_482] : memref<64x384xf32, #tpu.memory_space<vmem>>, vector<8x384xf32>
    %478 = arith.truncf %476 : vector<8x128xf32> to vector<8x128xbf16>
    %c0_483 = arith.constant 0 : index
    %c0_484 = arith.constant 0 : index
    %479 = vector.load %arg3[%c0_483, %c0_484] : memref<128x384xbf16, #tpu.memory_space<vmem>>, vector<128x384xbf16>
    %cst_485 = arith.constant dense<0.000000e+00> : vector<8x384xf32>
    %480 = tpu.matmul %478, %479, %cst_485 {dimension_numbers = #tpu.dot_dimension_numbers<[1], [0], [0], [1], [0, 0, 1, 1], [], []>} : vector<8x128xbf16>, vector<128x384xbf16>, vector<8x384xf32> -> vector<8x384xf32>
    %481 = vector.extract_strided_slice %477 {offsets = [0, 0], sizes = [8, 128], strides = [1, 1]} : vector<8x384xf32> to vector<8x128xf32>
    %482 = vector.extract_strided_slice %480 {offsets = [0, 0], sizes = [8, 128], strides = [1, 1]} : vector<8x384xf32> to vector<8x128xf32>
    %483 = arith.addf %481, %482 : vector<8x128xf32>
    %484 = arith.negf %483 : vector<8x128xf32>
    %485 = math.exp %484 : vector<8x128xf32>
    %cst_486 = arith.constant 1.000000e+00 : f32
    %486 = vector.broadcast %cst_486 : f32 to vector<8x128xf32>
    %487 = arith.addf %486, %485 : vector<8x128xf32>
    %488 = arith.divf %486, %487 : vector<8x128xf32>
    %489 = vector.extract_strided_slice %477 {offsets = [0, 128], sizes = [8, 128], strides = [1, 1]} : vector<8x384xf32> to vector<8x128xf32>
    %490 = vector.extract_strided_slice %480 {offsets = [0, 128], sizes = [8, 128], strides = [1, 1]} : vector<8x384xf32> to vector<8x128xf32>
    %491 = arith.addf %489, %490 : vector<8x128xf32>
    %492 = arith.negf %491 : vector<8x128xf32>
    %493 = math.exp %492 : vector<8x128xf32>
    %cst_487 = arith.constant 1.000000e+00 : f32
    %494 = vector.broadcast %cst_487 : f32 to vector<8x128xf32>
    %495 = arith.addf %494, %493 : vector<8x128xf32>
    %496 = arith.divf %494, %495 : vector<8x128xf32>
    %497 = vector.extract_strided_slice %477 {offsets = [0, 256], sizes = [8, 128], strides = [1, 1]} : vector<8x384xf32> to vector<8x128xf32>
    %498 = vector.extract_strided_slice %480 {offsets = [0, 256], sizes = [8, 128], strides = [1, 1]} : vector<8x384xf32> to vector<8x128xf32>
    %499 = arith.addf %498, %330 : vector<8x128xf32>
    %500 = arith.mulf %488, %499 : vector<8x128xf32>
    %501 = arith.addf %497, %500 : vector<8x128xf32>
    %502 = math.tanh %501 : vector<8x128xf32>
    %503 = arith.subf %476, %502 : vector<8x128xf32>
    %504 = arith.mulf %496, %503 : vector<8x128xf32>
    %505 = arith.addf %502, %504 : vector<8x128xf32>
    %c48 = arith.constant 48 : index
    %c0_488 = arith.constant 0 : index
    %506 = vector.load %arg10[%c48, %c0_488] : memref<64x384xf32, #tpu.memory_space<vmem>>, vector<8x384xf32>
    %507 = arith.truncf %505 : vector<8x128xf32> to vector<8x128xbf16>
    %c0_489 = arith.constant 0 : index
    %c0_490 = arith.constant 0 : index
    %508 = vector.load %arg3[%c0_489, %c0_490] : memref<128x384xbf16, #tpu.memory_space<vmem>>, vector<128x384xbf16>
    %cst_491 = arith.constant dense<0.000000e+00> : vector<8x384xf32>
    %509 = tpu.matmul %507, %508, %cst_491 {dimension_numbers = #tpu.dot_dimension_numbers<[1], [0], [0], [1], [0, 0, 1, 1], [], []>} : vector<8x128xbf16>, vector<128x384xbf16>, vector<8x384xf32> -> vector<8x384xf32>
    %510 = vector.extract_strided_slice %506 {offsets = [0, 0], sizes = [8, 128], strides = [1, 1]} : vector<8x384xf32> to vector<8x128xf32>
    %511 = vector.extract_strided_slice %509 {offsets = [0, 0], sizes = [8, 128], strides = [1, 1]} : vector<8x384xf32> to vector<8x128xf32>
    %512 = arith.addf %510, %511 : vector<8x128xf32>
    %513 = arith.negf %512 : vector<8x128xf32>
    %514 = math.exp %513 : vector<8x128xf32>
    %cst_492 = arith.constant 1.000000e+00 : f32
    %515 = vector.broadcast %cst_492 : f32 to vector<8x128xf32>
    %516 = arith.addf %515, %514 : vector<8x128xf32>
    %517 = arith.divf %515, %516 : vector<8x128xf32>
    %518 = vector.extract_strided_slice %506 {offsets = [0, 128], sizes = [8, 128], strides = [1, 1]} : vector<8x384xf32> to vector<8x128xf32>
    %519 = vector.extract_strided_slice %509 {offsets = [0, 128], sizes = [8, 128], strides = [1, 1]} : vector<8x384xf32> to vector<8x128xf32>
    %520 = arith.addf %518, %519 : vector<8x128xf32>
    %521 = arith.negf %520 : vector<8x128xf32>
    %522 = math.exp %521 : vector<8x128xf32>
    %cst_493 = arith.constant 1.000000e+00 : f32
    %523 = vector.broadcast %cst_493 : f32 to vector<8x128xf32>
    %524 = arith.addf %523, %522 : vector<8x128xf32>
    %525 = arith.divf %523, %524 : vector<8x128xf32>
    %526 = vector.extract_strided_slice %506 {offsets = [0, 256], sizes = [8, 128], strides = [1, 1]} : vector<8x384xf32> to vector<8x128xf32>
    %527 = vector.extract_strided_slice %509 {offsets = [0, 256], sizes = [8, 128], strides = [1, 1]} : vector<8x384xf32> to vector<8x128xf32>
    %528 = arith.addf %527, %330 : vector<8x128xf32>
    %529 = arith.mulf %517, %528 : vector<8x128xf32>
    %530 = arith.addf %526, %529 : vector<8x128xf32>
    %531 = math.tanh %530 : vector<8x128xf32>
    %532 = arith.subf %505, %531 : vector<8x128xf32>
    %533 = arith.mulf %525, %532 : vector<8x128xf32>
    %534 = arith.addf %531, %533 : vector<8x128xf32>
    %c56 = arith.constant 56 : index
    %c0_494 = arith.constant 0 : index
    %535 = vector.load %arg10[%c56, %c0_494] : memref<64x384xf32, #tpu.memory_space<vmem>>, vector<8x384xf32>
    %536 = arith.truncf %534 : vector<8x128xf32> to vector<8x128xbf16>
    %c0_495 = arith.constant 0 : index
    %c0_496 = arith.constant 0 : index
    %537 = vector.load %arg3[%c0_495, %c0_496] : memref<128x384xbf16, #tpu.memory_space<vmem>>, vector<128x384xbf16>
    %cst_497 = arith.constant dense<0.000000e+00> : vector<8x384xf32>
    %538 = tpu.matmul %536, %537, %cst_497 {dimension_numbers = #tpu.dot_dimension_numbers<[1], [0], [0], [1], [0, 0, 1, 1], [], []>} : vector<8x128xbf16>, vector<128x384xbf16>, vector<8x384xf32> -> vector<8x384xf32>
    %539 = vector.extract_strided_slice %535 {offsets = [0, 0], sizes = [8, 128], strides = [1, 1]} : vector<8x384xf32> to vector<8x128xf32>
    %540 = vector.extract_strided_slice %538 {offsets = [0, 0], sizes = [8, 128], strides = [1, 1]} : vector<8x384xf32> to vector<8x128xf32>
    %541 = arith.addf %539, %540 : vector<8x128xf32>
    %542 = arith.negf %541 : vector<8x128xf32>
    %543 = math.exp %542 : vector<8x128xf32>
    %cst_498 = arith.constant 1.000000e+00 : f32
    %544 = vector.broadcast %cst_498 : f32 to vector<8x128xf32>
    %545 = arith.addf %544, %543 : vector<8x128xf32>
    %546 = arith.divf %544, %545 : vector<8x128xf32>
    %547 = vector.extract_strided_slice %535 {offsets = [0, 128], sizes = [8, 128], strides = [1, 1]} : vector<8x384xf32> to vector<8x128xf32>
    %548 = vector.extract_strided_slice %538 {offsets = [0, 128], sizes = [8, 128], strides = [1, 1]} : vector<8x384xf32> to vector<8x128xf32>
    %549 = arith.addf %547, %548 : vector<8x128xf32>
    %550 = arith.negf %549 : vector<8x128xf32>
    %551 = math.exp %550 : vector<8x128xf32>
    %cst_499 = arith.constant 1.000000e+00 : f32
    %552 = vector.broadcast %cst_499 : f32 to vector<8x128xf32>
    %553 = arith.addf %552, %551 : vector<8x128xf32>
    %554 = arith.divf %552, %553 : vector<8x128xf32>
    %555 = vector.extract_strided_slice %535 {offsets = [0, 256], sizes = [8, 128], strides = [1, 1]} : vector<8x384xf32> to vector<8x128xf32>
    %556 = vector.extract_strided_slice %538 {offsets = [0, 256], sizes = [8, 128], strides = [1, 1]} : vector<8x384xf32> to vector<8x128xf32>
    %557 = arith.addf %556, %330 : vector<8x128xf32>
    %558 = arith.mulf %546, %557 : vector<8x128xf32>
    %559 = arith.addf %555, %558 : vector<8x128xf32>
    %560 = math.tanh %559 : vector<8x128xf32>
    %561 = arith.subf %534, %560 : vector<8x128xf32>
    %562 = arith.mulf %554, %561 : vector<8x128xf32>
    %563 = arith.addf %560, %562 : vector<8x128xf32>
    %564 = arith.truncf %563 : vector<8x128xf32> to vector<8x128xbf16>
    %c0_500 = arith.constant 0 : index
    %c0_501 = arith.constant 0 : index
    %565 = vector.load %arg6[%c0_500, %c0_501] : memref<128x128xbf16, #tpu.memory_space<vmem>>, vector<128x128xbf16>
    %cst_502 = arith.constant dense<0.000000e+00> : vector<8x128xf32>
    %566 = tpu.matmul %564, %565, %cst_502 {dimension_numbers = #tpu.dot_dimension_numbers<[1], [0], [0], [1], [0, 0, 1, 1], [], []>} : vector<8x128xbf16>, vector<128x128xbf16>, vector<8x128xf32> -> vector<8x128xf32>
    %c0_503 = arith.constant 0 : index
    %c0_504 = arith.constant 0 : index
    %567 = vector.load %arg7[%c0_503, %c0_504] : memref<1x128xf32, #tpu.memory_space<vmem>>, vector<1x128xf32>
    %568 = vector.broadcast %567 : vector<1x128xf32> to vector<8x128xf32>
    %569 = arith.addf %566, %568 : vector<8x128xf32>
    %c0_505 = arith.constant 0 : index
    %c0_506 = arith.constant 0 : index
    %570 = vector.load %arg8[%c0_505, %c0_506] : memref<8x128xf32, #tpu.memory_space<vmem>>, vector<8x128xf32>
    tpu.vector_store %arg8[%c0_505, %c0_506], %569 {strides = array<i32>} : memref<8x128xf32, #tpu.memory_space<vmem>>, vector<8x128xf32>,
    return
  }
}

</mosaic_0001>

<bundles_post_ra>
// kernel: tpu_custom_call.1
= control target key start
LH: loop header
LB: loop body
LE: loop exit
PB: predicated region body
PF: predicated region fallthrough
CT: control target
= control target key end

     0   :  { %13 = vsyncpa [#allocation8], 0  ;;  %s5927_s0 = inlined_call_operand.hbm [shape: s32[8,8], index: 0, kind: input, shape index: {}]   ;;  %s5928_s1 = inlined_call_operand.hbm [shape: f32[128,128], index: 1, kind: input, shape index: {}]   ;;  %s5929_s2 = inlined_call_operand.hbm [shape: bf16[128,384], index: 2, kind: input, shape index: {}]   ;;  %s5930_s3 = inlined_call_operand.hbm [shape: bf16[128,384], index: 3, kind: input, shape index: {}]   ;;  %s5931_s4 = inlined_call_operand.vmem [shape: f32[1,384], index: 4, kind: input, shape index: {}]   ;;  %s5932_s5 = inlined_call_operand.vmem [shape: f32[1,128], index: 5, kind: input, shape index: {}]   ;;  %s5933_s6 = inlined_call_operand.hbm [shape: bf16[128,128], index: 6, kind: input, shape index: {}]   ;;  %s5934_s7 = inlined_call_operand.vmem [shape: f32[1,128], index: 7, kind: input, shape index: {}]   ;;  %s5935_s8 = inlined_call_operand.hbm [shape: f32[8,128], index: 8, kind: output, shape index: {}]  }
   0x1   :  { %14 = vsyncpa [#allocation6], 0 }
   0x2   :  { %15 = vsyncpa [#allocation11], 0 }
   0x3   :  { %16 = vsyncpa [#allocation7], 0  ;;  %s43_s29 = sshll.u32 %s5930_s3, 4  ;;  %s4758_s30 = smov [#allocation10]   ;;  %s44_s29 = int_to_ptr.hbm [resolvable:$true] %s43_s29 }
   0x4   :  { %s45_s9 = sshll.u32 %s4758_s30, 4  ;;  %s22_s12 = sshll.u32 %s5927_s0, 4  ;;  %s46_s9 = int_to_ptr.vmem [resolvable:$true] %s45_s9  ;;  %s23_s12 = int_to_ptr.hbm [resolvable:$true] %s22_s12 }
   0x5   :  { %s4759_s13 = smov 192   ;;  %s4760_s14 = smov 12  }
   0x6   :  { %51 = dma.hbm_to_vmem [thread:$0]  %s44_s29, 3072, %s46_s9, [#allocation11], %s4759_s13, %s4759_s13, %s4760_s14  }
   0x7   :  { %s4761_s15 = smov [#allocation5]   ;;  %s30_s18 = sshll.u32 %s5929_s2, 4  ;;  %s31_s18 = int_to_ptr.hbm [resolvable:$true] %s30_s18 }
   0x8   :  { %25 = dma.hbm_to_smem %s23_s12, 128, %s4761_s15, [#allocation8]  }
   0x9   :  { %s4762_s3 = smov [#allocation9]   ;;  %s60_s22 = sshll.u32 %s5933_s6, 4  ;;  %s61_s22 = int_to_ptr.hbm [resolvable:$true] %s60_s22 }
   0xa   :  { %s32_s19 = sshll.u32 %s4762_s3, 4  ;;  %s4763_s0 = smov [#allocation12]   ;;  %s33_s19 = int_to_ptr.vmem [resolvable:$true] %s32_s19 }
   0xb   :  { %38 = dma.hbm_to_vmem [thread:$0]  %s31_s18, 3072, %s33_s19, [#allocation6], %s4759_s13, %s4759_s13, %s4760_s14  }
   0xc   :  { %s62_s23 = sshll.u32 %s4763_s0, 4  ;;  %s4764_s24 = smov 64   ;;  %s63_s23 = int_to_ptr.vmem [resolvable:$true] %s62_s23 }
   0xd   :  { %s4765_s25 = smov 4  }
   0xe   :  { %68 = dma.hbm_to_vmem [thread:$0]  %s61_s22, 1024, %s63_s23, [#allocation11], %s4764_s24, %s4764_s24, %s4765_s25  }
   0xf   :  { %4748 = dma.done.wait [#allocation8], 128  }
  0x10   :  { %4749 = vsyncadd [#allocation8], 4294967168 }
  0x11   :  { %4750 = dma.done.wait [#allocation6], 3072  }
  0x12   :  { %4751 = vsyncadd [#allocation6], 4294964224 }
  0x13   :  { %4752 = dma.done.wait [#allocation11], 4096  }
  0x14   :  { %4753 = vsyncadd [#allocation11], 4294963200 }
  0x15   :  { %87 = sfence }
  0x16   :  { %s89_s2 = sld [smem:[#allocation5]]  ;;  %s4766_s26 = smov [#allocation2]  }
  0x17   :  { %s100_s27 = sshll.u32 %s4766_s26, 4  ;;  %s2587_s28 = sld [smem:[#allocation5 + $0x80]]  ;;  %s101_s27 = int_to_ptr.vmem [resolvable:$true] %s100_s27 }
  0x18   :  { %s4767_s6 = smov [#allocation2 + $0x1]   ;;  %s4891_s30 = sld [smem:[#allocation5 + $0x100]] }
  0x19   :  { %s4889_s29 = sshll.u32 %s4767_s6, 4  ;;  %s4768_s9 = smov [#allocation2 + $0x2]   ;;  %s117_s29 = int_to_ptr.vmem [resolvable:$true] %s4889_s29 }
  0x1a   :  { %s4894_s10 = sshll.u32 %s4768_s9, 4  ;;  %s4896_s11 = sld [smem:[#allocation5 + $0x180]]  ;;  %s133_s10 = int_to_ptr.vmem [resolvable:$true] %s4894_s10 }
  0x1b   :  { %s4908_s0 = scalar_lea.hbm %s5928_s1, 128 }
  0x1c   :  { %s90_s14 = scalar_lea.hbm %s5928_s1, %s89_s2 }
  0x1d   :  { %s98_s15 = sshll.u32 %s90_s14, 4  ;;  %s105_s18 = scalar_lea.hbm %s5928_s1, %s2587_s28  ;;  %s99_s15 = int_to_ptr.hbm [resolvable:$true] %s98_s15 }
  0x1e   :  { %s114_s3 = sshll.u32 %s105_s18, 4  ;;  %s3188_s19 = sshra.s32 %s99_s15, 4  ;;  %s3189_s19 = int_to_ptr.hbm [resolvable:$true] %s3188_s19  ;;  %s115_s3 = int_to_ptr.hbm [resolvable:$true] %s114_s3 }
  0x1f   :  { %s3190_s20 = scalar_lea.hbm %s3189_s19, 1  ;;  %p3193_p1 = scmp.lt.s32.totalorder %s3189_s19, %s5928_s1 }
  0x20   :  { %p3191_p0 = scmp.ne.s32.totalorder %s3189_s19, %s3190_s20  ;;  %p3194_p2 = scmp.lt.s32.totalorder %s4908_s0, %s3190_s20 }
  0x22   :  { %p3195_p3 = por %p3194_p2, %p3193_p1 }
  0x24   :  { %p3196_p4 = pnand %p3195_p3, %p3191_p0 }
  0x26   :  { %3199 = shalt.err (!%p3196_p4)  }
  0x27   :  { %103 = dma.hbm_to_vmem [thread:$0]  %s99_s15, 16, %s101_s27, [#allocation4] }
  0x28   :  { %s121_s26 = scalar_lea.hbm %s5928_s1, %s4891_s30  ;;  %s3212_s28 = sshra.s32 %s115_s3, 4  ;;  %s3213_s28 = int_to_ptr.hbm [resolvable:$true] %s3212_s28 }
  0x29   :  { %s3214_s6 = scalar_lea.hbm %s3213_s28, 1  ;;  %p3217_p6 = scmp.lt.s32.totalorder %s3213_s28, %s5928_s1 }
  0x2a   :  { %p3215_p5 = scmp.ne.s32.totalorder %s3213_s28, %s3214_s6  ;;  %p3218_p7 = scmp.lt.s32.totalorder %s4908_s0, %s3214_s6 }
  0x2c   :  { %p3219_p8 = por %p3218_p7, %p3217_p6 }
  0x2e   :  { %p3220_p9 = pnand %p3219_p8, %p3215_p5 }
  0x30   :  { %3223 = shalt.err (!%p3220_p9)  }
  0x31   :  { %119 = dma.hbm_to_vmem [thread:$0]  %s115_s3, 16, %s117_s29, [#allocation4] }
  0x32   :  { %s130_s27 = sshll.u32 %s121_s26, 4  ;;  %s137_s14 = scalar_lea.hbm %s5928_s1, %s4896_s11  ;;  %s131_s27 = int_to_ptr.hbm [resolvable:$true] %s130_s27 }
  0x33   :  { %s146_s15 = sshll.u32 %s137_s14, 4  ;;  %s3236_s16 = sshra.s32 %s131_s27, 4  ;;  %s3237_s16 = int_to_ptr.hbm [resolvable:$true] %s3236_s16  ;;  %s147_s15 = int_to_ptr.hbm [resolvable:$true] %s146_s15 }
  0x34   :  { %s3238_s17 = scalar_lea.hbm %s3237_s16, 1  ;;  %p3241_p11 = scmp.lt.s32.totalorder %s3237_s16, %s5928_s1 }
  0x35   :  { %p3239_p10 = scmp.ne.s32.totalorder %s3237_s16, %s3238_s17  ;;  %p3242_p12 = scmp.lt.s32.totalorder %s4908_s0, %s3238_s17 }
  0x37   :  { %p3243_p13 = por %p3242_p12, %p3241_p11 }
  0x39   :  { %p3244_p0 = pnand %p3243_p13, %p3239_p10 }
  0x3b   :  { %3247 = shalt.err (!%p3244_p0)  }
  0x3c   :  { %135 = dma.hbm_to_vmem [thread:$0]  %s131_s27, 16, %s133_s10, [#allocation4] }
  0x3d   :  { %s4769_s29 = smov [#allocation2 + $0x3]   ;;  %s2590_s3 = sld [smem:[#allocation5 + $0x200]] }
  0x3e   :  { %s148_s11 = sshll.u32 %s4769_s29, 4  ;;  %s3260_s20 = sshra.s32 %s147_s15, 4  ;;  %s149_s11 = int_to_ptr.vmem [resolvable:$true] %s148_s11  ;;  %s3261_s20 = int_to_ptr.hbm [resolvable:$true] %s3260_s20 }
  0x3f   :  { %s3262_s21 = scalar_lea.hbm %s3261_s20, 1  ;;  %p3265_p2 = scmp.lt.s32.totalorder %s3261_s20, %s5928_s1 }
  0x40   :  { %p3263_p1 = scmp.ne.s32.totalorder %s3261_s20, %s3262_s21  ;;  %p3266_p3 = scmp.lt.s32.totalorder %s4908_s0, %s3262_s21 }
  0x42   :  { %p3267_p4 = por %p3266_p3, %p3265_p2 }
  0x44   :  { %p3268_p5 = pnand %p3267_p4, %p3263_p1 }
  0x46   :  { %3271 = shalt.err (!%p3268_p5)  }
  0x47   :  { %151 = dma.hbm_to_vmem [thread:$0]  %s147_s15, 16, %s149_s11, [#allocation4] }
  0x48   :  { %s4770_s24 = smov [#allocation2 + $0x4]   ;;  %s2591_s25 = sld [smem:[#allocation5 + $0x280]] }
  0x49   :  { %s164_s10 = sshll.u32 %s4770_s24, 4  ;;  %s4771_s2 = smov [#allocation2 + $0x5]   ;;  %s165_s10 = int_to_ptr.vmem [resolvable:$true] %s164_s10 }
  0x4a   :  { %s4938_s26 = sshll.u32 %s4771_s2, 4  ;;  %s2592_s28 = sld [smem:[#allocation5 + $0x300]]  ;;  %s181_s26 = int_to_ptr.vmem [resolvable:$true] %s4938_s26 }
  0x4b   :  { %s153_s12 = scalar_lea.hbm %s5928_s1, %s2590_s3  ;;  %s4772_s13 = smov [#allocation2 + $0x6]  }
  0x4c   :  { %s162_s27 = sshll.u32 %s153_s12, 4  ;;  %s4944_s30 = sshll.u32 %s4772_s13, 4  ;;  %s163_s27 = int_to_ptr.hbm [resolvable:$true] %s162_s27  ;;  %s197_s30 = int_to_ptr.vmem [resolvable:$true] %s4944_s30 }
  0x4d   :  { %s3284_s14 = sshra.s32 %s163_s27, 4  ;;  %s3285_s14 = int_to_ptr.hbm [resolvable:$true] %s3284_s14 }
  0x4e   :  { %s3286_s15 = scalar_lea.hbm %s3285_s14, 1  ;;  %p3289_p7 = scmp.lt.s32.totalorder %s3285_s14, %s5928_s1 }
  0x4f   :  { %p3287_p6 = scmp.ne.s32.totalorder %s3285_s14, %s3286_s15  ;;  %p3290_p8 = scmp.lt.s32.totalorder %s4908_s0, %s3286_s15 }
  0x51   :  { %p3291_p9 = por %p3290_p8, %p3289_p7 }
  0x53   :  { %p3292_p10 = pnand %p3291_p9, %p3287_p6 }
  0x55   :  { %3295 = shalt.err (!%p3292_p10)  }
  0x56   :  { %167 = dma.hbm_to_vmem [thread:$0]  %s163_s27, 16, %s165_s10, [#allocation4] }
  0x57   :  { %s169_s29 = scalar_lea.hbm %s5928_s1, %s2591_s25  ;;  %s185_s21 = scalar_lea.hbm %s5928_s1, %s2592_s28 }
  0x58   :  { %s178_s11 = sshll.u32 %s169_s29, 4  ;;  %s194_s22 = sshll.u32 %s185_s21, 4  ;;  %s179_s11 = int_to_ptr.hbm [resolvable:$true] %s178_s11  ;;  %s195_s22 = int_to_ptr.hbm [resolvable:$true] %s194_s22 }
  0x59   :  { %s3308_s23 = sshra.s32 %s179_s11, 4  ;;  %s3309_s23 = int_to_ptr.hbm [resolvable:$true] %s3308_s23 }
  0x5a   :  { %s3310_s24 = scalar_lea.hbm %s3309_s23, 1  ;;  %p3313_p12 = scmp.lt.s32.totalorder %s3309_s23, %s5928_s1 }
  0x5b   :  { %p3311_p11 = scmp.ne.s32.totalorder %s3309_s23, %s3310_s24  ;;  %p3314_p13 = scmp.lt.s32.totalorder %s4908_s0, %s3310_s24 }
  0x5d   :  { %p3315_p0 = por %p3314_p13, %p3313_p12 }
  0x5f   :  { %p3316_p1 = pnand %p3315_p0, %p3311_p11 }
  0x61   :  { %3319 = shalt.err (!%p3316_p1)  }
  0x62   :  { %183 = dma.hbm_to_vmem [thread:$0]  %s179_s11, 16, %s181_s26, [#allocation4] }
  0x63   :  { %s2593_s25 = sld [smem:[#allocation5 + $0x380]]  ;;  %s3332_s28 = sshra.s32 %s195_s22, 4  ;;  %s3333_s28 = int_to_ptr.hbm [resolvable:$true] %s3332_s28 }
  0x64   :  { %s3334_s6 = scalar_lea.hbm %s3333_s28, 1  ;;  %p3337_p3 = scmp.lt.s32.totalorder %s3333_s28, %s5928_s1 }
  0x65   :  { %p3335_p2 = scmp.ne.s32.totalorder %s3333_s28, %s3334_s6  ;;  %p3338_p4 = scmp.lt.s32.totalorder %s4908_s0, %s3334_s6 }
  0x67   :  { %p3339_p5 = por %p3338_p4, %p3337_p3 }
  0x69   :  { %p3340_p6 = pnand %p3339_p5, %p3335_p2 }
  0x6b   :  { %3343 = shalt.err (!%p3340_p6)  }
  0x6c   :  { %199 = dma.hbm_to_vmem [thread:$0]  %s195_s22, 16, %s197_s30, [#allocation4] }
  0x6d   :  { %s2594_s27 = sld [smem:[#allocation5 + $0x1]]  ;;  %s4773_s13 = smov [#allocation2 + $0x7]  }
  0x6e   :  { %s212_s14 = sshll.u32 %s4773_s13, 4  ;;  %s4774_s26 = smov [#allocation2 + $0x8]   ;;  %s213_s14 = int_to_ptr.vmem [resolvable:$true] %s212_s14 }
  0x6f   :  { %s4967_s15 = sshll.u32 %s4774_s26, 4  ;;  %s4970_s16 = sld [smem:[#allocation5 + $0x81]]  ;;  %s229_s15 = int_to_ptr.vmem [resolvable:$true] %s4967_s15 }
  0x70   :  { %s201_s19 = scalar_lea.hbm %s5928_s1, %s2593_s25  ;;  %s4775_s11 = smov [#allocation2 + $0x9]  }
  0x71   :  { %s210_s29 = sshll.u32 %s201_s19, 4  ;;  %s4975_s3 = sshll.u32 %s4775_s11, 4  ;;  %s211_s29 = int_to_ptr.hbm [resolvable:$true] %s210_s29  ;;  %s245_s3 = int_to_ptr.vmem [resolvable:$true] %s4975_s3 }
  0x72   :  { %s3356_s22 = sshra.s32 %s211_s29, 4  ;;  %s3357_s22 = int_to_ptr.hbm [resolvable:$true] %s3356_s22 }
  0x73   :  { %s217_s21 = scalar_lea.hbm %s5928_s1, %s2594_s27  ;;  %s3358_s23 = scalar_lea.hbm %s3357_s22, 1 }
  0x74   :  { %p3359_p7 = scmp.ne.s32.totalorder %s3357_s22, %s3358_s23  ;;  %p3361_p8 = scmp.lt.s32.totalorder %s3357_s22, %s5928_s1 }
  0x75   :  { %p3362_p9 = scmp.lt.s32.totalorder %s4908_s0, %s3358_s23 }
  0x77   :  { %p3363_p10 = por %p3362_p9, %p3361_p8 }
  0x79   :  { %p3364_p11 = pnand %p3363_p10, %p3359_p7 }
  0x7b   :  { %3367 = shalt.err (!%p3364_p11)  }
  0x7c   :  { %215 = dma.hbm_to_vmem [thread:$0]  %s211_s29, 16, %s213_s14, [#allocation4] }
  0x7d   :  { %s226_s10 = sshll.u32 %s217_s21, 4  ;;  %s233_s6 = scalar_lea.hbm %s5928_s1, %s4970_s16  ;;  %s227_s10 = int_to_ptr.hbm [resolvable:$true] %s226_s10 }
  0x7e   :  { %s3380_s9 = sshra.s32 %s227_s10, 4  ;;  %s3381_s9 = int_to_ptr.hbm [resolvable:$true] %s3380_s9 }
  0x7f   :  { %s3382_s12 = scalar_lea.hbm %s3381_s9, 1  ;;  %p3385_p13 = scmp.lt.s32.totalorder %s3381_s9, %s5928_s1 }
  0x80   :  { %p3383_p12 = scmp.ne.s32.totalorder %s3381_s9, %s3382_s12  ;;  %p3386_p0 = scmp.lt.s32.totalorder %s4908_s0, %s3382_s12 }
  0x82   :  { %p3387_p1 = por %p3386_p0, %p3385_p13 }
  0x84   :  { %p3388_p2 = pnand %p3387_p1, %p3383_p12 }
  0x86   :  { %3391 = shalt.err (!%p3388_p2)  }
  0x87   :  { %231 = dma.hbm_to_vmem [thread:$0]  %s227_s10, 16, %s229_s15, [#allocation4] }
  0x88   :  { %s242_s14 = sshll.u32 %s233_s6, 4  ;;  %s2596_s26 = sld [smem:[#allocation5 + $0x101]]  ;;  %s243_s14 = int_to_ptr.hbm [resolvable:$true] %s242_s14 }
  0x89   :  { %s3404_s16 = sshra.s32 %s243_s14, 4  ;;  %s3405_s16 = int_to_ptr.hbm [resolvable:$true] %s3404_s16 }
  0x8a   :  { %s3406_s17 = scalar_lea.hbm %s3405_s16, 1  ;;  %p3409_p4 = scmp.lt.s32.totalorder %s3405_s16, %s5928_s1 }
  0x8b   :  { %p3407_p3 = scmp.ne.s32.totalorder %s3405_s16, %s3406_s17  ;;  %p3410_p5 = scmp.lt.s32.totalorder %s4908_s0, %s3406_s17 }
  0x8d   :  { %p3411_p6 = por %p3410_p5, %p3409_p4 }
  0x8f   :  { %p3412_p7 = pnand %p3411_p6, %p3407_p3 }
  0x91   :  { %3415 = shalt.err (!%p3412_p7)  }
  0x92   :  { %247 = dma.hbm_to_vmem [thread:$0]  %s243_s14, 16, %s245_s3, [#allocation4] }
  0x93   :  { %s4776_s29 = smov [#allocation2 + $0xa]   ;;  %s2597_s30 = sld [smem:[#allocation5 + $0x181]] }
  0x94   :  { %s260_s11 = sshll.u32 %s4776_s29, 4  ;;  %s4777_s15 = smov [#allocation2 + $0xb]   ;;  %s261_s11 = int_to_ptr.vmem [resolvable:$true] %s260_s11 }
  0x95   :  { %s4999_s20 = sshll.u32 %s4777_s15, 4  ;;  %s2598_s21 = sld [smem:[#allocation5 + $0x201]]  ;;  %s277_s20 = int_to_ptr.vmem [resolvable:$true] %s4999_s20 }
  0x96   :  { %s249_s24 = scalar_lea.hbm %s5928_s1, %s2596_s26  ;;  %s4778_s10 = smov [#allocation2 + $0xc]  }
  0x97   :  { %s258_s2 = sshll.u32 %s249_s24, 4  ;;  %s5005_s25 = sshll.u32 %s4778_s10, 4  ;;  %s259_s2 = int_to_ptr.hbm [resolvable:$true] %s258_s2  ;;  %s293_s25 = int_to_ptr.vmem [resolvable:$true] %s5005_s25 }
  0x98   :  { %s3428_s3 = sshra.s32 %s259_s2, 4  ;;  %s3429_s3 = int_to_ptr.hbm [resolvable:$true] %s3428_s3 }
  0x99   :  { %s3430_s28 = scalar_lea.hbm %s3429_s3, 1  ;;  %p3433_p9 = scmp.lt.s32.totalorder %s3429_s3, %s5928_s1 }
  0x9a   :  { %p3431_p8 = scmp.ne.s32.totalorder %s3429_s3, %s3430_s28  ;;  %p3434_p10 = scmp.lt.s32.totalorder %s4908_s0, %s3430_s28 }
  0x9c   :  { %p3435_p11 = por %p3434_p10, %p3433_p9 }
  0x9e   :  { %p3436_p12 = pnand %p3435_p11, %p3431_p8 }
  0xa0   :  { %3439 = shalt.err (!%p3436_p12)  }
  0xa1   :  { %263 = dma.hbm_to_vmem [thread:$0]  %s259_s2, 16, %s261_s11, [#allocation4] }
  0xa2   :  { %s265_s13 = scalar_lea.hbm %s5928_s1, %s2597_s30  ;;  %s281_s17 = scalar_lea.hbm %s5928_s1, %s2598_s21 }
  0xa3   :  { %s274_s14 = sshll.u32 %s265_s13, 4  ;;  %s290_s18 = sshll.u32 %s281_s17, 4  ;;  %s275_s14 = int_to_ptr.hbm [resolvable:$true] %s274_s14  ;;  %s291_s18 = int_to_ptr.hbm [resolvable:$true] %s290_s18 }
  0xa4   :  { %s3452_s19 = sshra.s32 %s275_s14, 4  ;;  %s3453_s19 = int_to_ptr.hbm [resolvable:$true] %s3452_s19 }
  0xa5   :  { %s3454_s29 = scalar_lea.hbm %s3453_s19, 1  ;;  %p3457_p0 = scmp.lt.s32.totalorder %s3453_s19, %s5928_s1 }
  0xa6   :  { %p3455_p13 = scmp.ne.s32.totalorder %s3453_s19, %s3454_s29  ;;  %p3458_p1 = scmp.lt.s32.totalorder %s4908_s0, %s3454_s29 }
  0xa8   :  { %p3459_p2 = por %p3458_p1, %p3457_p0 }
  0xaa   :  { %p3460_p3 = pnand %p3459_p2, %p3455_p13 }
  0xac   :  { %3463 = shalt.err (!%p3460_p3)  }
  0xad   :  { %279 = dma.hbm_to_vmem [thread:$0]  %s275_s14, 16, %s277_s20, [#allocation4] }
  0xae   :  { %s2599_s30 = sld [smem:[#allocation5 + $0x281]]  ;;  %s3476_s21 = sshra.s32 %s291_s18, 4  ;;  %s3477_s21 = int_to_ptr.hbm [resolvable:$true] %s3476_s21 }
  0xaf   :  { %s3478_s22 = scalar_lea.hbm %s3477_s21, 1  ;;  %p3481_p5 = scmp.lt.s32.totalorder %s3477_s21, %s5928_s1 }
  0xb0   :  { %p3479_p4 = scmp.ne.s32.totalorder %s3477_s21, %s3478_s22  ;;  %p3482_p6 = scmp.lt.s32.totalorder %s4908_s0, %s3478_s22 }
  0xb2   :  { %p3483_p7 = por %p3482_p6, %p3481_p5 }
  0xb4   :  { %p3484_p8 = pnand %p3483_p7, %p3479_p4 }
  0xb6   :  { %3487 = shalt.err (!%p3484_p8)  }
  0xb7   :  { %295 = dma.hbm_to_vmem [thread:$0]  %s291_s18, 16, %s293_s25, [#allocation4] }
  0xb8   :  { %s2600_s2 = sld [smem:[#allocation5 + $0x301]]  ;;  %s4779_s10 = smov [#allocation2 + $0xd]  }
  0xb9   :  { %s308_s3 = sshll.u32 %s4779_s10, 4  ;;  %s4780_s20 = smov [#allocation2 + $0xe]   ;;  %s309_s3 = int_to_ptr.vmem [resolvable:$true] %s308_s3 }
  0xba   :  { %s5028_s28 = sshll.u32 %s4780_s20, 4  ;;  %s5031_s6 = sld [smem:[#allocation5 + $0x381]]  ;;  %s325_s28 = int_to_ptr.vmem [resolvable:$true] %s5028_s28 }
  0xbb   :  { %s297_s27 = scalar_lea.hbm %s5928_s1, %s2599_s30  ;;  %s4781_s14 = smov [#allocation2 + $0xf]  }
  0xbc   :  { %s306_s13 = sshll.u32 %s297_s27, 4  ;;  %s5036_s26 = sshll.u32 %s4781_s14, 4  ;;  %s307_s13 = int_to_ptr.hbm [resolvable:$true] %s306_s13  ;;  %s341_s26 = int_to_ptr.vmem [resolvable:$true] %s5036_s26 }
  0xbd   :  { %s3500_s18 = sshra.s32 %s307_s13, 4  ;;  %s3501_s18 = int_to_ptr.hbm [resolvable:$true] %s3500_s18 }
  0xbe   :  { %s313_s17 = scalar_lea.hbm %s5928_s1, %s2600_s2  ;;  %s3502_s19 = scalar_lea.hbm %s3501_s18, 1 }
  0xbf   :  { %p3503_p9 = scmp.ne.s32.totalorder %s3501_s18, %s3502_s19  ;;  %p3505_p10 = scmp.lt.s32.totalorder %s3501_s18, %s5928_s1 }
  0xc0   :  { %p3506_p11 = scmp.lt.s32.totalorder %s4908_s0, %s3502_s19 }
  0xc2   :  { %p3507_p12 = por %p3506_p11, %p3505_p10 }
  0xc4   :  { %p3508_p13 = pnand %p3507_p12, %p3503_p9 }
  0xc6   :  { %3511 = shalt.err (!%p3508_p13)  }
  0xc7   :  { %311 = dma.hbm_to_vmem [thread:$0]  %s307_s13, 16, %s309_s3, [#allocation4] }
  0xc8   :  { %s322_s11 = sshll.u32 %s313_s17, 4  ;;  %s329_s22 = scalar_lea.hbm %s5928_s1, %s5031_s6  ;;  %s323_s11 = int_to_ptr.hbm [resolvable:$true] %s322_s11 }
  0xc9   :  { %s3524_s23 = sshra.s32 %s323_s11, 4  ;;  %s3525_s23 = int_to_ptr.hbm [resolvable:$true] %s3524_s23 }
  0xca   :  { %s3526_s24 = scalar_lea.hbm %s3525_s23, 1  ;;  %p3529_p1 = scmp.lt.s32.totalorder %s3525_s23, %s5928_s1 }
  0xcb   :  { %p3527_p0 = scmp.ne.s32.totalorder %s3525_s23, %s3526_s24  ;;  %p3530_p2 = scmp.lt.s32.totalorder %s4908_s0, %s3526_s24 }
  0xcd   :  { %p3531_p3 = por %p3530_p2, %p3529_p1 }
  0xcf   :  { %p3532_p4 = pnand %p3531_p3, %p3527_p0 }
  0xd1   :  { %3535 = shalt.err (!%p3532_p4)  }
  0xd2   :  { %327 = dma.hbm_to_vmem [thread:$0]  %s323_s11, 16, %s325_s28, [#allocation4] }
  0xd3   :  { %s338_s3 = sshll.u32 %s329_s22, 4  ;;  %s2602_s20 = sld [smem:[#allocation5 + $0x2]]  ;;  %s339_s3 = int_to_ptr.hbm [resolvable:$true] %s338_s3 }
  0xd4   :  { %s3548_s6 = sshra.s32 %s339_s3, 4  ;;  %s3549_s6 = int_to_ptr.hbm [resolvable:$true] %s3548_s6 }
  0xd5   :  { %s3550_s9 = scalar_lea.hbm %s3549_s6, 1  ;;  %p3553_p6 = scmp.lt.s32.totalorder %s3549_s6, %s5928_s1 }
  0xd6   :  { %p3551_p5 = scmp.ne.s32.totalorder %s3549_s6, %s3550_s9  ;;  %p3554_p7 = scmp.lt.s32.totalorder %s4908_s0, %s3550_s9 }
  0xd8   :  { %p3555_p8 = por %p3554_p7, %p3553_p6 }
  0xda   :  { %p3556_p9 = pnand %p3555_p8, %p3551_p5 }
  0xdc   :  { %3559 = shalt.err (!%p3556_p9)  }
  0xdd   :  { %343 = dma.hbm_to_vmem [thread:$0]  %s339_s3, 16, %s341_s26, [#allocation4] }
  0xde   :  { %s4782_s13 = smov [#allocation2 + $0x10]   ;;  %s2603_s25 = sld [smem:[#allocation5 + $0x82]] }
  0xdf   :  { %s356_s14 = sshll.u32 %s4782_s13, 4  ;;  %s4783_s28 = smov [#allocation2 + $0x11]   ;;  %s357_s14 = int_to_ptr.vmem [resolvable:$true] %s356_s14 }
  0xe0   :  { %s5060_s16 = sshll.u32 %s4783_s28, 4  ;;  %s2604_s17 = sld [smem:[#allocation5 + $0x102]]  ;;  %s373_s16 = int_to_ptr.vmem [resolvable:$true] %s5060_s16 }
  0xe1   :  { %s345_s29 = scalar_lea.hbm %s5928_s1, %s2602_s20  ;;  %s4784_s11 = smov [#allocation2 + $0x12]  }
  0xe2   :  { %s354_s15 = sshll.u32 %s345_s29, 4  ;;  %s5066_s30 = sshll.u32 %s4784_s11, 4  ;;  %s355_s15 = int_to_ptr.hbm [resolvable:$true] %s354_s15  ;;  %s389_s30 = int_to_ptr.vmem [resolvable:$true] %s5066_s30 }
  0xe3   :  { %s3572_s26 = sshra.s32 %s355_s15, 4  ;;  %s3573_s26 = int_to_ptr.hbm [resolvable:$true] %s3572_s26 }
  0xe4   :  { %s3574_s21 = scalar_lea.hbm %s3573_s26, 1  ;;  %p3577_p11 = scmp.lt.s32.totalorder %s3573_s26, %s5928_s1 }
  0xe5   :  { %p3575_p10 = scmp.ne.s32.totalorder %s3573_s26, %s3574_s21  ;;  %p3578_p12 = scmp.lt.s32.totalorder %s4908_s0, %s3574_s21 }
  0xe7   :  { %p3579_p13 = por %p3578_p12, %p3577_p11 }
  0xe9   :  { %p3580_p0 = pnand %p3579_p13, %p3575_p10 }
  0xeb   :  { %3583 = shalt.err (!%p3580_p0)  }
  0xec   :  { %359 = dma.hbm_to_vmem [thread:$0]  %s355_s15, 16, %s357_s14, [#allocation4] }
  0xed   :  { %s361_s10 = scalar_lea.hbm %s5928_s1, %s2603_s25  ;;  %s377_s9 = scalar_lea.hbm %s5928_s1, %s2604_s17 }
  0xee   :  { %s370_s3 = sshll.u32 %s361_s10, 4  ;;  %s386_s12 = sshll.u32 %s377_s9, 4  ;;  %s371_s3 = int_to_ptr.hbm [resolvable:$true] %s370_s3  ;;  %s387_s12 = int_to_ptr.hbm [resolvable:$true] %s386_s12 }
  0xef   :  { %s3596_s27 = sshra.s32 %s371_s3, 4  ;;  %s3597_s27 = int_to_ptr.hbm [resolvable:$true] %s3596_s27 }
  0xf0   :  { %s3598_s13 = scalar_lea.hbm %s3597_s27, 1  ;;  %p3601_p2 = scmp.lt.s32.totalorder %s3597_s27, %s5928_s1 }
  0xf1   :  { %p3599_p1 = scmp.ne.s32.totalorder %s3597_s27, %s3598_s13  ;;  %p3602_p3 = scmp.lt.s32.totalorder %s4908_s0, %s3598_s13 }
  0xf3   :  { %p3603_p4 = por %p3602_p3, %p3601_p2 }
  0xf5   :  { %p3604_p5 = pnand %p3603_p4, %p3599_p1 }
  0xf7   :  { %3607 = shalt.err (!%p3604_p5)  }
  0xf8   :  { %375 = dma.hbm_to_vmem [thread:$0]  %s371_s3, 16, %s373_s16, [#allocation4] }
  0xf9   :  { %s2605_s25 = sld [smem:[#allocation5 + $0x182]]  ;;  %s3620_s17 = sshra.s32 %s387_s12, 4  ;;  %s3621_s17 = int_to_ptr.hbm [resolvable:$true] %s3620_s17 }
  0xfa   :  { %s3622_s18 = scalar_lea.hbm %s3621_s17, 1  ;;  %p3625_p7 = scmp.lt.s32.totalorder %s3621_s17, %s5928_s1 }
  0xfb   :  { %p3623_p6 = scmp.ne.s32.totalorder %s3621_s17, %s3622_s18  ;;  %p3626_p8 = scmp.lt.s32.totalorder %s4908_s0, %s3622_s18 }
  0xfd   :  { %p3627_p9 = por %p3626_p8, %p3625_p7 }
  0xff   :  { %p3628_p10 = pnand %p3627_p9, %p3623_p6 }
 0x101   :  { %3631 = shalt.err (!%p3628_p10)  }
 0x102   :  { %391 = dma.hbm_to_vmem [thread:$0]  %s387_s12, 16, %s389_s30, [#allocation4] }
 0x103   :  { %s2606_s15 = sld [smem:[#allocation5 + $0x202]]  ;;  %s4785_s11 = smov [#allocation2 + $0x13]  }
 0x104   :  { %s404_s26 = sshll.u32 %s4785_s11, 4  ;;  %s4786_s16 = smov [#allocation2 + $0x14]   ;;  %s405_s26 = int_to_ptr.vmem [resolvable:$true] %s404_s26 }
 0x105   :  { %s5089_s21 = sshll.u32 %s4786_s16, 4  ;;  %s5092_s22 = sld [smem:[#allocation5 + $0x282]]  ;;  %s421_s21 = int_to_ptr.vmem [resolvable:$true] %s5089_s21 }
 0x106   :  { %s393_s2 = scalar_lea.hbm %s5928_s1, %s2605_s25  ;;  %s4787_s3 = smov [#allocation2 + $0x15]  }
 0x107   :  { %s402_s10 = sshll.u32 %s393_s2, 4  ;;  %s5097_s20 = sshll.u32 %s4787_s3, 4  ;;  %s403_s10 = int_to_ptr.hbm [resolvable:$true] %s402_s10  ;;  %s437_s20 = int_to_ptr.vmem [resolvable:$true] %s5097_s20 }
 0x108   :  { %s3644_s12 = sshra.s32 %s403_s10, 4  ;;  %s3645_s12 = int_to_ptr.hbm [resolvable:$true] %s3644_s12 }
 0x109   :  { %s409_s9 = scalar_lea.hbm %s5928_s1, %s2606_s15  ;;  %s3646_s27 = scalar_lea.hbm %s3645_s12, 1 }
 0x10a   :  { %p3647_p11 = scmp.ne.s32.totalorder %s3645_s12, %s3646_s27  ;;  %p3649_p12 = scmp.lt.s32.totalorder %s3645_s12, %s5928_s1 }
 0x10b   :  { %p3650_p13 = scmp.lt.s32.totalorder %s4908_s0, %s3646_s27 }
 0x10d   :  { %p3651_p0 = por %p3650_p13, %p3649_p12 }
 0x10f   :  { %p3652_p1 = pnand %p3651_p0, %p3647_p11 }
 0x111   :  { %3655 = shalt.err (!%p3652_p1)  }
 0x112   :  { %407 = dma.hbm_to_vmem [thread:$0]  %s403_s10, 16, %s405_s26, [#allocation4] }
 0x113   :  { %s418_s14 = sshll.u32 %s409_s9, 4  ;;  %s425_s18 = scalar_lea.hbm %s5928_s1, %s5092_s22  ;;  %s419_s14 = int_to_ptr.hbm [resolvable:$true] %s418_s14 }
 0x114   :  { %s3668_s19 = sshra.s32 %s419_s14, 4  ;;  %s3669_s19 = int_to_ptr.hbm [resolvable:$true] %s3668_s19 }
 0x115   :  { %s3670_s29 = scalar_lea.hbm %s3669_s19, 1  ;;  %p3673_p3 = scmp.lt.s32.totalorder %s3669_s19, %s5928_s1 }
 0x116   :  { %p3671_p2 = scmp.ne.s32.totalorder %s3669_s19, %s3670_s29  ;;  %p3674_p4 = scmp.lt.s32.totalorder %s4908_s0, %s3670_s29 }
 0x118   :  { %p3675_p5 = por %p3674_p4, %p3673_p3 }
 0x11a   :  { %p3676_p6 = pnand %p3675_p5, %p3671_p2 }
 0x11c   :  { %3679 = shalt.err (!%p3676_p6)  }
 0x11d   :  { %423 = dma.hbm_to_vmem [thread:$0]  %s419_s14, 16, %s421_s21, [#allocation4] }
 0x11e   :  { %s434_s26 = sshll.u32 %s425_s18, 4  ;;  %s2608_s16 = sld [smem:[#allocation5 + $0x302]]  ;;  %s435_s26 = int_to_ptr.hbm [resolvable:$true] %s434_s26 }
 0x11f   :  { %s3692_s22 = sshra.s32 %s435_s26, 4  ;;  %s3693_s22 = int_to_ptr.hbm [resolvable:$true] %s3692_s22 }
 0x120   :  { %s3694_s23 = scalar_lea.hbm %s3693_s22, 1  ;;  %p3697_p8 = scmp.lt.s32.totalorder %s3693_s22, %s5928_s1 }
 0x121   :  { %p3695_p7 = scmp.ne.s32.totalorder %s3693_s22, %s3694_s23  ;;  %p3698_p9 = scmp.lt.s32.totalorder %s4908_s0, %s3694_s23 }
 0x123   :  { %p3699_p10 = por %p3698_p9, %p3697_p8 }
 0x125   :  { %p3700_p11 = pnand %p3699_p10, %p3695_p7 }
 0x127   :  { %3703 = shalt.err (!%p3700_p11)  }
 0x128   :  { %439 = dma.hbm_to_vmem [thread:$0]  %s435_s26, 16, %s437_s20, [#allocation4] }
 0x129   :  { %s4788_s10 = smov [#allocation2 + $0x16]   ;;  %s2609_s30 = sld [smem:[#allocation5 + $0x382]] }
 0x12a   :  { %s452_s3 = sshll.u32 %s4788_s10, 4  ;;  %s4789_s21 = smov [#allocation2 + $0x17]   ;;  %s453_s3 = int_to_ptr.vmem [resolvable:$true] %s452_s3 }
 0x12b   :  { %s5121_s6 = sshll.u32 %s4789_s21, 4  ;;  %s2610_s9 = sld [smem:[#allocation5 + $0x3]]  ;;  %s469_s6 = int_to_ptr.vmem [resolvable:$true] %s5121_s6 }
 0x12c   :  { %s441_s13 = scalar_lea.hbm %s5928_s1, %s2608_s16  ;;  %s4790_s14 = smov [#allocation2 + $0x18]  }
 0x12d   :  { %s450_s28 = sshll.u32 %s441_s13, 4  ;;  %s5127_s25 = sshll.u32 %s4790_s14, 4  ;;  %s451_s28 = int_to_ptr.hbm [resolvable:$true] %s450_s28  ;;  %s485_s25 = int_to_ptr.vmem [resolvable:$true] %s5127_s25 }
 0x12e   :  { %s3716_s20 = sshra.s32 %s451_s28, 4  ;;  %s3717_s20 = int_to_ptr.hbm [resolvable:$true] %s3716_s20 }
 0x12f   :  { %s3718_s17 = scalar_lea.hbm %s3717_s20, 1  ;;  %p3721_p13 = scmp.lt.s32.totalorder %s3717_s20, %s5928_s1 }
 0x130   :  { %p3719_p12 = scmp.ne.s32.totalorder %s3717_s20, %s3718_s17  ;;  %p3722_p0 = scmp.lt.s32.totalorder %s4908_s0, %s3718_s17 }
 0x132   :  { %p3723_p1 = por %p3722_p0, %p3721_p13 }
 0x134   :  { %p3724_p2 = pnand %p3723_p1, %p3719_p12 }
 0x136   :  { %3727 = shalt.err (!%p3724_p2)  }
 0x137   :  { %455 = dma.hbm_to_vmem [thread:$0]  %s451_s28, 16, %s453_s3, [#allocation4] }
 0x138   :  { %s457_s11 = scalar_lea.hbm %s5928_s1, %s2609_s30  ;;  %s473_s23 = scalar_lea.hbm %s5928_s1, %s2610_s9 }
 0x139   :  { %s466_s26 = sshll.u32 %s457_s11, 4  ;;  %s482_s24 = sshll.u32 %s473_s23, 4  ;;  %s467_s26 = int_to_ptr.hbm [resolvable:$true] %s466_s26  ;;  %s483_s24 = int_to_ptr.hbm [resolvable:$true] %s482_s24 }
 0x13a   :  { %s3740_s2 = sshra.s32 %s467_s26, 4  ;;  %s3741_s2 = int_to_ptr.hbm [resolvable:$true] %s3740_s2 }
 0x13b   :  { %s3742_s10 = scalar_lea.hbm %s3741_s2, 1  ;;  %p3745_p4 = scmp.lt.s32.totalorder %s3741_s2, %s5928_s1 }
 0x13c   :  { %p3743_p3 = scmp.ne.s32.totalorder %s3741_s2, %s3742_s10  ;;  %p3746_p5 = scmp.lt.s32.totalorder %s4908_s0, %s3742_s10 }
 0x13e   :  { %p3747_p6 = por %p3746_p5, %p3745_p4 }
 0x140   :  { %p3748_p7 = pnand %p3747_p6, %p3743_p3 }
 0x142   :  { %3751 = shalt.err (!%p3748_p7)  }
 0x143   :  { %471 = dma.hbm_to_vmem [thread:$0]  %s467_s26, 16, %s469_s6, [#allocation4] }
 0x144   :  { %s2611_s30 = sld [smem:[#allocation5 + $0x83]]  ;;  %s3764_s9 = sshra.s32 %s483_s24, 4  ;;  %s3765_s9 = int_to_ptr.hbm [resolvable:$true] %s3764_s9 }
 0x145   :  { %s3766_s12 = scalar_lea.hbm %s3765_s9, 1  ;;  %p3769_p9 = scmp.lt.s32.totalorder %s3765_s9, %s5928_s1 }
 0x146   :  { %p3767_p8 = scmp.ne.s32.totalorder %s3765_s9, %s3766_s12  ;;  %p3770_p10 = scmp.lt.s32.totalorder %s4908_s0, %s3766_s12 }
 0x148   :  { %p3771_p11 = por %p3770_p10, %p3769_p9 }
 0x14a   :  { %p3772_p12 = pnand %p3771_p11, %p3767_p8 }
 0x14c   :  { %3775 = shalt.err (!%p3772_p12)  }
 0x14d   :  { %487 = dma.hbm_to_vmem [thread:$0]  %s483_s24, 16, %s485_s25, [#allocation4] }
 0x14e   :  { %s2612_s28 = sld [smem:[#allocation5 + $0x103]]  ;;  %s4791_s14 = smov [#allocation2 + $0x19]  }
 0x14f   :  { %s500_s20 = sshll.u32 %s4791_s14, 4  ;;  %s4792_s6 = smov [#allocation2 + $0x1a]   ;;  %s501_s20 = int_to_ptr.vmem [resolvable:$true] %s500_s20 }
 0x150   :  { %s5150_s17 = sshll.u32 %s4792_s6, 4  ;;  %s5153_s18 = sld [smem:[#allocation5 + $0x183]]  ;;  %s517_s17 = int_to_ptr.vmem [resolvable:$true] %s5150_s17 }
 0x151   :  { %s489_s15 = scalar_lea.hbm %s5928_s1, %s2611_s30  ;;  %s4793_s26 = smov [#allocation2 + $0x1b]  }
 0x152   :  { %s498_s11 = sshll.u32 %s489_s15, 4  ;;  %s5158_s16 = sshll.u32 %s4793_s26, 4  ;;  %s499_s11 = int_to_ptr.hbm [resolvable:$true] %s498_s11  ;;  %s533_s16 = int_to_ptr.vmem [resolvable:$true] %s5158_s16 }
 0x153   :  { %s3788_s24 = sshra.s32 %s499_s11, 4  ;;  %s3789_s24 = int_to_ptr.hbm [resolvable:$true] %s3788_s24 }
 0x154   :  { %s505_s23 = scalar_lea.hbm %s5928_s1, %s2612_s28  ;;  %s3790_s2 = scalar_lea.hbm %s3789_s24, 1 }
 0x155   :  { %p3791_p13 = scmp.ne.s32.totalorder %s3789_s24, %s3790_s2  ;;  %p3793_p0 = scmp.lt.s32.totalorder %s3789_s24, %s5928_s1 }
 0x156   :  { %p3794_p1 = scmp.lt.s32.totalorder %s4908_s0, %s3790_s2 }
 0x158   :  { %p3795_p2 = por %p3794_p1, %p3793_p0 }
 0x15a   :  { %p3796_p3 = pnand %p3795_p2, %p3791_p13 }
 0x15c   :  { %3799 = shalt.err (!%p3796_p3)  }
 0x15d   :  { %503 = dma.hbm_to_vmem [thread:$0]  %s499_s11, 16, %s501_s20, [#allocation4] }
 0x15e   :  { %s514_s3 = sshll.u32 %s505_s23, 4  ;;  %s521_s12 = scalar_lea.hbm %s5928_s1, %s5153_s18  ;;  %s515_s3 = int_to_ptr.hbm [resolvable:$true] %s514_s3 }
 0x15f   :  { %s3812_s27 = sshra.s32 %s515_s3, 4  ;;  %s3813_s27 = int_to_ptr.hbm [resolvable:$true] %s3812_s27 }
 0x160   :  { %s3814_s13 = scalar_lea.hbm %s3813_s27, 1  ;;  %p3817_p5 = scmp.lt.s32.totalorder %s3813_s27, %s5928_s1 }
 0x161   :  { %p3815_p4 = scmp.ne.s32.totalorder %s3813_s27, %s3814_s13  ;;  %p3818_p6 = scmp.lt.s32.totalorder %s4908_s0, %s3814_s13 }
 0x163   :  { %p3819_p7 = por %p3818_p6, %p3817_p5 }
 0x165   :  { %p3820_p8 = pnand %p3819_p7, %p3815_p4 }
 0x167   :  { %3823 = shalt.err (!%p3820_p8)  }
 0x168   :  { %519 = dma.hbm_to_vmem [thread:$0]  %s515_s3, 16, %s517_s17, [#allocation4] }
 0x169   :  { %s530_s20 = sshll.u32 %s521_s12, 4  ;;  %s2614_s6 = sld [smem:[#allocation5 + $0x203]]  ;;  %s531_s20 = int_to_ptr.hbm [resolvable:$true] %s530_s20 }
 0x16a   :  { %s3836_s18 = sshra.s32 %s531_s20, 4  ;;  %s3837_s18 = int_to_ptr.hbm [resolvable:$true] %s3836_s18 }
 0x16b   :  { %s3838_s19 = scalar_lea.hbm %s3837_s18, 1  ;;  %p3841_p10 = scmp.lt.s32.totalorder %s3837_s18, %s5928_s1 }
 0x16c   :  { %p3839_p9 = scmp.ne.s32.totalorder %s3837_s18, %s3838_s19  ;;  %p3842_p11 = scmp.lt.s32.totalorder %s4908_s0, %s3838_s19 }
 0x16e   :  { %p3843_p12 = por %p3842_p11, %p3841_p10 }
 0x170   :  { %p3844_p13 = pnand %p3843_p12, %p3839_p9 }
 0x172   :  { %3847 = shalt.err (!%p3844_p13)  }
 0x173   :  { %535 = dma.hbm_to_vmem [thread:$0]  %s531_s20, 16, %s533_s16, [#allocation4] }
 0x174   :  { %s4794_s11 = smov [#allocation2 + $0x1c]   ;;  %s2615_s25 = sld [smem:[#allocation5 + $0x283]] }
 0x175   :  { %s548_s26 = sshll.u32 %s4794_s11, 4  ;;  %s4795_s17 = smov [#allocation2 + $0x1d]   ;;  %s549_s26 = int_to_ptr.vmem [resolvable:$true] %s548_s26 }
 0x176   :  { %s5182_s22 = sshll.u32 %s4795_s17, 4  ;;  %s2616_s23 = sld [smem:[#allocation5 + $0x303]]  ;;  %s565_s22 = int_to_ptr.vmem [resolvable:$true] %s5182_s22 }
 0x177   :  { %s537_s10 = scalar_lea.hbm %s5928_s1, %s2614_s6  ;;  %s4796_s3 = smov [#allocation2 + $0x1e]  }
 0x178   :  { %s546_s21 = sshll.u32 %s537_s10, 4  ;;  %s5188_s30 = sshll.u32 %s4796_s3, 4  ;;  %s547_s21 = int_to_ptr.hbm [resolvable:$true] %s546_s21  ;;  %s581_s30 = int_to_ptr.vmem [resolvable:$true] %s5188_s30 }
 0x179   :  { %s3860_s16 = sshra.s32 %s547_s21, 4  ;;  %s3861_s16 = int_to_ptr.hbm [resolvable:$true] %s3860_s16 }
 0x17a   :  { %s3862_s9 = scalar_lea.hbm %s3861_s16, 1  ;;  %p3865_p1 = scmp.lt.s32.totalorder %s3861_s16, %s5928_s1 }
 0x17b   :  { %p3863_p0 = scmp.ne.s32.totalorder %s3861_s16, %s3862_s9  ;;  %p3866_p2 = scmp.lt.s32.totalorder %s4908_s0, %s3862_s9 }
 0x17d   :  { %p3867_p3 = por %p3866_p2, %p3865_p1 }
 0x17f   :  { %p3868_p4 = pnand %p3867_p3, %p3863_p0 }
 0x181   :  { %3871 = shalt.err (!%p3868_p4)  }
 0x182   :  { %551 = dma.hbm_to_vmem [thread:$0]  %s547_s21, 16, %s549_s26, [#allocation4] }
 0x183   :  { %s553_s14 = scalar_lea.hbm %s5928_s1, %s2615_s25  ;;  %s569_s19 = scalar_lea.hbm %s5928_s1, %s2616_s23 }
 0x184   :  { %s562_s20 = sshll.u32 %s553_s14, 4  ;;  %s578_s29 = sshll.u32 %s569_s19, 4  ;;  %s563_s20 = int_to_ptr.hbm [resolvable:$true] %s562_s20  ;;  %s579_s29 = int_to_ptr.hbm [resolvable:$true] %s578_s29 }
 0x185   :  { %s3884_s15 = sshra.s32 %s563_s20, 4  ;;  %s3885_s15 = int_to_ptr.hbm [resolvable:$true] %s3884_s15 }
 0x186   :  { %s3886_s11 = scalar_lea.hbm %s3885_s15, 1  ;;  %p3889_p6 = scmp.lt.s32.totalorder %s3885_s15, %s5928_s1 }
 0x187   :  { %p3887_p5 = scmp.ne.s32.totalorder %s3885_s15, %s3886_s11  ;;  %p3890_p7 = scmp.lt.s32.totalorder %s4908_s0, %s3886_s11 }
 0x189   :  { %p3891_p8 = por %p3890_p7, %p3889_p6 }
 0x18b   :  { %p3892_p9 = pnand %p3891_p8, %p3887_p5 }
 0x18d   :  { %3895 = shalt.err (!%p3892_p9)  }
 0x18e   :  { %567 = dma.hbm_to_vmem [thread:$0]  %s563_s20, 16, %s565_s22, [#allocation4] }
 0x18f   :  { %s2617_s25 = sld [smem:[#allocation5 + $0x383]]  ;;  %s3908_s23 = sshra.s32 %s579_s29, 4  ;;  %s3909_s23 = int_to_ptr.hbm [resolvable:$true] %s3908_s23 }
 0x190   :  { %s3910_s24 = scalar_lea.hbm %s3909_s23, 1  ;;  %p3913_p11 = scmp.lt.s32.totalorder %s3909_s23, %s5928_s1 }
 0x191   :  { %p3911_p10 = scmp.ne.s32.totalorder %s3909_s23, %s3910_s24  ;;  %p3914_p12 = scmp.lt.s32.totalorder %s4908_s0, %s3910_s24 }
 0x193   :  { %p3915_p13 = por %p3914_p12, %p3913_p11 }
 0x195   :  { %p3916_p0 = pnand %p3915_p13, %p3911_p10 }
 0x197   :  { %3919 = shalt.err (!%p3916_p0)  }
 0x198   :  { %583 = dma.hbm_to_vmem [thread:$0]  %s579_s29, 16, %s581_s30, [#allocation4] }
 0x199   :  { %s2618_s21 = sld [smem:[#allocation5 + $0x4]]  ;;  %s4797_s3 = smov [#allocation2 + $0x1f]  }
 0x19a   :  { %s596_s16 = sshll.u32 %s4797_s3, 4  ;;  %s4798_s22 = smov [#allocation2 + $0x20]   ;;  %s597_s16 = int_to_ptr.vmem [resolvable:$true] %s596_s16 }
 0x19b   :  { %s5211_s9 = sshll.u32 %s4798_s22, 4  ;;  %s5214_s12 = sld [smem:[#allocation5 + $0x84]]  ;;  %s613_s9 = int_to_ptr.vmem [resolvable:$true] %s5211_s9 }
 0x19c   :  { %s585_s28 = scalar_lea.hbm %s5928_s1, %s2617_s25  ;;  %s4799_s20 = smov [#allocation2 + $0x21]  }
 0x19d   :  { %s594_s14 = sshll.u32 %s585_s28, 4  ;;  %s5219_s6 = sshll.u32 %s4799_s20, 4  ;;  %s595_s14 = int_to_ptr.hbm [resolvable:$true] %s594_s14  ;;  %s629_s6 = int_to_ptr.vmem [resolvable:$true] %s5219_s6 }
 0x19e   :  { %s3932_s29 = sshra.s32 %s595_s14, 4  ;;  %s3933_s29 = int_to_ptr.hbm [resolvable:$true] %s3932_s29 }
 0x19f   :  { %s601_s19 = scalar_lea.hbm %s5928_s1, %s2618_s21  ;;  %s3934_s15 = scalar_lea.hbm %s3933_s29, 1 }
 0x1a0   :  { %p3935_p1 = scmp.ne.s32.totalorder %s3933_s29, %s3934_s15  ;;  %p3937_p2 = scmp.lt.s32.totalorder %s3933_s29, %s5928_s1 }
 0x1a1   :  { %p3938_p3 = scmp.lt.s32.totalorder %s4908_s0, %s3934_s15 }
 0x1a3   :  { %p3939_p4 = por %p3938_p3, %p3937_p2 }
 0x1a5   :  { %p3940_p5 = pnand %p3939_p4, %p3935_p1 }
 0x1a7   :  { %3943 = shalt.err (!%p3940_p5)  }
 0x1a8   :  { %599 = dma.hbm_to_vmem [thread:$0]  %s595_s14, 16, %s597_s16, [#allocation4] }
 0x1a9   :  { %s610_s26 = sshll.u32 %s601_s19, 4  ;;  %s617_s24 = scalar_lea.hbm %s5928_s1, %s5214_s12  ;;  %s611_s26 = int_to_ptr.hbm [resolvable:$true] %s610_s26 }
 0x1aa   :  { %s3956_s2 = sshra.s32 %s611_s26, 4  ;;  %s3957_s2 = int_to_ptr.hbm [resolvable:$true] %s3956_s2 }
 0x1ab   :  { %s3958_s10 = scalar_lea.hbm %s3957_s2, 1  ;;  %p3961_p7 = scmp.lt.s32.totalorder %s3957_s2, %s5928_s1 }
 0x1ac   :  { %p3959_p6 = scmp.ne.s32.totalorder %s3957_s2, %s3958_s10  ;;  %p3962_p8 = scmp.lt.s32.totalorder %s4908_s0, %s3958_s10 }
 0x1ae   :  { %p3963_p9 = por %p3962_p8, %p3961_p7 }
 0x1b0   :  { %p3964_p10 = pnand %p3963_p9, %p3959_p6 }
 0x1b2   :  { %3967 = shalt.err (!%p3964_p10)  }
 0x1b3   :  { %615 = dma.hbm_to_vmem [thread:$0]  %s611_s26, 16, %s613_s9, [#allocation4] }
 0x1b4   :  { %s626_s16 = sshll.u32 %s617_s24, 4  ;;  %s2620_s22 = sld [smem:[#allocation5 + $0x104]]  ;;  %s627_s16 = int_to_ptr.hbm [resolvable:$true] %s626_s16 }
 0x1b5   :  { %s3980_s12 = sshra.s32 %s627_s16, 4  ;;  %s3981_s12 = int_to_ptr.hbm [resolvable:$true] %s3980_s12 }
 0x1b6   :  { %s3982_s27 = scalar_lea.hbm %s3981_s12, 1  ;;  %p3985_p12 = scmp.lt.s32.totalorder %s3981_s12, %s5928_s1 }
 0x1b7   :  { %p3983_p11 = scmp.ne.s32.totalorder %s3981_s12, %s3982_s27  ;;  %p3986_p13 = scmp.lt.s32.totalorder %s4908_s0, %s3982_s27 }
 0x1b9   :  { %p3987_p0 = por %p3986_p13, %p3985_p12 }
 0x1bb   :  { %p3988_p1 = pnand %p3987_p0, %p3983_p11 }
 0x1bd   :  { %3991 = shalt.err (!%p3988_p1)  }
 0x1be   :  { %631 = dma.hbm_to_vmem [thread:$0]  %s627_s16, 16, %s629_s6, [#allocation4] }
 0x1bf   :  { %s4800_s14 = smov [#allocation2 + $0x22]   ;;  %s2621_s30 = sld [smem:[#allocation5 + $0x184]] }
 0x1c0   :  { %s644_s20 = sshll.u32 %s4800_s14, 4  ;;  %s4801_s9 = smov [#allocation2 + $0x23]   ;;  %s645_s20 = int_to_ptr.vmem [resolvable:$true] %s644_s20 }
 0x1c1   :  { %s5243_s18 = sshll.u32 %s4801_s9, 4  ;;  %s2622_s19 = sld [smem:[#allocation5 + $0x204]]  ;;  %s661_s18 = int_to_ptr.vmem [resolvable:$true] %s5243_s18 }
 0x1c2   :  { %s633_s11 = scalar_lea.hbm %s5928_s1, %s2620_s22  ;;  %s4802_s26 = smov [#allocation2 + $0x24]  }
 0x1c3   :  { %s642_s17 = sshll.u32 %s633_s11, 4  ;;  %s5249_s25 = sshll.u32 %s4802_s26, 4  ;;  %s643_s17 = int_to_ptr.hbm [resolvable:$true] %s642_s17  ;;  %s677_s25 = int_to_ptr.vmem [resolvable:$true] %s5249_s25 }
 0x1c4   :  { %s4004_s6 = sshra.s32 %s643_s17, 4  ;;  %s4005_s6 = int_to_ptr.hbm [resolvable:$true] %s4004_s6 }
 0x1c5   :  { %s4006_s23 = scalar_lea.hbm %s4005_s6, 1  ;;  %p4009_p3 = scmp.lt.s32.totalorder %s4005_s6, %s5928_s1 }
 0x1c6   :  { %p4007_p2 = scmp.ne.s32.totalorder %s4005_s6, %s4006_s23  ;;  %p4010_p4 = scmp.lt.s32.totalorder %s4908_s0, %s4006_s23 }
 0x1c8   :  { %p4011_p5 = por %p4010_p4, %p4009_p3 }
 0x1ca   :  { %p4012_p6 = pnand %p4011_p5, %p4007_p2 }
 0x1cc   :  { %4015 = shalt.err (!%p4012_p6)  }
 0x1cd   :  { %647 = dma.hbm_to_vmem [thread:$0]  %s643_s17, 16, %s645_s20, [#allocation4] }
 0x1ce   :  { %s649_s3 = scalar_lea.hbm %s5928_s1, %s2621_s30  ;;  %s665_s27 = scalar_lea.hbm %s5928_s1, %s2622_s19 }
 0x1cf   :  { %s658_s16 = sshll.u32 %s649_s3, 4  ;;  %s674_s13 = sshll.u32 %s665_s27, 4  ;;  %s659_s16 = int_to_ptr.hbm [resolvable:$true] %s658_s16  ;;  %s675_s13 = int_to_ptr.hbm [resolvable:$true] %s674_s13 }
 0x1d0   :  { %s4028_s28 = sshra.s32 %s659_s16, 4  ;;  %s4029_s28 = int_to_ptr.hbm [resolvable:$true] %s4028_s28 }
 0x1d1   :  { %s4030_s14 = scalar_lea.hbm %s4029_s28, 1  ;;  %p4033_p8 = scmp.lt.s32.totalorder %s4029_s28, %s5928_s1 }
 0x1d2   :  { %p4031_p7 = scmp.ne.s32.totalorder %s4029_s28, %s4030_s14  ;;  %p4034_p9 = scmp.lt.s32.totalorder %s4908_s0, %s4030_s14 }
 0x1d4   :  { %p4035_p10 = por %p4034_p9, %p4033_p8 }
 0x1d6   :  { %p4036_p11 = pnand %p4035_p10, %p4031_p7 }
 0x1d8   :  { %4039 = shalt.err (!%p4036_p11)  }
 0x1d9   :  { %663 = dma.hbm_to_vmem [thread:$0]  %s659_s16, 16, %s661_s18, [#allocation4] }
 0x1da   :  { %s2623_s30 = sld [smem:[#allocation5 + $0x284]]  ;;  %s4052_s19 = sshra.s32 %s675_s13, 4  ;;  %s4053_s19 = int_to_ptr.hbm [resolvable:$true] %s4052_s19 }
 0x1db   :  { %s4054_s29 = scalar_lea.hbm %s4053_s19, 1  ;;  %p4057_p13 = scmp.lt.s32.totalorder %s4053_s19, %s5928_s1 }
 0x1dc   :  { %p4055_p12 = scmp.ne.s32.totalorder %s4053_s19, %s4054_s29  ;;  %p4058_p0 = scmp.lt.s32.totalorder %s4908_s0, %s4054_s29 }
 0x1de   :  { %p4059_p1 = por %p4058_p0, %p4057_p13 }
 0x1e0   :  { %p4060_p2 = pnand %p4059_p1, %p4055_p12 }
 0x1e2   :  { %4063 = shalt.err (!%p4060_p2)  }
 0x1e3   :  { %679 = dma.hbm_to_vmem [thread:$0]  %s675_s13, 16, %s677_s25, [#allocation4] }
 0x1e4   :  { %s2624_s17 = sld [smem:[#allocation5 + $0x304]]  ;;  %s4803_s26 = smov [#allocation2 + $0x25]  }
 0x1e5   :  { %s692_s6 = sshll.u32 %s4803_s26, 4  ;;  %s4804_s18 = smov [#allocation2 + $0x26]   ;;  %s693_s6 = int_to_ptr.vmem [resolvable:$true] %s692_s6 }
 0x1e6   :  { %s5272_s23 = sshll.u32 %s4804_s18, 4  ;;  %s5275_s24 = sld [smem:[#allocation5 + $0x384]]  ;;  %s709_s23 = int_to_ptr.vmem [resolvable:$true] %s5272_s23 }
 0x1e7   :  { %s681_s21 = scalar_lea.hbm %s5928_s1, %s2623_s30  ;;  %s4805_s16 = smov [#allocation2 + $0x27]  }
 0x1e8   :  { %s690_s3 = sshll.u32 %s681_s21, 4  ;;  %s5280_s22 = sshll.u32 %s4805_s16, 4  ;;  %s691_s3 = int_to_ptr.hbm [resolvable:$true] %s690_s3  ;;  %s725_s22 = int_to_ptr.vmem [resolvable:$true] %s5280_s22 }
 0x1e9   :  { %s4076_s13 = sshra.s32 %s691_s3, 4  ;;  %s4077_s13 = int_to_ptr.hbm [resolvable:$true] %s4076_s13 }
 0x1ea   :  { %s697_s27 = scalar_lea.hbm %s5928_s1, %s2624_s17  ;;  %s4078_s28 = scalar_lea.hbm %s4077_s13, 1 }
 0x1eb   :  { %p4079_p3 = scmp.ne.s32.totalorder %s4077_s13, %s4078_s28  ;;  %p4081_p4 = scmp.lt.s32.totalorder %s4077_s13, %s5928_s1 }
 0x1ec   :  { %p4082_p5 = scmp.lt.s32.totalorder %s4908_s0, %s4078_s28 }
 0x1ee   :  { %p4083_p6 = por %p4082_p5, %p4081_p4 }
 0x1f0   :  { %p4084_p7 = pnand %p4083_p6, %p4079_p3 }
 0x1f2   :  { %4087 = shalt.err (!%p4084_p7)  }
 0x1f3   :  { %695 = dma.hbm_to_vmem [thread:$0]  %s691_s3, 16, %s693_s6, [#allocation4] }
 0x1f4   :  { %s706_s20 = sshll.u32 %s697_s27, 4  ;;  %s713_s29 = scalar_lea.hbm %s5928_s1, %s5275_s24  ;;  %s707_s20 = int_to_ptr.hbm [resolvable:$true] %s706_s20 }
 0x1f5   :  { %s4100_s15 = sshra.s32 %s707_s20, 4  ;;  %s4101_s15 = int_to_ptr.hbm [resolvable:$true] %s4100_s15 }
 0x1f6   :  { %s4102_s11 = scalar_lea.hbm %s4101_s15, 1  ;;  %p4105_p9 = scmp.lt.s32.totalorder %s4101_s15, %s5928_s1 }
 0x1f7   :  { %p4103_p8 = scmp.ne.s32.totalorder %s4101_s15, %s4102_s11  ;;  %p4106_p10 = scmp.lt.s32.totalorder %s4908_s0, %s4102_s11 }
 0x1f9   :  { %p4107_p11 = por %p4106_p10, %p4105_p9 }
 0x1fb   :  { %p4108_p12 = pnand %p4107_p11, %p4103_p8 }
 0x1fd   :  { %4111 = shalt.err (!%p4108_p12)  }
 0x1fe   :  { %711 = dma.hbm_to_vmem [thread:$0]  %s707_s20, 16, %s709_s23, [#allocation4] }
 0x1ff   :  { %s722_s6 = sshll.u32 %s713_s29, 4  ;;  %s2626_s18 = sld [smem:[#allocation5 + $0x5]]  ;;  %s723_s6 = int_to_ptr.hbm [resolvable:$true] %s722_s6 }
 0x200   :  { %s4124_s24 = sshra.s32 %s723_s6, 4  ;;  %s4125_s24 = int_to_ptr.hbm [resolvable:$true] %s4124_s24 }
 0x201   :  { %s4126_s2 = scalar_lea.hbm %s4125_s24, 1  ;;  %p4129_p0 = scmp.lt.s32.totalorder %s4125_s24, %s5928_s1 }
 0x202   :  { %p4127_p13 = scmp.ne.s32.totalorder %s4125_s24, %s4126_s2  ;;  %p4130_p1 = scmp.lt.s32.totalorder %s4908_s0, %s4126_s2 }
 0x204   :  { %p4131_p2 = por %p4130_p1, %p4129_p0 }
 0x206   :  { %p4132_p3 = pnand %p4131_p2, %p4127_p13 }
 0x208   :  { %4135 = shalt.err (!%p4132_p3)  }
 0x209   :  { %727 = dma.hbm_to_vmem [thread:$0]  %s723_s6, 16, %s725_s22, [#allocation4] }
 0x20a   :  { %s4806_s3 = smov [#allocation2 + $0x28]   ;;  %s2627_s25 = sld [smem:[#allocation5 + $0x85]] }
 0x20b   :  { %s740_s16 = sshll.u32 %s4806_s3, 4  ;;  %s4807_s23 = smov [#allocation2 + $0x29]   ;;  %s741_s16 = int_to_ptr.vmem [resolvable:$true] %s740_s16 }
 0x20c   :  { %s5304_s12 = sshll.u32 %s4807_s23, 4  ;;  %s2628_s27 = sld [smem:[#allocation5 + $0x105]]  ;;  %s757_s12 = int_to_ptr.vmem [resolvable:$true] %s5304_s12 }
 0x20d   :  { %s729_s14 = scalar_lea.hbm %s5928_s1, %s2626_s18  ;;  %s4808_s20 = smov [#allocation2 + $0x2a]  }
 0x20e   :  { %s738_s9 = sshll.u32 %s729_s14, 4  ;;  %s5310_s30 = sshll.u32 %s4808_s20, 4  ;;  %s739_s9 = int_to_ptr.hbm [resolvable:$true] %s738_s9  ;;  %s773_s30 = int_to_ptr.vmem [resolvable:$true] %s5310_s30 }
 0x20f   :  { %s4148_s22 = sshra.s32 %s739_s9, 4  ;;  %s4149_s22 = int_to_ptr.hbm [resolvable:$true] %s4148_s22 }
 0x210   :  { %s4150_s19 = scalar_lea.hbm %s4149_s22, 1  ;;  %p4153_p5 = scmp.lt.s32.totalorder %s4149_s22, %s5928_s1 }
 0x211   :  { %p4151_p4 = scmp.ne.s32.totalorder %s4149_s22, %s4150_s19  ;;  %p4154_p6 = scmp.lt.s32.totalorder %s4908_s0, %s4150_s19 }
 0x213   :  { %p4155_p7 = por %p4154_p6, %p4153_p5 }
 0x215   :  { %p4156_p8 = pnand %p4155_p7, %p4151_p4 }
 0x217   :  { %4159 = shalt.err (!%p4156_p8)  }
 0x218   :  { %743 = dma.hbm_to_vmem [thread:$0]  %s739_s9, 16, %s741_s16, [#allocation4] }
 0x219   :  { %s745_s26 = scalar_lea.hbm %s5928_s1, %s2627_s25  ;;  %s761_s2 = scalar_lea.hbm %s5928_s1, %s2628_s27 }
 0x21a   :  { %s754_s6 = sshll.u32 %s745_s26, 4  ;;  %s770_s10 = sshll.u32 %s761_s2, 4  ;;  %s755_s6 = int_to_ptr.hbm [resolvable:$true] %s754_s6  ;;  %s771_s10 = int_to_ptr.hbm [resolvable:$true] %s770_s10 }
 0x21b   :  { %s4172_s21 = sshra.s32 %s755_s6, 4  ;;  %s4173_s21 = int_to_ptr.hbm [resolvable:$true] %s4172_s21 }
 0x21c   :  { %s4174_s3 = scalar_lea.hbm %s4173_s21, 1  ;;  %p4177_p10 = scmp.lt.s32.totalorder %s4173_s21, %s5928_s1 }
 0x21d   :  { %p4175_p9 = scmp.ne.s32.totalorder %s4173_s21, %s4174_s3  ;;  %p4178_p11 = scmp.lt.s32.totalorder %s4908_s0, %s4174_s3 }
 0x21f   :  { %p4179_p12 = por %p4178_p11, %p4177_p10 }
 0x221   :  { %p4180_p13 = pnand %p4179_p12, %p4175_p9 }
 0x223   :  { %4183 = shalt.err (!%p4180_p13)  }
 0x224   :  { %759 = dma.hbm_to_vmem [thread:$0]  %s755_s6, 16, %s757_s12, [#allocation4] }
 0x225   :  { %s2629_s25 = sld [smem:[#allocation5 + $0x185]]  ;;  %s4196_s27 = sshra.s32 %s771_s10, 4  ;;  %s4197_s27 = int_to_ptr.hbm [resolvable:$true] %s4196_s27 }
 0x226   :  { %s4198_s13 = scalar_lea.hbm %s4197_s27, 1  ;;  %p4201_p1 = scmp.lt.s32.totalorder %s4197_s27, %s5928_s1 }
 0x227   :  { %p4199_p0 = scmp.ne.s32.totalorder %s4197_s27, %s4198_s13  ;;  %p4202_p2 = scmp.lt.s32.totalorder %s4908_s0, %s4198_s13 }
 0x229   :  { %p4203_p3 = por %p4202_p2, %p4201_p1 }
 0x22b   :  { %p4204_p4 = pnand %p4203_p3, %p4199_p0 }
 0x22d   :  { %4207 = shalt.err (!%p4204_p4)  }
 0x22e   :  { %775 = dma.hbm_to_vmem [thread:$0]  %s771_s10, 16, %s773_s30, [#allocation4] }
 0x22f   :  { %s2630_s9 = sld [smem:[#allocation5 + $0x205]]  ;;  %s4809_s20 = smov [#allocation2 + $0x2b]  }
 0x230   :  { %s788_s22 = sshll.u32 %s4809_s20, 4  ;;  %s4810_s12 = smov [#allocation2 + $0x2c]   ;;  %s789_s22 = int_to_ptr.vmem [resolvable:$true] %s788_s22 }
 0x231   :  { %s5333_s19 = sshll.u32 %s4810_s12, 4  ;;  %s5336_s29 = sld [smem:[#allocation5 + $0x285]]  ;;  %s805_s19 = int_to_ptr.vmem [resolvable:$true] %s5333_s19 }
 0x232   :  { %s777_s17 = scalar_lea.hbm %s5928_s1, %s2629_s25  ;;  %s4811_s6 = smov [#allocation2 + $0x2d]  }
 0x233   :  { %s786_s26 = sshll.u32 %s777_s17, 4  ;;  %s5341_s18 = sshll.u32 %s4811_s6, 4  ;;  %s787_s26 = int_to_ptr.hbm [resolvable:$true] %s786_s26  ;;  %s821_s18 = int_to_ptr.vmem [resolvable:$true] %s5341_s18 }
 0x234   :  { %s4220_s10 = sshra.s32 %s787_s26, 4  ;;  %s4221_s10 = int_to_ptr.hbm [resolvable:$true] %s4220_s10 }
 0x235   :  { %s793_s2 = scalar_lea.hbm %s5928_s1, %s2630_s9  ;;  %s4222_s21 = scalar_lea.hbm %s4221_s10, 1 }
 0x236   :  { %p4223_p5 = scmp.ne.s32.totalorder %s4221_s10, %s4222_s21  ;;  %p4225_p6 = scmp.lt.s32.totalorder %s4221_s10, %s5928_s1 }
 0x237   :  { %p4226_p7 = scmp.lt.s32.totalorder %s4908_s0, %s4222_s21 }
 0x239   :  { %p4227_p8 = por %p4226_p7, %p4225_p6 }
 0x23b   :  { %p4228_p9 = pnand %p4227_p8, %p4223_p5 }
 0x23d   :  { %4231 = shalt.err (!%p4228_p9)  }
 0x23e   :  { %791 = dma.hbm_to_vmem [thread:$0]  %s787_s26, 16, %s789_s22, [#allocation4] }
 0x23f   :  { %s802_s16 = sshll.u32 %s793_s2, 4  ;;  %s809_s13 = scalar_lea.hbm %s5928_s1, %s5336_s29  ;;  %s803_s16 = int_to_ptr.hbm [resolvable:$true] %s802_s16 }
 0x240   :  { %s4244_s28 = sshra.s32 %s803_s16, 4  ;;  %s4245_s28 = int_to_ptr.hbm [resolvable:$true] %s4244_s28 }
 0x241   :  { %s4246_s14 = scalar_lea.hbm %s4245_s28, 1  ;;  %p4249_p11 = scmp.lt.s32.totalorder %s4245_s28, %s5928_s1 }
 0x242   :  { %p4247_p10 = scmp.ne.s32.totalorder %s4245_s28, %s4246_s14  ;;  %p4250_p12 = scmp.lt.s32.totalorder %s4908_s0, %s4246_s14 }
 0x244   :  { %p4251_p13 = por %p4250_p12, %p4249_p11 }
 0x246   :  { %p4252_p0 = pnand %p4251_p13, %p4247_p10 }
 0x248   :  { %4255 = shalt.err (!%p4252_p0)  }
 0x249   :  { %807 = dma.hbm_to_vmem [thread:$0]  %s803_s16, 16, %s805_s19, [#allocation4] }
 0x24a   :  { %s818_s22 = sshll.u32 %s809_s13, 4  ;;  %s2632_s12 = sld [smem:[#allocation5 + $0x305]]  ;;  %s819_s22 = int_to_ptr.hbm [resolvable:$true] %s818_s22 }
 0x24b   :  { %s4268_s29 = sshra.s32 %s819_s22, 4  ;;  %s4269_s29 = int_to_ptr.hbm [resolvable:$true] %s4268_s29 }
 0x24c   :  { %s4270_s15 = scalar_lea.hbm %s4269_s29, 1  ;;  %p4273_p2 = scmp.lt.s32.totalorder %s4269_s29, %s5928_s1 }
 0x24d   :  { %p4271_p1 = scmp.ne.s32.totalorder %s4269_s29, %s4270_s15  ;;  %p4274_p3 = scmp.lt.s32.totalorder %s4908_s0, %s4270_s15 }
 0x24f   :  { %p4275_p4 = por %p4274_p3, %p4273_p2 }
 0x251   :  { %p4276_p5 = pnand %p4275_p4, %p4271_p1 }
 0x253   :  { %4279 = shalt.err (!%p4276_p5)  }
 0x254   :  { %823 = dma.hbm_to_vmem [thread:$0]  %s819_s22, 16, %s821_s18, [#allocation4] }
 0x255   :  { %s4812_s26 = smov [#allocation2 + $0x2e]   ;;  %s2633_s30 = sld [smem:[#allocation5 + $0x385]] }
 0x256   :  { %s836_s6 = sshll.u32 %s4812_s26, 4  ;;  %s4813_s19 = smov [#allocation2 + $0x2f]   ;;  %s837_s6 = int_to_ptr.vmem [resolvable:$true] %s836_s6 }
 0x257   :  { %s5365_s24 = sshll.u32 %s4813_s19, 4  ;;  %s2634_s2 = sld [smem:[#allocation5 + $0x6]]  ;;  %s853_s24 = int_to_ptr.vmem [resolvable:$true] %s5365_s24 }
 0x258   :  { %s825_s3 = scalar_lea.hbm %s5928_s1, %s2632_s12  ;;  %s4814_s16 = smov [#allocation2 + $0x30]  }
 0x259   :  { %s834_s23 = sshll.u32 %s825_s3, 4  ;;  %s5371_s25 = sshll.u32 %s4814_s16, 4  ;;  %s835_s23 = int_to_ptr.hbm [resolvable:$true] %s834_s23  ;;  %s869_s25 = int_to_ptr.vmem [resolvable:$true] %s5371_s25 }
 0x25a   :  { %s4292_s18 = sshra.s32 %s835_s23, 4  ;;  %s4293_s18 = int_to_ptr.hbm [resolvable:$true] %s4292_s18 }
 0x25b   :  { %s4294_s27 = scalar_lea.hbm %s4293_s18, 1  ;;  %p4297_p7 = scmp.lt.s32.totalorder %s4293_s18, %s5928_s1 }
 0x25c   :  { %p4295_p6 = scmp.ne.s32.totalorder %s4293_s18, %s4294_s27  ;;  %p4298_p8 = scmp.lt.s32.totalorder %s4908_s0, %s4294_s27 }
 0x25e   :  { %p4299_p9 = por %p4298_p8, %p4297_p7 }
 0x260   :  { %p4300_p10 = pnand %p4299_p9, %p4295_p6 }
 0x262   :  { %4303 = shalt.err (!%p4300_p10)  }
 0x263   :  { %839 = dma.hbm_to_vmem [thread:$0]  %s835_s23, 16, %s837_s6, [#allocation4] }
 0x264   :  { %s841_s20 = scalar_lea.hbm %s5928_s1, %s2633_s30  ;;  %s857_s15 = scalar_lea.hbm %s5928_s1, %s2634_s2 }
 0x265   :  { %s850_s22 = sshll.u32 %s841_s20, 4  ;;  %s866_s11 = sshll.u32 %s857_s15, 4  ;;  %s851_s22 = int_to_ptr.hbm [resolvable:$true] %s850_s22  ;;  %s867_s11 = int_to_ptr.hbm [resolvable:$true] %s866_s11 }
 0x266   :  { %s4316_s17 = sshra.s32 %s851_s22, 4  ;;  %s4317_s17 = int_to_ptr.hbm [resolvable:$true] %s4316_s17 }
 0x267   :  { %s4318_s26 = scalar_lea.hbm %s4317_s17, 1  ;;  %p4321_p12 = scmp.lt.s32.totalorder %s4317_s17, %s5928_s1 }
 0x268   :  { %p4319_p11 = scmp.ne.s32.totalorder %s4317_s17, %s4318_s26  ;;  %p4322_p13 = scmp.lt.s32.totalorder %s4908_s0, %s4318_s26 }
 0x26a   :  { %p4323_p0 = por %p4322_p13, %p4321_p12 }
 0x26c   :  { %p4324_p1 = pnand %p4323_p0, %p4319_p11 }
 0x26e   :  { %4327 = shalt.err (!%p4324_p1)  }
 0x26f   :  { %855 = dma.hbm_to_vmem [thread:$0]  %s851_s22, 16, %s853_s24, [#allocation4] }
 0x270   :  { %s2635_s30 = sld [smem:[#allocation5 + $0x86]]  ;;  %s4340_s2 = sshra.s32 %s867_s11, 4  ;;  %s4341_s2 = int_to_ptr.hbm [resolvable:$true] %s4340_s2 }
 0x271   :  { %s4342_s10 = scalar_lea.hbm %s4341_s2, 1  ;;  %p4345_p3 = scmp.lt.s32.totalorder %s4341_s2, %s5928_s1 }
 0x272   :  { %p4343_p2 = scmp.ne.s32.totalorder %s4341_s2, %s4342_s10  ;;  %p4346_p4 = scmp.lt.s32.totalorder %s4908_s0, %s4342_s10 }
 0x274   :  { %p4347_p5 = por %p4346_p4, %p4345_p3 }
 0x276   :  { %p4348_p6 = pnand %p4347_p5, %p4343_p2 }
 0x278   :  { %4351 = shalt.err (!%p4348_p6)  }
 0x279   :  { %871 = dma.hbm_to_vmem [thread:$0]  %s867_s11, 16, %s869_s25, [#allocation4] }
 0x27a   :  { %s2636_s23 = sld [smem:[#allocation5 + $0x106]]  ;;  %s4815_s16 = smov [#allocation2 + $0x31]  }
 0x27b   :  { %s884_s18 = sshll.u32 %s4815_s16, 4  ;;  %s4816_s24 = smov [#allocation2 + $0x32]   ;;  %s885_s18 = int_to_ptr.vmem [resolvable:$true] %s884_s18 }
 0x27c   :  { %s5394_s27 = sshll.u32 %s4816_s24, 4  ;;  %s5397_s13 = sld [smem:[#allocation5 + $0x186]]  ;;  %s901_s27 = int_to_ptr.vmem [resolvable:$true] %s5394_s27 }
 0x27d   :  { %s873_s9 = scalar_lea.hbm %s5928_s1, %s2635_s30  ;;  %s4817_s22 = smov [#allocation2 + $0x33]  }
 0x27e   :  { %s882_s20 = sshll.u32 %s873_s9, 4  ;;  %s5402_s12 = sshll.u32 %s4817_s22, 4  ;;  %s883_s20 = int_to_ptr.hbm [resolvable:$true] %s882_s20  ;;  %s917_s12 = int_to_ptr.vmem [resolvable:$true] %s5402_s12 }
 0x27f   :  { %s4364_s11 = sshra.s32 %s883_s20, 4  ;;  %s4365_s11 = int_to_ptr.hbm [resolvable:$true] %s4364_s11 }
 0x280   :  { %s889_s15 = scalar_lea.hbm %s5928_s1, %s2636_s23  ;;  %s4366_s17 = scalar_lea.hbm %s4365_s11, 1 }
 0x281   :  { %p4367_p7 = scmp.ne.s32.totalorder %s4365_s11, %s4366_s17  ;;  %p4369_p8 = scmp.lt.s32.totalorder %s4365_s11, %s5928_s1 }
 0x282   :  { %p4370_p9 = scmp.lt.s32.totalorder %s4908_s0, %s4366_s17 }
 0x284   :  { %p4371_p10 = por %p4370_p9, %p4369_p8 }
 0x286   :  { %p4372_p11 = pnand %p4371_p10, %p4367_p7 }
 0x288   :  { %4375 = shalt.err (!%p4372_p11)  }
 0x289   :  { %887 = dma.hbm_to_vmem [thread:$0]  %s883_s20, 16, %s885_s18, [#allocation4] }
 0x28a   :  { %s898_s6 = sshll.u32 %s889_s15, 4  ;;  %s905_s10 = scalar_lea.hbm %s5928_s1, %s5397_s13  ;;  %s899_s6 = int_to_ptr.hbm [resolvable:$true] %s898_s6 }
 0x28b   :  { %s4388_s21 = sshra.s32 %s899_s6, 4  ;;  %s4389_s21 = int_to_ptr.hbm [resolvable:$true] %s4388_s21 }
 0x28c   :  { %s4390_s3 = scalar_lea.hbm %s4389_s21, 1  ;;  %p4393_p13 = scmp.lt.s32.totalorder %s4389_s21, %s5928_s1 }
 0x28d   :  { %p4391_p12 = scmp.ne.s32.totalorder %s4389_s21, %s4390_s3  ;;  %p4394_p0 = scmp.lt.s32.totalorder %s4908_s0, %s4390_s3 }
 0x28f   :  { %p4395_p1 = por %p4394_p0, %p4393_p13 }
 0x291   :  { %p4396_p2 = pnand %p4395_p1, %p4391_p12 }
 0x293   :  { %4399 = shalt.err (!%p4396_p2)  }
 0x294   :  { %903 = dma.hbm_to_vmem [thread:$0]  %s899_s6, 16, %s901_s27, [#allocation4] }
 0x295   :  { %s914_s18 = sshll.u32 %s905_s10, 4  ;;  %s2638_s24 = sld [smem:[#allocation5 + $0x206]]  ;;  %s915_s18 = int_to_ptr.hbm [resolvable:$true] %s914_s18 }
 0x296   :  { %s4412_s13 = sshra.s32 %s915_s18, 4  ;;  %s4413_s13 = int_to_ptr.hbm [resolvable:$true] %s4412_s13 }
 0x297   :  { %s4414_s28 = scalar_lea.hbm %s4413_s13, 1  ;;  %p4417_p4 = scmp.lt.s32.totalorder %s4413_s13, %s5928_s1 }
 0x298   :  { %p4415_p3 = scmp.ne.s32.totalorder %s4413_s13, %s4414_s28  ;;  %p4418_p5 = scmp.lt.s32.totalorder %s4908_s0, %s4414_s28 }
 0x29a   :  { %p4419_p6 = por %p4418_p5, %p4417_p4 }
 0x29c   :  { %p4420_p7 = pnand %p4419_p6, %p4415_p3 }
 0x29e   :  { %4423 = shalt.err (!%p4420_p7)  }
 0x29f   :  { %919 = dma.hbm_to_vmem [thread:$0]  %s915_s18, 16, %s917_s12, [#allocation4] }
 0x2a0   :  { %s4818_s20 = smov [#allocation2 + $0x34]   ;;  %s2639_s25 = sld [smem:[#allocation5 + $0x286]] }
 0x2a1   :  { %s932_s22 = sshll.u32 %s4818_s20, 4  ;;  %s4819_s27 = smov [#allocation2 + $0x35]   ;;  %s933_s22 = int_to_ptr.vmem [resolvable:$true] %s932_s22 }
 0x2a2   :  { %s5426_s29 = sshll.u32 %s4819_s27, 4  ;;  %s2640_s15 = sld [smem:[#allocation5 + $0x306]]  ;;  %s949_s29 = int_to_ptr.vmem [resolvable:$true] %s5426_s29 }
 0x2a3   :  { %s921_s26 = scalar_lea.hbm %s5928_s1, %s2638_s24  ;;  %s4820_s6 = smov [#allocation2 + $0x36]  }
 0x2a4   :  { %s930_s19 = sshll.u32 %s921_s26, 4  ;;  %s5432_s30 = sshll.u32 %s4820_s6, 4  ;;  %s931_s19 = int_to_ptr.hbm [resolvable:$true] %s930_s19  ;;  %s965_s30 = int_to_ptr.vmem [resolvable:$true] %s5432_s30 }
 0x2a5   :  { %s4436_s12 = sshra.s32 %s931_s19, 4  ;;  %s4437_s12 = int_to_ptr.hbm [resolvable:$true] %s4436_s12 }
 0x2a6   :  { %s4438_s2 = scalar_lea.hbm %s4437_s12, 1  ;;  %p4441_p9 = scmp.lt.s32.totalorder %s4437_s12, %s5928_s1 }
 0x2a7   :  { %p4439_p8 = scmp.ne.s32.totalorder %s4437_s12, %s4438_s2  ;;  %p4442_p10 = scmp.lt.s32.totalorder %s4908_s0, %s4438_s2 }
 0x2a9   :  { %p4443_p11 = por %p4442_p10, %p4441_p9 }
 0x2ab   :  { %p4444_p12 = pnand %p4443_p11, %p4439_p8 }
 0x2ad   :  { %4447 = shalt.err (!%p4444_p12)  }
 0x2ae   :  { %935 = dma.hbm_to_vmem [thread:$0]  %s931_s19, 16, %s933_s22, [#allocation4] }
 0x2af   :  { %s937_s16 = scalar_lea.hbm %s5928_s1, %s2639_s25  ;;  %s953_s28 = scalar_lea.hbm %s5928_s1, %s2640_s15 }
 0x2b0   :  { %s946_s18 = sshll.u32 %s937_s16, 4  ;;  %s962_s14 = sshll.u32 %s953_s28, 4  ;;  %s947_s18 = int_to_ptr.hbm [resolvable:$true] %s946_s18  ;;  %s963_s14 = int_to_ptr.hbm [resolvable:$true] %s962_s14 }
 0x2b1   :  { %s4460_s9 = sshra.s32 %s947_s18, 4  ;;  %s4461_s9 = int_to_ptr.hbm [resolvable:$true] %s4460_s9 }
 0x2b2   :  { %s4462_s20 = scalar_lea.hbm %s4461_s9, 1  ;;  %p4465_p0 = scmp.lt.s32.totalorder %s4461_s9, %s5928_s1 }
 0x2b3   :  { %p4463_p13 = scmp.ne.s32.totalorder %s4461_s9, %s4462_s20  ;;  %p4466_p1 = scmp.lt.s32.totalorder %s4908_s0, %s4462_s20 }
 0x2b5   :  { %p4467_p2 = por %p4466_p1, %p4465_p0 }
 0x2b7   :  { %p4468_p3 = pnand %p4467_p2, %p4463_p13 }
 0x2b9   :  { %4471 = shalt.err (!%p4468_p3)  }
 0x2ba   :  { %951 = dma.hbm_to_vmem [thread:$0]  %s947_s18, 16, %s949_s29, [#allocation4] }
 0x2bb   :  { %s2641_s25 = sld [smem:[#allocation5 + $0x386]]  ;;  %s4484_s15 = sshra.s32 %s963_s14, 4  ;;  %s4485_s15 = int_to_ptr.hbm [resolvable:$true] %s4484_s15 }
 0x2bc   :  { %s4486_s11 = scalar_lea.hbm %s4485_s15, 1  ;;  %p4489_p5 = scmp.lt.s32.totalorder %s4485_s15, %s5928_s1 }
 0x2bd   :  { %p4487_p4 = scmp.ne.s32.totalorder %s4485_s15, %s4486_s11  ;;  %p4490_p6 = scmp.lt.s32.totalorder %s4908_s0, %s4486_s11 }
 0x2bf   :  { %p4491_p7 = por %p4490_p6, %p4489_p5 }
 0x2c1   :  { %p4492_p8 = pnand %p4491_p7, %p4487_p4 }
 0x2c3   :  { %4495 = shalt.err (!%p4492_p8)  }
 0x2c4   :  { %967 = dma.hbm_to_vmem [thread:$0]  %s963_s14, 16, %s965_s30, [#allocation4] }
 0x2c5   :  { %s2642_s19 = sld [smem:[#allocation5 + $0x7]]  ;;  %s4821_s6 = smov [#allocation2 + $0x37]  }
 0x2c6   :  { %s980_s12 = sshll.u32 %s4821_s6, 4  ;;  %s4822_s29 = smov [#allocation2 + $0x38]   ;;  %s981_s12 = int_to_ptr.vmem [resolvable:$true] %s980_s12 }
 0x2c7   :  { %s5455_s2 = sshll.u32 %s4822_s29, 4  ;;  %s5458_s10 = sld [smem:[#allocation5 + $0x87]]  ;;  %s997_s2 = int_to_ptr.vmem [resolvable:$true] %s5455_s2 }
 0x2c8   :  { %s969_s23 = scalar_lea.hbm %s5928_s1, %s2641_s25  ;;  %s4823_s18 = smov [#allocation2 + $0x39]  }
 0x2c9   :  { %s978_s16 = sshll.u32 %s969_s23, 4  ;;  %s5463_s24 = sshll.u32 %s4823_s18, 4  ;;  %s979_s16 = int_to_ptr.hbm [resolvable:$true] %s978_s16  ;;  %s1013_s24 = int_to_ptr.vmem [resolvable:$true] %s5463_s24 }
 0x2ca   :  { %s4508_s14 = sshra.s32 %s979_s16, 4  ;;  %s4509_s14 = int_to_ptr.hbm [resolvable:$true] %s4508_s14 }
 0x2cb   :  { %s985_s28 = scalar_lea.hbm %s5928_s1, %s2642_s19  ;;  %s4510_s9 = scalar_lea.hbm %s4509_s14, 1 }
 0x2cc   :  { %p4511_p9 = scmp.ne.s32.totalorder %s4509_s14, %s4510_s9  ;;  %p4513_p10 = scmp.lt.s32.totalorder %s4509_s14, %s5928_s1 }
 0x2cd   :  { %p4514_p11 = scmp.lt.s32.totalorder %s4908_s0, %s4510_s9 }
 0x2cf   :  { %p4515_p12 = por %p4514_p11, %p4513_p10 }
 0x2d1   :  { %p4516_p13 = pnand %p4515_p12, %p4511_p9 }
 0x2d3   :  { %4519 = shalt.err (!%p4516_p13)  }
 0x2d4   :  { %983 = dma.hbm_to_vmem [thread:$0]  %s979_s16, 16, %s981_s12, [#allocation4] }
 0x2d5   :  { %s994_s22 = sshll.u32 %s985_s28, 4  ;;  %s1001_s11 = scalar_lea.hbm %s5928_s1, %s5458_s10  ;;  %s995_s22 = int_to_ptr.hbm [resolvable:$true] %s994_s22 }
 0x2d6   :  { %s4532_s17 = sshra.s32 %s995_s22, 4  ;;  %s4533_s17 = int_to_ptr.hbm [resolvable:$true] %s4532_s17 }
 0x2d7   :  { %s4534_s26 = scalar_lea.hbm %s4533_s17, 1  ;;  %p4537_p1 = scmp.lt.s32.totalorder %s4533_s17, %s5928_s1 }
 0x2d8   :  { %p4535_p0 = scmp.ne.s32.totalorder %s4533_s17, %s4534_s26  ;;  %p4538_p2 = scmp.lt.s32.totalorder %s4908_s0, %s4534_s26 }
 0x2da   :  { %p4539_p3 = por %p4538_p2, %p4537_p1 }
 0x2dc   :  { %p4540_p4 = pnand %p4539_p3, %p4535_p0 }
 0x2de   :  { %4543 = shalt.err (!%p4540_p4)  }
 0x2df   :  { %999 = dma.hbm_to_vmem [thread:$0]  %s995_s22, 16, %s997_s2, [#allocation4] }
 0x2e0   :  { %s1010_s12 = sshll.u32 %s1001_s11, 4  ;;  %s2644_s29 = sld [smem:[#allocation5 + $0x107]]  ;;  %s1011_s12 = int_to_ptr.hbm [resolvable:$true] %s1010_s12 }
 0x2e1   :  { %s4556_s10 = sshra.s32 %s1011_s12, 4  ;;  %s4557_s10 = int_to_ptr.hbm [resolvable:$true] %s4556_s10 }
 0x2e2   :  { %s4558_s21 = scalar_lea.hbm %s4557_s10, 1  ;;  %p4561_p6 = scmp.lt.s32.totalorder %s4557_s10, %s5928_s1 }
 0x2e3   :  { %p4559_p5 = scmp.ne.s32.totalorder %s4557_s10, %s4558_s21  ;;  %p4562_p7 = scmp.lt.s32.totalorder %s4908_s0, %s4558_s21 }
 0x2e5   :  { %p4563_p8 = por %p4562_p7, %p4561_p6 }
 0x2e7   :  { %p4564_p9 = pnand %p4563_p8, %p4559_p5 }
 0x2e9   :  { %4567 = shalt.err (!%p4564_p9)  }
 0x2ea   :  { %1015 = dma.hbm_to_vmem [thread:$0]  %s1011_s12, 16, %s1013_s24, [#allocation4] }
 0x2eb   :  { %s4824_s16 = smov [#allocation2 + $0x3a]   ;;  %s2645_s30 = sld [smem:[#allocation5 + $0x187]] }
 0x2ec   :  { %s1028_s18 = sshll.u32 %s4824_s16, 4  ;;  %s4825_s2 = smov [#allocation2 + $0x3b]   ;;  %s1029_s18 = int_to_ptr.vmem [resolvable:$true] %s1028_s18 }
 0x2ed   :  { %s5487_s13 = sshll.u32 %s4825_s2, 4  ;;  %s2646_s28 = sld [smem:[#allocation5 + $0x207]]  ;;  %s1045_s13 = int_to_ptr.vmem [resolvable:$true] %s5487_s13 }
 0x2ee   :  { %s1017_s20 = scalar_lea.hbm %s5928_s1, %s2644_s29  ;;  %s4826_s22 = smov [#allocation2 + $0x3c]  }
 0x2ef   :  { %s1026_s27 = sshll.u32 %s1017_s20, 4  ;;  %s5493_s25 = sshll.u32 %s4826_s22, 4  ;;  %s1027_s27 = int_to_ptr.hbm [resolvable:$true] %s1026_s27  ;;  %s1061_s25 = int_to_ptr.vmem [resolvable:$true] %s5493_s25 }
 0x2f0   :  { %s4580_s24 = sshra.s32 %s1027_s27, 4  ;;  %s4581_s24 = int_to_ptr.hbm [resolvable:$true] %s4580_s24 }
 0x2f1   :  { %s4582_s15 = scalar_lea.hbm %s4581_s24, 1  ;;  %p4585_p11 = scmp.lt.s32.totalorder %s4581_s24, %s5928_s1 }
 0x2f2   :  { %p4583_p10 = scmp.ne.s32.totalorder %s4581_s24, %s4582_s15  ;;  %p4586_p12 = scmp.lt.s32.totalorder %s4908_s0, %s4582_s15 }
 0x2f4   :  { %p4587_p13 = por %p4586_p12, %p4585_p11 }
 0x2f6   :  { %p4588_p0 = pnand %p4587_p13, %p4583_p10 }
 0x2f8   :  { %4591 = shalt.err (!%p4588_p0)  }
 0x2f9   :  { %1031 = dma.hbm_to_vmem [thread:$0]  %s1027_s27, 16, %s1029_s18, [#allocation4] }
 0x2fa   :  { %s1033_s6 = scalar_lea.hbm %s5928_s1, %s2645_s30  ;;  %s1049_s21 = scalar_lea.hbm %s5928_s1, %s2646_s28 }
 0x2fb   :  { %s1042_s12 = sshll.u32 %s1033_s6, 4  ;;  %s1058_s3 = sshll.u32 %s1049_s21, 4  ;;  %s1043_s12 = int_to_ptr.hbm [resolvable:$true] %s1042_s12  ;;  %s1059_s3 = int_to_ptr.hbm [resolvable:$true] %s1058_s3 }
 0x2fc   :  { %s4604_s23 = sshra.s32 %s1043_s12, 4  ;;  %s4605_s23 = int_to_ptr.hbm [resolvable:$true] %s4604_s23 }
 0x2fd   :  { %s4606_s16 = scalar_lea.hbm %s4605_s23, 1  ;;  %p4609_p2 = scmp.lt.s32.totalorder %s4605_s23, %s5928_s1 }
 0x2fe   :  { %p4607_p1 = scmp.ne.s32.totalorder %s4605_s23, %s4606_s16  ;;  %p4610_p3 = scmp.lt.s32.totalorder %s4908_s0, %s4606_s16 }
 0x300   :  { %p4611_p4 = por %p4610_p3, %p4609_p2 }
 0x302   :  { %p4612_p5 = pnand %p4611_p4, %p4607_p1 }
 0x304   :  { %4615 = shalt.err (!%p4612_p5)  }
 0x305   :  { %1047 = dma.hbm_to_vmem [thread:$0]  %s1043_s12, 16, %s1045_s13, [#allocation4] }
 0x306   :  { %s2647_s30 = sld [smem:[#allocation5 + $0x287]]  ;;  %s4628_s28 = sshra.s32 %s1059_s3, 4  ;;  %s4629_s28 = int_to_ptr.hbm [resolvable:$true] %s4628_s28 }
 0x307   :  { %s4630_s14 = scalar_lea.hbm %s4629_s28, 1  ;;  %p4633_p7 = scmp.lt.s32.totalorder %s4629_s28, %s5928_s1 }
 0x308   :  { %p4631_p6 = scmp.ne.s32.totalorder %s4629_s28, %s4630_s14  ;;  %p4634_p8 = scmp.lt.s32.totalorder %s4908_s0, %s4630_s14 }
 0x30a   :  { %p4635_p9 = por %p4634_p8, %p4633_p7 }
 0x30c   :  { %p4636_p10 = pnand %p4635_p9, %p4631_p6 }
 0x30e   :  { %4639 = shalt.err (!%p4636_p10)  }
 0x30f   :  { %1063 = dma.hbm_to_vmem [thread:$0]  %s1059_s3, 16, %s1061_s25, [#allocation4] }
 0x310   :  { %s2648_s27 = sld [smem:[#allocation5 + $0x307]]  ;;  %s4827_s22 = smov [#allocation2 + $0x3d]  }
 0x311   :  { %s1076_s24 = sshll.u32 %s4827_s22, 4  ;;  %s4828_s13 = smov [#allocation2 + $0x3e]   ;;  %s1077_s24 = int_to_ptr.vmem [resolvable:$true] %s1076_s24 }
 0x312   :  { %s5516_s15 = sshll.u32 %s4828_s13, 4  ;;  %s5519_s11 = sld [smem:[#allocation5 + $0x387]]  ;;  %s1093_s15 = int_to_ptr.vmem [resolvable:$true] %s5516_s15 }
 0x313   :  { %s1065_s19 = scalar_lea.hbm %s5928_s1, %s2647_s30  ;;  %s4829_s12 = smov [#allocation2 + $0x3f]  }
 0x314   :  { %s1074_s6 = sshll.u32 %s1065_s19, 4  ;;  %s5524_s29 = sshll.u32 %s4829_s12, 4  ;;  %s1075_s6 = int_to_ptr.hbm [resolvable:$true] %s1074_s6  ;;  %s1109_s29 = int_to_ptr.vmem [resolvable:$true] %s5524_s29 }
 0x315   :  { %s4652_s3 = sshra.s32 %s1075_s6, 4  ;;  %s4653_s3 = int_to_ptr.hbm [resolvable:$true] %s4652_s3 }
 0x316   :  { %s1081_s21 = scalar_lea.hbm %s5928_s1, %s2648_s27  ;;  %s4654_s23 = scalar_lea.hbm %s4653_s3, 1 }
 0x317   :  { %p4655_p11 = scmp.ne.s32.totalorder %s4653_s3, %s4654_s23  ;;  %p4657_p12 = scmp.lt.s32.totalorder %s4653_s3, %s5928_s1 }
 0x318   :  { %p4658_p13 = scmp.lt.s32.totalorder %s4908_s0, %s4654_s23 }
 0x31a   :  { %p4659_p0 = por %p4658_p13, %p4657_p12 }
 0x31c   :  { %p4660_p1 = pnand %p4659_p0, %p4655_p11 }
 0x31e   :  { %4663 = shalt.err (!%p4660_p1)  }
 0x31f   :  { %1079 = dma.hbm_to_vmem [thread:$0]  %s1075_s6, 16, %s1077_s24, [#allocation4] }
 0x320   :  { %s1090_s18 = sshll.u32 %s1081_s21, 4  ;;  %s1097_s14 = scalar_lea.hbm %s5928_s1, %s5519_s11  ;;  %s1091_s18 = int_to_ptr.hbm [resolvable:$true] %s1090_s18 }
 0x321   :  { %s4676_s9 = sshra.s32 %s1091_s18, 4  ;;  %s4677_s9 = int_to_ptr.hbm [resolvable:$true] %s4676_s9 }
 0x322   :  { %s4678_s20 = scalar_lea.hbm %s4677_s9, 1  ;;  %p4681_p3 = scmp.lt.s32.totalorder %s4677_s9, %s5928_s1 }
 0x323   :  { %p4679_p2 = scmp.ne.s32.totalorder %s4677_s9, %s4678_s20  ;;  %p4682_p4 = scmp.lt.s32.totalorder %s4908_s0, %s4678_s20 }
 0x325   :  { %p4683_p5 = por %p4682_p4, %p4681_p3 }
 0x327   :  { %p4684_p6 = pnand %p4683_p5, %p4679_p2 }
 0x329   :  { %4687 = shalt.err (!%p4684_p6)  }
 0x32a   :  { %1095 = dma.hbm_to_vmem [thread:$0]  %s1091_s18, 16, %s1093_s15, [#allocation4] }
 0x32b   :  { %s1106_s24 = sshll.u32 %s1097_s14, 4  ;;  %s1107_s24 = int_to_ptr.hbm [resolvable:$true] %s1106_s24 }
 0x32c   :  { %s4700_s13 = sshra.s32 %s1107_s24, 4  ;;  %s4701_s13 = int_to_ptr.hbm [resolvable:$true] %s4700_s13 }
 0x32d   :  { %s4702_s11 = scalar_lea.hbm %s4701_s13, 1  ;;  %p4705_p8 = scmp.lt.s32.totalorder %s4701_s13, %s5928_s1 }
 0x32e   :  { %p4703_p7 = scmp.ne.s32.totalorder %s4701_s13, %s4702_s11  ;;  %p4706_p9 = scmp.lt.s32.totalorder %s4908_s0, %s4702_s11 }
 0x330   :  { %p4707_p10 = por %p4706_p9, %p4705_p8 }
 0x332   :  { %p4708_p11 = pnand %p4707_p10, %p4703_p7 }
 0x334   :  { %4711 = shalt.err (!%p4708_p11)  }
 0x335   :  { %1111 = dma.hbm_to_vmem [thread:$0]  %s1107_s24, 16, %s1109_s29, [#allocation4] }
 0x336   :  { %4754 = dma.done.wait [#allocation4], 1024 }
 0x337   :  { %4755 = vsyncadd [#allocation4], 4294966272  ;;  %v2736_v0 = vld [vmem:[#allocation9 + $0xa8] sm:$0xf]  ;;  %v2913_v1 = vld [vmem:[#allocation9 + $0xb0] sm:$0xf0] }
 0x338   :  { %v2832_v2 = vld [vmem:[#allocation10 + $0xa8] sm:$0xf]  ;;  %v2737_v3 = vor.u32 %v2913_v1, %v2736_v0  ;;  %v2937_v4 = vld [vmem:[#allocation10 + $0xb0] sm:$0xf0]  ;;  %v2724_v5 = vld [vmem:[#allocation9 + $0x90] sm:$0xf] }
 0x339   :  { %v2910_v6 = vld [vmem:[#allocation9 + $0x98] sm:$0xf0]  ;;  %v5548_v7 = vor.u32 %v2937_v4, %v2832_v2  ;;  %v2820_v8 = vld [vmem:[#allocation10 + $0x90] sm:$0xf]  ;;  %v2712_v12 = vld [vmem:[#allocation9 + $0x78] sm:$0xf] }
 0x33a   :  { %v2934_v9 = vld [vmem:[#allocation10 + $0x98] sm:$0xf0]  ;;  %1421 = vmatpush.bf16.msra.mxu0 %v2737_v3  ;;  %v2725_v10 = vor.u32 %v2910_v6, %v2724_v5  ;;  %v2907_v13 = vld [vmem:[#allocation9 + $0x80] sm:$0xf0]  ;;  %v2808_v14 = vld [vmem:[#allocation10 + $0x78] sm:$0xf] }
 0x33b   :  { %1699 = vmatpush.bf16.msra.mxu3 %v5548_v7  ;;  %v5551_v11 = vor.u32 %v2934_v9, %v2820_v8  ;;  %v2931_v15 = vld [vmem:[#allocation10 + $0x80] sm:$0xf0]  ;;  %v2713_v16 = vor.u32 %v2907_v13, %v2712_v12  ;;  %v2700_v18 = vld [vmem:[#allocation9 + $0x60] sm:$0xf]  ;;  %v2904_v19 = vld [vmem:[#allocation9 + $0x68] sm:$0xf0] }
 0x33c   :  { %v5554_v17 = vor.u32 %v2931_v15, %v2808_v14  ;;  %v2796_v20 = vld [vmem:[#allocation10 + $0x60] sm:$0xf]  ;;  %v2928_v21 = vld [vmem:[#allocation10 + $0x68] sm:$0xf0]  ;;  %v2701_v22 = vor.u32 %v2904_v19, %v2700_v18  ;;  %v2688_v24 = vld [vmem:[#allocation9 + $0x48] sm:$0xf] }
 0x33d   :  { %v5557_v23 = vor.u32 %v2928_v21, %v2796_v20  ;;  %v2901_v25 = vld [vmem:[#allocation9 + $0x50] sm:$0xf0]  ;;  %v2912_v26 = vld [vmem:[#allocation9 + $0xac] sm:$0xf]  ;;  %v2784_v27 = vld [vmem:[#allocation10 + $0x48] sm:$0xf] }
 0x33e   :  { %1422 = vmatpush.bf16.msra.mxu0 %v2725_v10  ;;  %v2925_v28 = vld [vmem:[#allocation10 + $0x50] sm:$0xf0]  ;;  %v2738_v29 = vld [vmem:[#allocation9 + $0xb4] sm:$0xf0]  ;;  %v2726_v32 = vld [vmem:[#allocation9 + $0x9c] sm:$0xf0]  ;;  %v2689_v33 = vor.u32 %v2901_v25, %v2688_v24 }
 0x33f   :  { %1700 = vmatpush.bf16.msra.mxu3 %v5551_v11  ;;  %v2741_v30 = vor.u32 %v2912_v26, %v2738_v29  ;;  %v2909_v31 = vld [vmem:[#allocation9 + $0x94] sm:$0xf]  ;;  %v5560_v34 = vor.u32 %v2925_v28, %v2784_v27  ;;  %v2676_v35 = vld [vmem:[#allocation9 + $0x30] sm:$0xf]  ;;  %v2898_v36 = vld [vmem:[#allocation9 + $0x38] sm:$0xf0] }
 0x340   :  { %v2772_v37 = vld [vmem:[#allocation10 + $0x30] sm:$0xf]  ;;  %v2729_v38 = vor.u32 %v2909_v31, %v2726_v32  ;;  %v2922_v39 = vld [vmem:[#allocation10 + $0x38] sm:$0xf0]  ;;  %v2714_v41 = vld [vmem:[#allocation9 + $0x84] sm:$0xf0]  ;;  %v2677_v42 = vor.u32 %v2898_v36, %v2676_v35 }
 0x341   :  { %1450 = vmatpush.bf16.msra.mxu1 %v2741_v30  ;;  %v2906_v40 = vld [vmem:[#allocation9 + $0x7c] sm:$0xf]  ;;  %v2664_v43 = vld [vmem:[#allocation9 + $0x18] sm:$0xf]  ;;  %v2895_v44 = vld [vmem:[#allocation9 + $0x20] sm:$0xf0]  ;;  %v5563_v45 = vor.u32 %v2922_v39, %v2772_v37 }
 0x342   :  { %1423 = vmatpush.bf16.msra.mxu0 %v2713_v16  ;;  %v2760_v46 = vld [vmem:[#allocation10 + $0x18] sm:$0xf]  ;;  %v2919_v47 = vld [vmem:[#allocation10 + $0x20] sm:$0xf0]  ;;  %v2717_v48 = vor.u32 %v2906_v40, %v2714_v41  ;;  %v2702_v50 = vld [vmem:[#allocation9 + $0x6c] sm:$0xf0]  ;;  %v2665_v56 = vor.u32 %v2895_v44, %v2664_v43 }
 0x343   :  { %1701 = vmatpush.bf16.msra.mxu3 %v5554_v17  ;;  %v2903_v49 = vld [vmem:[#allocation9 + $0x64] sm:$0xf]  ;;  %v2744_v51 = vld [vmem:[#allocation9 + $0xb0] sm:$0xf]  ;;  %v2914_v52 = vld [vmem:[#allocation9 + $0xb8] sm:$0xf0]  ;;  %v5566_v58 = vor.u32 %v2919_v47, %v2760_v46 }
 0x344   :  { %v2652_v53 = vld [vmem:[#allocation9] sm:$0xf]  ;;  %v2892_v54 = vld [vmem:[#allocation9 + $0x8] sm:$0xf0]  ;;  %v2745_v55 = vor.u32 %v2914_v52, %v2744_v51  ;;  %v2834_v61 = vld [vmem:[#allocation10 + $0xb4] sm:$0xf0]  ;;  %v2705_v62 = vor.u32 %v2903_v49, %v2702_v50 }
 0x345   :  { %1451 = vmatpush.bf16.msra.mxu1 %v2729_v38  ;;  %v2748_v57 = vld [vmem:[#allocation10] sm:$0xf]  ;;  %v2916_v59 = vld [vmem:[#allocation10 + $0x8] sm:$0xf0]  ;;  %v2840_v63 = vld [vmem:[#allocation10 + $0xb0] sm:$0xf]  ;;  %v2653_v5 = vor.u32 %v2892_v54, %v2652_v53 }
 0x346   :  { %1424 = vmatpush.bf16.msra.mxu0 %v2701_v22  ;;  %v2936_v60 = vld [vmem:[#allocation10 + $0xac] sm:$0xf]  ;;  %v2938_v0 = vld [vmem:[#allocation10 + $0xb8] sm:$0xf0]  ;;  %1479 = vmatpush.bf16.msra.mxu2 %v2745_v55  ;;  %v2732_v1 = vld [vmem:[#allocation9 + $0x98] sm:$0xf]  ;;  %v5569_v10 = vor.u32 %v2916_v59, %v2748_v57 }
 0x347   :  { %1702 = vmatpush.bf16.msra.mxu3 %v5557_v23  ;;  %v2900_v2 = vld [vmem:[#allocation9 + $0x4c] sm:$0xf]  ;;  %v2690_v3 = vld [vmem:[#allocation9 + $0x54] sm:$0xf0]  ;;  %v2911_v4 = vld [vmem:[#allocation9 + $0xa0] sm:$0xf0]  ;;  %v5571_v12 = vor.u32 %v2938_v0, %v2840_v63  ;;  %v5573_v15 = vor.u32 %v2936_v60, %v2834_v61 }
 0x348   :  { %v1241_v6 = vld [vmem:[#allocation2] sm:$0xff]  ;;  %v1242_v8 = vld [vmem:[#allocation2 + $0x8] sm:$0xff]  ;;  %v2733_v9 = vor.u32 %v2911_v4, %v2732_v1  ;;  %v2933_v13 = vld [vmem:[#allocation10 + $0x94] sm:$0xf]  ;;  %v2693_v18 = vor.u32 %v2900_v2, %v2690_v3  ;;  %v4830_v40 = vmov 0   ;;  %s4831_s29 = smov [#allocation13]  }
 0x349   :  { %1452 = vmatpush.bf16.msra.mxu1 %v2717_v48  ;;  %v2828_v14 = vld [vmem:[#allocation10 + $0x98] sm:$0xf]  ;;  %v2935_v16 = vld [vmem:[#allocation10 + $0xa0] sm:$0xf0]  ;;  %v2720_v19 = vld [vmem:[#allocation9 + $0x80] sm:$0xf]  ;;  %v5575_v21 = vpack.c.bf16 %v1242_v8, %v1241_v6 }
 0x34a   :  { %1425 = vmatpush.bf16.msra.mxu0 %v2689_v33  ;;  %1480 = vmatpush.bf16.msra.mxu2 %v2733_v9  ;;  %v2908_v20 = vld [vmem:[#allocation9 + $0x88] sm:$0xf0]  ;;  %v2822_v22 = vld [vmem:[#allocation10 + $0x9c] sm:$0xf0]  ;;  %v2897_v24 = vld [vmem:[#allocation9 + $0x34] sm:$0xf]  ;;  %v5579_v28 = vor.u32 %v2935_v16, %v2828_v14 }
 0x34b   :  { %1703 = vmatpush.bf16.msra.mxu3 %v5560_v34  ;;  %v2678_v25 = vld [vmem:[#allocation9 + $0x3c] sm:$0xf0]  ;;  %v2721_v26 = vor.u32 %v2908_v20, %v2720_v19  ;;  %v2930_v27 = vld [vmem:[#allocation10 + $0x7c] sm:$0xf]  ;;  %v5582_v30 = vor.u32 %v2933_v13, %v2822_v22  ;;  %v2932_v31 = vld [vmem:[#allocation10 + $0x88] sm:$0xf0] }
 0x34c   :  { %v2816_v29 = vld [vmem:[#allocation10 + $0x80] sm:$0xf]  ;;  %v2681_v32 = vor.u32 %v2897_v24, %v2678_v25  ;;  %v2708_v33 = vld [vmem:[#allocation9 + $0x68] sm:$0xf]  ;;  %v2905_v35 = vld [vmem:[#allocation9 + $0x70] sm:$0xf0] }
 0x34d   :  { %1453 = vmatpush.bf16.msra.mxu1 %v2705_v62  ;;  %v2810_v36 = vld [vmem:[#allocation10 + $0x84] sm:$0xf0]  ;;  %v2894_v37 = vld [vmem:[#allocation9 + $0x1c] sm:$0xf]  ;;  %v2709_v39 = vor.u32 %v2905_v35, %v2708_v33  ;;  %v2696_v41 = vld [vmem:[#allocation9 + $0x50] sm:$0xf]  ;;  %v5587_v43 = vor.u32 %v2932_v31, %v2816_v29 }
 0x34e   :  { %1426 = vmatpush.bf16.msra.mxu0 %v2677_v42  ;;  %v2666_v38 = vld [vmem:[#allocation9 + $0x24] sm:$0xf0]  ;;  %1481 = vmatpush.bf16.msra.mxu2 %v2721_v26  ;;  %v2902_v42 = vld [vmem:[#allocation9 + $0x58] sm:$0xf0]  ;;  %v5590_v44 = vor.u32 %v2930_v27, %v2810_v36  ;;  %v2927_v46 = vld [vmem:[#allocation10 + $0x64] sm:$0xf] }
 0x34f   :  { %1704 = vmatpush.bf16.msra.mxu3 %v5563_v45  ;;  %v2804_v47 = vld [vmem:[#allocation10 + $0x68] sm:$0xf]  ;;  %v2929_v48 = vld [vmem:[#allocation10 + $0x70] sm:$0xf0]  ;;  %v2669_v49 = vor.u32 %v2894_v37, %v2666_v38  ;;  %v2798_v50 = vld [vmem:[#allocation10 + $0x6c] sm:$0xf0]  ;;  %v2697_v53 = vor.u32 %v2902_v42, %v2696_v41 }
 0x350   :  { %v2891_v51 = vld [vmem:[#allocation9 + $0x4] sm:$0xf]  ;;  %v2654_v52 = vld [vmem:[#allocation9 + $0xc] sm:$0xf0]  ;;  %v2684_v54 = vld [vmem:[#allocation9 + $0x38] sm:$0xf]  ;;  %v5596_v57 = vor.u32 %v2927_v46, %v2798_v50 }
 0x351   :  { %1454 = vmatpush.bf16.msra.mxu1 %v2693_v18  ;;  %v2899_v55 = vld [vmem:[#allocation9 + $0x40] sm:$0xf0]  ;;  %v2657_v59 = vor.u32 %v2891_v51, %v2654_v52  ;;  %v2792_v60 = vld [vmem:[#allocation10 + $0x50] sm:$0xf]  ;;  %v2926_v61 = vld [vmem:[#allocation10 + $0x58] sm:$0xf0] }
 0x352   :  { %1427 = vmatpush.bf16.msra.mxu0 %v2665_v56  ;;  %1482 = vmatpush.bf16.msra.mxu2 %v2709_v39  ;;  %v5593_v56 = vor.u32 %v2929_v48, %v2804_v47  ;;  %v2924_v62 = vld [vmem:[#allocation10 + $0x4c] sm:$0xf]  ;;  %v2786_v63 = vld [vmem:[#allocation10 + $0x54] sm:$0xf0]  ;;  %v1243_v0 = vld [vmem:[#allocation2 + $0x10] sm:$0xff]  ;;  %v2685_v1 = vor.u32 %v2899_v55, %v2684_v54  ;;  %s2503_s25 = sshll.u32 %s4831_s29, 4  ;;  %s2504_s25 = int_to_ptr.vmem [resolvable:$true] %s2503_s25 }
 0x353   :  { %1705 = vmatpush.bf16.msra.mxu3 %v5566_v58  ;;  %v1244_v2 = vld [vmem:[#allocation2 + $0x18] sm:$0xff]  ;;  %v2672_v3 = vld [vmem:[#allocation9 + $0x20] sm:$0xf]  ;;  %v2896_v4 = vld [vmem:[#allocation9 + $0x28] sm:$0xf0]  ;;  %v5602_v6 = vor.u32 %v2924_v62, %v2786_v63  ;;  %s2505_s3 = sshll.u32 %s5935_s8, 4  ;;  %s2506_s3 = int_to_ptr.hbm [resolvable:$true] %s2505_s3 }
 0x354   :  { %v2780_v8 = vld [vmem:[#allocation10 + $0x38] sm:$0xf]  ;;  %v2923_v9 = vld [vmem:[#allocation10 + $0x40] sm:$0xf0]  ;;  %v1250_v13 = vpack.c.bf16 %v1244_v2, %v1243_v0  ;;  %v2921_v14 = vld [vmem:[#allocation10 + $0x34] sm:$0xf]  ;;  %v2673_v18 = vor.u32 %v2896_v4, %v2672_v3 }
 0x355   :  { %1455 = vmatpush.bf16.msra.mxu1 %v2681_v32  ;;  %v2774_v16 = vld [vmem:[#allocation10 + $0x3c] sm:$0xf0]  ;;  %v5607_v19 = vor.u32 %v2923_v9, %v2780_v8  ;;  %v2918_v22 = vld [vmem:[#allocation10 + $0x1c] sm:$0xf]  ;;  %v2660_v24 = vld [vmem:[#allocation9 + $0x8] sm:$0xf] }
 0x356   :  { %1428 = vmatpush.bf16.msra.mxu0 %v2653_v5  ;;  %1483 = vmatpush.bf16.msra.mxu2 %v2697_v53  ;;  %v5599_v5 = vor.u32 %v2926_v61, %v2792_v60  ;;  %v5610_v20 = vor.u32 %v2921_v14, %v2774_v16  ;;  %v2893_v25 = vld [vmem:[#allocation9 + $0x10] sm:$0xf0]  ;;  %v2762_v26 = vld [vmem:[#allocation10 + $0x24] sm:$0xf0]  ;;  %v2768_v27 = vld [vmem:[#allocation10 + $0x20] sm:$0xf] }
 0x357   :  { %1706 = vmatpush.bf16.msra.mxu3 %v5569_v10  ;;  %v2920_v29 = vld [vmem:[#allocation10 + $0x28] sm:$0xf0]  ;;  %v2661_v31 = vor.u32 %v2893_v25, %v2660_v24  ;;  %v5617_v33 = vor.u32 %v2918_v22, %v2762_v26  ;;  %v2756_v35 = vld [vmem:[#allocation10 + $0x8] sm:$0xf]  ;;  %v2917_v36 = vld [vmem:[#allocation10 + $0x10] sm:$0xf0] }
 0x358   :  { %v5614_v32 = vor.u32 %v2920_v29, %v2768_v27  ;;  %v2915_v37 = vld [vmem:[#allocation10 + $0x4] sm:$0xf]  ;;  %v2750_v38 = vld [vmem:[#allocation10 + $0xc] sm:$0xf0]  ;;  %v5622_v39 = vor.u32 %v2917_v36, %v2756_v35  ;;  %v1246_v46 = vld [vmem:[#allocation2 + $0x28] sm:$0xff] }
 0x359   :  { %1429 = vmatmul.bf16.vlgmr.msra.gmra.mxu0 %v5575_v21  ;;  %1456 = vmatpush.bf16.msra.mxu1 %v2669_v49  ;;  %v5625_v41 = vor.u32 %v2915_v37, %v2750_v38  ;;  %v1245_v42 = vld [vmem:[#allocation2 + $0x20] sm:$0xff]  ;;  %v1248_v48 = vld [vmem:[#allocation2 + $0x38] sm:$0xff] }
 0x35a   :  { %1725 = vmatpush.bf16.msrb.mxu0 %v5571_v12  ;;  %1707 = vmatmul.bf16.vlgmr.msra.gmra.mxu3 %v4830_v40  ;;  %v1251_v47 = vpack.c.bf16 %v1246_v46, %v1245_v42  ;;  %v1285_v50 = vld [vmem:[%s5931_s4] sm:$0x7] }
 0x35b   :  { %1712 = vmatpush.bf16.msrb.mxu3 %v5573_v15  ;;  %1484 = vmatpush.bf16.msra.mxu2 %v2685_v1  ;;  %v1287_v51 = vperm.slane %v1285_v50, 0  ;;  %v5701_v2 = vperm.slane %v1285_v50, 1 }
 0x35d   :  { %1457 = vmatpush.bf16.msra.mxu1 %v2657_v59 }
 0x35e   :  { %1726 = vmatpush.bf16.msrb.mxu0 %v5579_v28 }
 0x35f   :  { %1713 = vmatpush.bf16.msrb.mxu3 %v5582_v30  ;;  %1485 = vmatpush.bf16.msra.mxu2 %v2673_v18 }
 0x360   :  { %1458 = vmatmul.bf16.vlgmr.msra.gmra.mxu1 %v5575_v21 }
 0x361   :  { %1789 = vmatpush.bf16.msrb.mxu1 %v5548_v7 }
 0x362   :  { %1727 = vmatpush.bf16.msrb.mxu0 %v5587_v43 }
 0x363   :  { %1714 = vmatpush.bf16.msrb.mxu3 %v5590_v44  ;;  %1486 = vmatpush.bf16.msra.mxu2 %v2661_v31 }
 0x365   :  { %1790 = vmatpush.bf16.msrb.mxu1 %v5551_v11 }
 0x366   :  { %1728 = vmatpush.bf16.msrb.mxu0 %v5593_v56  ;;  %1487 = vmatmul.bf16.vlgmr.msra.gmra.mxu2 %v5575_v21  ;;  %v1247_v21 = vld [vmem:[#allocation2 + $0x30] sm:$0xff] }
 0x367   :  { %1715 = vmatpush.bf16.msrb.mxu3 %v5596_v57  ;;  %1802 = vmatpush.bf16.msrb.mxu2 %v5573_v15  ;;  %v1252_v49 = vpack.c.bf16 %v1248_v48, %v1247_v21 }
 0x369   :  { %1434 = vmatmul.bf16.gmra.mxu0 %v1250_v13  ;;  %1791 = vmatpush.bf16.msrb.mxu1 %v5554_v17 }
 0x36a   :  { %1729 = vmatpush.bf16.msrb.mxu0 %v5599_v5 }
 0x36b   :  { %1716 = vmatpush.bf16.msrb.mxu3 %v5602_v6  ;;  %1803 = vmatpush.bf16.msrb.mxu2 %v5582_v30 }
 0x36d   :  { %1792 = vmatpush.bf16.msrb.mxu1 %v5557_v23 }
 0x36e   :  { %1730 = vmatpush.bf16.msrb.mxu0 %v5607_v19 }
 0x36f   :  { %1717 = vmatpush.bf16.msrb.mxu3 %v5610_v20  ;;  %1804 = vmatpush.bf16.msrb.mxu2 %v5590_v44 }
 0x370   :  { %1463 = vmatmul.bf16.gmra.mxu1 %v1250_v13 }
 0x371   :  { %1793 = vmatpush.bf16.msrb.mxu1 %v5560_v34 }
 0x372   :  { %1731 = vmatpush.bf16.msrb.mxu0 %v5614_v32 }
 0x373   :  { %1718 = vmatpush.bf16.msrb.mxu3 %v5617_v33  ;;  %1805 = vmatpush.bf16.msrb.mxu2 %v5596_v57 }
 0x375   :  { %1794 = vmatpush.bf16.msrb.mxu1 %v5563_v45 }
 0x376   :  { %1732 = vmatpush.bf16.msrb.mxu0 %v5622_v39  ;;  %1492 = vmatmul.bf16.gmra.mxu2 %v1250_v13 }
 0x377   :  { %1719 = vmatpush.bf16.msrb.mxu3 %v5625_v41  ;;  %1806 = vmatpush.bf16.msrb.mxu2 %v5602_v6 }
 0x379   :  { %1439 = vmatmul.bf16.gmra.mxu0 %v1251_v47  ;;  %1795 = vmatpush.bf16.msrb.mxu1 %v5566_v58 }
 0x37a   :  { %1879 = vmatpush.bf16.msra.mxu0 %v5548_v7  ;;  %1720 = vmatmul.bf16.vlgmr.msrb.gmra.mxu3 %v4830_v40 }
 0x37b   :  { %1815 = vmatpush.bf16.msra.mxu3 %v5571_v12  ;;  %1807 = vmatpush.bf16.msrb.mxu2 %v5610_v20 }
 0x37d   :  { %1796 = vmatpush.bf16.msrb.mxu1 %v5569_v10 }
 0x37e   :  { %1880 = vmatpush.bf16.msra.mxu0 %v5551_v11 }
 0x37f   :  { %1816 = vmatpush.bf16.msra.mxu3 %v5579_v28  ;;  %1808 = vmatpush.bf16.msrb.mxu2 %v5617_v33 }
 0x380   :  { %1468 = vmatmul.bf16.gmra.mxu1 %v1251_v47 }
 0x381   :  { %1892 = vmatpush.bf16.msra.mxu1 %v5573_v15 }
 0x382   :  { %1881 = vmatpush.bf16.msra.mxu0 %v5554_v17 }
 0x383   :  { %1817 = vmatpush.bf16.msra.mxu3 %v5587_v43  ;;  %1809 = vmatpush.bf16.msrb.mxu2 %v5625_v41 }
 0x385   :  { %1893 = vmatpush.bf16.msra.mxu1 %v5582_v30 }
 0x386   :  { %1882 = vmatpush.bf16.msra.mxu0 %v5557_v23  ;;  %1497 = vmatmul.bf16.gmra.mxu2 %v1251_v47 }
 0x387   :  { %1818 = vmatpush.bf16.msra.mxu3 %v5593_v56  ;;  %1905 = vmatpush.bf16.msra.mxu2 %v5571_v12 }
 0x389   :  { %1444 = vmatmul.bf16.gmra.mxu0 %v1252_v49  ;;  %1894 = vmatpush.bf16.msra.mxu1 %v5590_v44 }
 0x38a   :  { %1883 = vmatpush.bf16.msra.mxu0 %v5560_v34 }
 0x38b   :  { %1819 = vmatpush.bf16.msra.mxu3 %v5599_v5  ;;  %1906 = vmatpush.bf16.msra.mxu2 %v5579_v28 }
 0x38d   :  { %1895 = vmatpush.bf16.msra.mxu1 %v5596_v57 }
 0x38e   :  { %1884 = vmatpush.bf16.msra.mxu0 %v5563_v45 }
 0x38f   :  { %1820 = vmatpush.bf16.msra.mxu3 %v5607_v19  ;;  %1907 = vmatpush.bf16.msra.mxu2 %v5587_v43 }
 0x390   :  { %1473 = vmatmul.bf16.gmra.mxu1 %v1252_v49 }
 0x391   :  { %1896 = vmatpush.bf16.msra.mxu1 %v5602_v6 }
 0x392   :  { %1885 = vmatpush.bf16.msra.mxu0 %v5566_v58 }
 0x393   :  { %1821 = vmatpush.bf16.msra.mxu3 %v5614_v32  ;;  %1908 = vmatpush.bf16.msra.mxu2 %v5593_v56 }
 0x395   :  { %1897 = vmatpush.bf16.msra.mxu1 %v5610_v20 }
 0x396   :  { %1886 = vmatpush.bf16.msra.mxu0 %v5569_v10  ;;  %1502 = vmatmul.bf16.gmra.mxu2 %v1252_v49 }
 0x397   :  { %1822 = vmatpush.bf16.msra.mxu3 %v5622_v39  ;;  %1909 = vmatpush.bf16.msra.mxu2 %v5599_v5 }
 0x399   :  { %1733 = vmatmul.bf16.vlgmr.msrb.gmra.mxu0 %v4830_v40  ;;  %1898 = vmatpush.bf16.msra.mxu1 %v5617_v33 }
 0x39a   :  { %1982 = vmatpush.bf16.msrb.mxu0 %v5573_v15 }
 0x39b   :  { %1969 = vmatpush.bf16.msrb.mxu3 %v5548_v7  ;;  %1910 = vmatpush.bf16.msra.mxu2 %v5607_v19 }
 0x39d   :  { %1899 = vmatpush.bf16.msra.mxu1 %v5625_v41 }
 0x39e   :  { %1983 = vmatpush.bf16.msrb.mxu0 %v5582_v30 }
 0x39f   :  { %1970 = vmatpush.bf16.msrb.mxu3 %v5551_v11  ;;  %1911 = vmatpush.bf16.msra.mxu2 %v5614_v32 }
 0x3a2   :  { %1984 = vmatpush.bf16.msrb.mxu0 %v5590_v44 }
 0x3a3   :  { %1971 = vmatpush.bf16.msrb.mxu3 %v5554_v17  ;;  %1912 = vmatpush.bf16.msra.mxu2 %v5622_v39 }
 0x3a6   :  { %1985 = vmatpush.bf16.msrb.mxu0 %v5596_v57 }
 0x3a7   :  { %1972 = vmatpush.bf16.msrb.mxu3 %v5557_v23 }
 0x3aa   :  { %1986 = vmatpush.bf16.msrb.mxu0 %v5602_v6 }
 0x3ab   :  { %1973 = vmatpush.bf16.msrb.mxu3 %v5560_v34 }
 0x3ae   :  { %1987 = vmatpush.bf16.msrb.mxu0 %v5610_v20 }
 0x3af   :  { %1974 = vmatpush.bf16.msrb.mxu3 %v5563_v45 }
 0x3b2   :  { %1988 = vmatpush.bf16.msrb.mxu0 %v5617_v33 }
 0x3b3   :  { %1975 = vmatpush.bf16.msrb.mxu3 %v5566_v58 }
 0x3b6   :  { %1989 = vmatpush.bf16.msrb.mxu0 %v5625_v41 }
 0x3b7   :  { %1976 = vmatpush.bf16.msrb.mxu3 %v5569_v10 }
 0x3d6   :  { %v1430_v40 = vpop.f32.mrf.mxu0 }
 0x3d7   :  { %v1431_v55 = vadd.f32 %v1430_v40, %v1287_v51 }
 0x3dd   :  { %v1708_v52 = vpop.f32.mrf.mxu3  ;;  %v1459_v3 = vpop.f32.mrf.mxu1 }
 0x3de   :  { %v1432_v53 = vpop.f32.mrf.mxu0  ;;  %v1738_v61 = vadd.f32 %v1708_v52, %v1431_v55  ;;  %v1460_v13 = vadd.f32 %v1459_v3, %v5701_v2  ;;  %v5712_v52 = vperm.slane %v1285_v50, 2 }
 0x3df   :  { %v5695_v54 = vadd.f32 %v1432_v53, %v1287_v51  ;;  %v5717_v53 = vld [vmem:[%s5932_s5] ss:$0 sm:$0xff] }
 0x3e0   :  { %v2842_v63 = vmul.f32 -1.442695, %v1738_v61 }
 0x3e2   :  { %3023 = vpow2.f32 %v2842_v63 }
 0x3e5   :  { %v1710_v59 = vpop.f32.mrf.mxu3 }
 0x3e6   :  { %v1435_v60 = vpop.f32.mrf.mxu0 }
 0x3e7   :  { %v5697_v62 = vadd.f32 %v1435_v60, %v1287_v51 }
 0x3e8   :  { %v3024_v4 = vpop.eup %3023 }
 0x3e9   :  { %v1742_v14 = vadd.f32 1.0, %v3024_v4  ;;  %v1488_v61 = vpop.f32.mrf.mxu2 }
 0x3eb   :  { %3025 = vrcp.f32 %v1742_v14  ;;  %v1754_v40 = vand.u32 2147483648, %v1742_v14  ;;  %vm1748_vm1 = vweird.f32 %v1742_v14  ;;  %v1752_v55 = vand.u32 2147483647, %v1742_v14 }
 0x3ed   :  { %vm1753_vm3 = vcmp.eq.f32.partialorder %v1752_v55, 8.507059e+37 }
 0x3ee   :  { %v1437_v0 = vpop.f32.mrf.mxu0 }
 0x3ef   :  { %v5699_v1 = vadd.f32 %v1437_v0, %v1287_v51  ;;  %v1489_v0 = vadd.f32 %v1488_v61, %v5712_v52 }
 0x3f1   :  { %v3026_v26 = vpop.eup %3025 }
 0x3f2   :  { %v1744_v31 = vmul.f32 %v3026_v26, %v1742_v14  ;;  %vm1749_vm0 = vweird.f32 %v3026_v26 }
 0x3f3   :  { %vm1750_vm2 = vmor %vm1748_vm1, %vm1749_vm0 }
 0x3f4   :  { %v1745_v38 = vsub.f32 1.0, %v1744_v31 }
 0x3f6   :  { %v1440_v8 = vpop.f32.mrf.mxu0  ;;  %v1746_v42 = vmul.f32 %v3026_v26, %v1745_v38 }
 0x3f7   :  { %v5703_v9 = vadd.f32 %v1440_v8, %v1287_v51 }
 0x3f8   :  { %v1747_v48 = vadd.f32 %v3026_v26, %v1746_v42 }
 0x3fa   :  { %v1751_v59 = vsel %vm1750_vm2, %v3026_v26, %v1747_v48 }
 0x3fd   :  { %v1721_v16 = vpop.f32.mrf.mxu3 }
 0x3fe   :  { %v1758_v18 = vadd.f32 %v1721_v16, %v1460_v13  ;;  %v1442_v24 = vpop.f32.mrf.mxu0 }
 0x3ff   :  { %v5706_v25 = vadd.f32 %v1442_v24, %v1287_v51 }
 0x400   :  { %v2843_v22 = vmul.f32 -1.442695, %v1758_v18 }
 0x402   :  { %3027 = vpow2.f32 %v2843_v22 }
 0x405   :  { %v1723_v27 = vpop.f32.mrf.mxu3 }
 0x406   :  { %v1445_v36 = vpop.f32.mrf.mxu0 }
 0x407   :  { %v5708_v37 = vadd.f32 %v1445_v36, %v1287_v51 }
 0x408   :  { %v3028_v29 = vpop.eup %3027 }
 0x409   :  { %v1762_v35 = vadd.f32 1.0, %v3028_v29 }
 0x40b   :  { %3029 = vrcp.f32 %v1762_v35  ;;  %vm1768_vm4 = vweird.f32 %v1762_v35  ;;  %v1774_v16 = vand.u32 2147483648, %v1762_v35  ;;  %v1772_v22 = vand.u32 2147483647, %v1762_v35 }
 0x40d   :  { %v1775_v24 = vor.u32 1.1754944e-38, %v1774_v16  ;;  %vm1773_vm7 = vcmp.eq.f32.partialorder %v1772_v22, 8.507059e+37 }
 0x40e   :  { %v1447_v46 = vpop.f32.mrf.mxu0 }
 0x40f   :  { %v5710_v21 = vadd.f32 %v1447_v46, %v1287_v51  ;;  %v1755_v51 = vor.u32 1.1754944e-38, %v1754_v40  ;;  %v1490_v46 = vpop.f32.mrf.mxu2 }
 0x411   :  { %v3030_v47 = vpop.eup %3029  ;;  %5936 = vst [vmem:[#allocation149_spill] sm:$0xff] %v5710_v21  ;;  %v1756_v50 = vsel %vm1753_vm3, %v1755_v51, %v1751_v59 }
 0x412   :  { %v1764_v49 = vmul.f32 %v3030_v47, %v1762_v35  ;;  %vm1769_vm5 = vweird.f32 %v3030_v47  ;;  %v1461_v35 = vpop.f32.mrf.mxu1 }
 0x413   :  { %vm1770_vm6 = vmor %vm1768_vm4, %vm1769_vm5 }
 0x414   :  { %v1765_v60 = vsub.f32 1.0, %v1764_v49 }
 0x416   :  { %v1734_v63 = vpop.f32.mrf.mxu0  ;;  %v1766_v8 = vmul.f32 %v3030_v47, %v1765_v60 }
 0x417   :  { %v1778_v3 = vadd.f32 %v5717_v53, %v1734_v63  ;;  %v5751_v48 = vpop.f32.mrf.mxu2 }
 0x418   :  { %v1767_v18 = vadd.f32 %v3030_v47, %v1766_v8 }
 0x419   :  { %v1779_v4 = vmul.f32 %v1778_v3, %v1756_v50 }
 0x41a   :  { %v1771_v26 = vsel %vm1770_vm6, %v3030_v47, %v1767_v18  ;;  %v5749_v47 = vpop.f32.mrf.mxu1 }
 0x41b   :  { %v1780_v13 = vadd.f32 %v1779_v4, %v1489_v0  ;;  %v1776_v31 = vsel %vm1773_vm7, %v1775_v24, %v1771_v26 }
 0x41d   :  { %3031 = vtanh.f32 %v1780_v13  ;;  %v1462_v13 = vadd.f32 %v1461_v35, %v5701_v2 }
 0x41e   :  { %v1736_v14 = vpop.f32.mrf.mxu0 }
 0x41f   :  { %v5755_v40 = vpop.f32.mrf.mxu2 }
 0x422   :  { %v5753_v49 = vpop.f32.mrf.mxu1 }
 0x423   :  { %v3032_v27 = vpop.eup %3031 }
 0x424   :  { %v1782_v29 = vsub.f32 0.0, %v3032_v27 }
 0x426   :  { %v1783_v36 = vmul.f32 %v1782_v29, %v1776_v31 }
 0x427   :  { %v5759_v59 = vpop.f32.mrf.mxu2 }
 0x428   :  { %v5721_v38 = vadd.f32 %v3032_v27, %v1783_v36 }
 0x42a   :  { %v1788_v42 = vpack.c.bf16 %v5721_v38, %v5721_v38  ;;  %v5757_v55 = vpop.f32.mrf.mxu1 }
 0x42c   :  { %1797 = vmatmul.bf16.vlgmr.msrb.gmra.mxu1 %v1788_v42  ;;  %1810 = vmatmul.bf16.vlgmr.msrb.gmra.mxu2 %v1788_v42 }
 0x42d   :  { %1823 = vmatmul.bf16.vlgmr.msra.gmra.mxu3 %v1788_v42  ;;  %1995 = vmatpush.bf16.msrb.mxu1 %v5571_v12 }
 0x42e   :  { %2059 = vmatpush.bf16.msrb.mxu2 %v5548_v7  ;;  %2072 = vmatpush.bf16.msra.mxu3 %v5573_v15 }
 0x42f   :  { %v5763_v61 = vpop.f32.mrf.mxu2 }
 0x431   :  { %1996 = vmatpush.bf16.msrb.mxu1 %v5579_v28 }
 0x432   :  { %2060 = vmatpush.bf16.msrb.mxu2 %v5551_v11  ;;  %2073 = vmatpush.bf16.msra.mxu3 %v5582_v30  ;;  %v5761_v60 = vpop.f32.mrf.mxu1 }
 0x435   :  { %1997 = vmatpush.bf16.msrb.mxu1 %v5587_v43 }
 0x436   :  { %2061 = vmatpush.bf16.msrb.mxu2 %v5554_v17  ;;  %2074 = vmatpush.bf16.msra.mxu3 %v5590_v44 }
 0x437   :  { %v5767_v51 = vpop.f32.mrf.mxu2 }
 0x438   :  { %5937 = vst [vmem:[#allocation150_spill] sm:$0xff] %v5767_v51 }
 0x439   :  { %1998 = vmatpush.bf16.msrb.mxu1 %v5593_v56 }
 0x43a   :  { %2062 = vmatpush.bf16.msrb.mxu2 %v5557_v23  ;;  %2075 = vmatpush.bf16.msra.mxu3 %v5596_v57  ;;  %v5765_v63 = vpop.f32.mrf.mxu1 }
 0x43d   :  { %1999 = vmatpush.bf16.msrb.mxu1 %v5599_v5 }
 0x43e   :  { %2063 = vmatpush.bf16.msrb.mxu2 %v5560_v34  ;;  %2076 = vmatpush.bf16.msra.mxu3 %v5602_v6 }
 0x43f   :  { %v5771_v3 = vpop.f32.mrf.mxu2 }
 0x440   :  { %5939 = vst [vmem:[#allocation152_spill] sm:$0xff] %v5771_v3 }
 0x441   :  { %2000 = vmatpush.bf16.msrb.mxu1 %v5607_v19 }
 0x442   :  { %2064 = vmatpush.bf16.msrb.mxu2 %v5563_v45  ;;  %2077 = vmatpush.bf16.msra.mxu3 %v5610_v20  ;;  %v5769_v0 = vpop.f32.mrf.mxu1 }
 0x443   :  { %5938 = vst [vmem:[#allocation151_spill] sm:$0xff] %v5769_v0 }
 0x445   :  { %2001 = vmatpush.bf16.msrb.mxu1 %v5614_v32 }
 0x446   :  { %2065 = vmatpush.bf16.msrb.mxu2 %v5566_v58  ;;  %2078 = vmatpush.bf16.msra.mxu3 %v5617_v33 }
 0x449   :  { %2002 = vmatpush.bf16.msrb.mxu1 %v5622_v39 }
 0x44a   :  { %2066 = vmatpush.bf16.msrb.mxu2 %v5569_v10  ;;  %2079 = vmatpush.bf16.msra.mxu3 %v5625_v41 }
 0x4a9   :  { %v1798_v50 = vpop.f32.mrf.mxu1 }
 0x4aa   :  { %v1828_v4 = vadd.f32 %v1798_v50, %v5695_v54 }
 0x4ac   :  { %v2844_v8 = vmul.f32 -1.442695, %v1828_v4 }
 0x4ae   :  { %3033 = vpow2.f32 %v2844_v8 }
 0x4af   :  { %v1811_v16 = vpop.f32.mrf.mxu2 }
 0x4b0   :  { %v1848_v14 = vadd.f32 %v1811_v16, %v1462_v13  ;;  %v1824_v18 = vpop.f32.mrf.mxu3 }
 0x4b1   :  { %v1800_v22 = vpop.f32.mrf.mxu1 }
 0x4b2   :  { %v2845_v24 = vmul.f32 -1.442695, %v1848_v14 }
 0x4b4   :  { %v3034_v26 = vpop.eup %3033  ;;  %3035 = vpow2.f32 %v2845_v24 }
 0x4b5   :  { %v1832_v27 = vadd.f32 1.0, %v3034_v26 }
 0x4b7   :  { %3037 = vrcp.f32 %v1832_v27  ;;  %v1813_v29 = vpop.f32.mrf.mxu2  ;;  %v1844_v4 = vand.u32 2147483648, %v1832_v27  ;;  %v1842_v8 = vand.u32 2147483647, %v1832_v27  ;;  %vm1838_vm9 = vweird.f32 %v1832_v27 }
 0x4b8   :  { %v1826_v31 = vpop.f32.mrf.mxu3  ;;  %v1868_v29 = vadd.f32 %v5717_v53, %v1824_v18 }
 0x4b9   :  { %v1845_v14 = vor.u32 1.1754944e-38, %v1844_v4  ;;  %vm1843_vm11 = vcmp.eq.f32.partialorder %v1842_v8, 8.507059e+37 }
 0x4ba   :  { %v3036_v36 = vpop.eup %3035 }
 0x4bb   :  { %v1852_v42 = vadd.f32 1.0, %v3036_v36  ;;  %v1491_v36 = vadd.f32 %v1490_v46, %v5712_v52 }
 0x4bd   :  { %v3038_v3 = vpop.eup %3037  ;;  %3039 = vrcp.f32 %v1852_v42  ;;  %v1864_v51 = vand.u32 2147483648, %v1852_v42  ;;  %vm1858_vm13 = vweird.f32 %v1852_v42 }
 0x4be   :  { %v1834_v54 = vmul.f32 %v3038_v3, %v1832_v27  ;;  %vm1839_vm8 = vweird.f32 %v3038_v3 }
 0x4bf   :  { %vm1840_vm10 = vmor %vm1838_vm9, %vm1839_vm8 }
 0x4c0   :  { %v1835_v50 = vsub.f32 1.0, %v1834_v54 }
 0x4c2   :  { %v1836_v35 = vmul.f32 %v3038_v3, %v1835_v50 }
 0x4c3   :  { %v3040_v13 = vpop.eup %3039 }
 0x4c4   :  { %v1854_v16 = vmul.f32 %v3040_v13, %v1852_v42  ;;  %v1837_v22 = vadd.f32 %v3038_v3, %v1836_v35  ;;  %vm1859_vm12 = vweird.f32 %v3040_v13  ;;  %v1862_v35 = vand.u32 2147483647, %v1852_v42 }
 0x4c5   :  { %vm1860_vm14 = vmor %vm1858_vm13, %vm1859_vm12 }
 0x4c6   :  { %v1855_v24 = vsub.f32 1.0, %v1854_v16  ;;  %v1841_v26 = vsel %vm1840_vm10, %v3038_v3, %v1837_v22  ;;  %v1865_v16 = vor.u32 1.1754944e-38, %v1864_v51  ;;  %vm1863_vm15 = vcmp.eq.f32.partialorder %v1862_v35, 8.507059e+37 }
 0x4c7   :  { %v1846_v31 = vsel %vm1843_vm11, %v1845_v14, %v1841_v26 }
 0x4c8   :  { %v1869_v21 = vmul.f32 %v1868_v29, %v1846_v31  ;;  %v1856_v54 = vmul.f32 %v3040_v13, %v1855_v24 }
 0x4ca   :  { %v1870_v0 = vadd.f32 %v1869_v21, %v1491_v36  ;;  %v1857_v50 = vadd.f32 %v3040_v13, %v1856_v54 }
 0x4cc   :  { %3041 = vtanh.f32 %v1870_v0  ;;  %v1861_v27 = vsel %vm1860_vm14, %v3040_v13, %v1857_v50 }
 0x4cd   :  { %v1866_v18 = vsel %vm1863_vm15, %v1865_v16, %v1861_v27 }
 0x4d2   :  { %v3042_v4 = vpop.eup %3041 }
 0x4d3   :  { %v1872_v3 = vsub.f32 %v5721_v38, %v3042_v4  ;;  %v1465_v38 = vadd.f32 %v5749_v47, %v5701_v2 }
 0x4d5   :  { %v1873_v8 = vmul.f32 %v1872_v3, %v1866_v18 }
 0x4d7   :  { %v5778_v22 = vadd.f32 %v3042_v4, %v1873_v8 }
 0x4d9   :  { %v1878_v21 = vpack.c.bf16 %v5778_v22, %v5778_v22 }
 0x4db   :  { %1887 = vmatmul.bf16.vlgmr.msra.gmra.mxu0 %v1878_v21  ;;  %1900 = vmatmul.bf16.vlgmr.msra.gmra.mxu1 %v1878_v21 }
 0x4dc   :  { %1913 = vmatmul.bf16.vlgmr.msra.gmra.mxu2 %v1878_v21  ;;  %2085 = vmatpush.bf16.msra.mxu0 %v5571_v12 }
 0x4dd   :  { %2149 = vmatpush.bf16.msra.mxu1 %v5548_v7  ;;  %2162 = vmatpush.bf16.msra.mxu2 %v5573_v15 }
 0x4e0   :  { %2086 = vmatpush.bf16.msra.mxu0 %v5579_v28 }
 0x4e1   :  { %2150 = vmatpush.bf16.msra.mxu1 %v5551_v11  ;;  %2163 = vmatpush.bf16.msra.mxu2 %v5582_v30 }
 0x4e4   :  { %2087 = vmatpush.bf16.msra.mxu0 %v5587_v43 }
 0x4e5   :  { %2151 = vmatpush.bf16.msra.mxu1 %v5554_v17  ;;  %2164 = vmatpush.bf16.msra.mxu2 %v5590_v44 }
 0x4e8   :  { %2088 = vmatpush.bf16.msra.mxu0 %v5593_v56 }
 0x4e9   :  { %2152 = vmatpush.bf16.msra.mxu1 %v5557_v23  ;;  %2165 = vmatpush.bf16.msra.mxu2 %v5596_v57 }
 0x4ec   :  { %2089 = vmatpush.bf16.msra.mxu0 %v5599_v5 }
 0x4ed   :  { %2153 = vmatpush.bf16.msra.mxu1 %v5560_v34  ;;  %2166 = vmatpush.bf16.msra.mxu2 %v5602_v6 }
 0x4f0   :  { %2090 = vmatpush.bf16.msra.mxu0 %v5607_v19 }
 0x4f1   :  { %2154 = vmatpush.bf16.msra.mxu1 %v5563_v45  ;;  %2167 = vmatpush.bf16.msra.mxu2 %v5610_v20 }
 0x4f4   :  { %2091 = vmatpush.bf16.msra.mxu0 %v5614_v32 }
 0x4f5   :  { %2155 = vmatpush.bf16.msra.mxu1 %v5566_v58  ;;  %2168 = vmatpush.bf16.msra.mxu2 %v5617_v33 }
 0x4f8   :  { %2092 = vmatpush.bf16.msra.mxu0 %v5622_v39 }
 0x4f9   :  { %2156 = vmatpush.bf16.msra.mxu1 %v5569_v10  ;;  %2169 = vmatpush.bf16.msra.mxu2 %v5625_v41 }
 0x558   :  { %v1888_v46 = vpop.f32.mrf.mxu0  ;;  %v1901_v51 = vpop.f32.mrf.mxu1 }
 0x559   :  { %v1918_v0 = vadd.f32 %v1888_v46, %v5697_v62  ;;  %v1938_v42 = vadd.f32 %v1901_v51, %v1465_v38 }
 0x55b   :  { %v2846_v13 = vmul.f32 -1.442695, %v1918_v0  ;;  %v2847_v14 = vmul.f32 -1.442695, %v1938_v42 }
 0x55d   :  { %3043 = vpow2.f32 %v2846_v13  ;;  %v1494_v13 = vadd.f32 %v5751_v48, %v5712_v52 }
 0x55e   :  { %3045 = vpow2.f32 %v2847_v14 }
 0x55f   :  { %v1914_v24 = vpop.f32.mrf.mxu2 }
 0x560   :  { %v1890_v26 = vpop.f32.mrf.mxu0  ;;  %v1903_v29 = vpop.f32.mrf.mxu1  ;;  %v1958_v0 = vadd.f32 %v5717_v53, %v1914_v24 }
 0x563   :  { %v3044_v31 = vpop.eup %3043 }
 0x564   :  { %v3046_v36 = vpop.eup %3045  ;;  %v1922_v54 = vadd.f32 1.0, %v3044_v31 }
 0x565   :  { %v1942_v50 = vadd.f32 1.0, %v3046_v36 }
 0x566   :  { %3047 = vrcp.f32 %v1922_v54  ;;  %v1934_v3 = vand.u32 2147483648, %v1922_v54  ;;  %v1932_v8 = vand.u32 2147483647, %v1922_v54  ;;  %vm1928_vm1 = vweird.f32 %v1922_v54 }
 0x567   :  { %3049 = vrcp.f32 %v1942_v50  ;;  %v1916_v35 = vpop.f32.mrf.mxu2  ;;  %v1954_v36 = vand.u32 2147483648, %v1942_v50  ;;  %vm1948_vm5 = vweird.f32 %v1942_v50 }
 0x568   :  { %v1935_v46 = vor.u32 1.1754944e-38, %v1934_v3  ;;  %vm1933_vm3 = vcmp.eq.f32.partialorder %v1932_v8, 8.507059e+37 }
 0x56c   :  { %v3048_v47 = vpop.eup %3047 }
 0x56d   :  { %v3050_v27 = vpop.eup %3049  ;;  %v1924_v4 = vmul.f32 %v3048_v47, %v1922_v54  ;;  %vm1929_vm0 = vweird.f32 %v3048_v47  ;;  %v1952_v54 = vand.u32 2147483647, %v1942_v50 }
 0x56e   :  { %v1944_v62 = vmul.f32 %v3050_v27, %v1942_v50  ;;  %vm1930_vm2 = vmor %vm1928_vm1, %vm1929_vm0  ;;  %vm1949_vm4 = vweird.f32 %v3050_v27 }
 0x56f   :  { %v1925_v16 = vsub.f32 1.0, %v1924_v4  ;;  %vm1950_vm6 = vmor %vm1948_vm5, %vm1949_vm4  ;;  %vm1953_vm7 = vcmp.eq.f32.partialorder %v1952_v54, 8.507059e+37 }
 0x570   :  { %v1945_v38 = vsub.f32 1.0, %v1944_v62 }
 0x571   :  { %v1926_v18 = vmul.f32 %v3048_v47, %v1925_v16 }
 0x572   :  { %v1946_v26 = vmul.f32 %v3050_v27, %v1945_v38 }
 0x573   :  { %v1927_v21 = vadd.f32 %v3048_v47, %v1926_v18 }
 0x574   :  { %v1947_v31 = vadd.f32 %v3050_v27, %v1946_v26 }
 0x575   :  { %v1931_v51 = vsel %vm1930_vm2, %v3048_v47, %v1927_v21  ;;  %v1955_v47 = vor.u32 1.1754944e-38, %v1954_v36 }
 0x576   :  { %v1936_v42 = vsel %vm1933_vm3, %v1935_v46, %v1931_v51  ;;  %v1951_v35 = vsel %vm1950_vm6, %v3050_v27, %v1947_v31 }
 0x577   :  { %v1959_v14 = vmul.f32 %v1958_v0, %v1936_v42  ;;  %v1956_v24 = vsel %vm1953_vm7, %v1955_v47, %v1951_v35 }
 0x579   :  { %v1960_v29 = vadd.f32 %v1959_v14, %v1494_v13 }
 0x57b   :  { %3051 = vtanh.f32 %v1960_v29 }
 0x581   :  { %v3052_v4 = vpop.eup %3051 }
 0x582   :  { %v1962_v16 = vsub.f32 %v5778_v22, %v3052_v4  ;;  %v1467_v22 = vadd.f32 %v5753_v49, %v5701_v2 }
 0x584   :  { %v1963_v62 = vmul.f32 %v1962_v16, %v1956_v24 }
 0x586   :  { %v5813_v3 = vadd.f32 %v3052_v4, %v1963_v62 }
 0x588   :  { %v1968_v48 = vpack.c.bf16 %v5813_v3, %v5813_v3 }
 0x58a   :  { %1977 = vmatmul.bf16.vlgmr.msrb.gmra.mxu3 %v1968_v48  ;;  %1990 = vmatmul.bf16.vlgmr.msrb.gmra.mxu0 %v1968_v48 }
 0x58b   :  { %2003 = vmatmul.bf16.vlgmr.msrb.gmra.mxu1 %v1968_v48  ;;  %2175 = vmatpush.bf16.msrb.mxu3 %v5571_v12 }
 0x58c   :  { %2239 = vmatpush.bf16.msrb.mxu0 %v5548_v7  ;;  %2252 = vmatpush.bf16.msrb.mxu1 %v5573_v15 }
 0x58f   :  { %2176 = vmatpush.bf16.msrb.mxu3 %v5579_v28 }
 0x590   :  { %2240 = vmatpush.bf16.msrb.mxu0 %v5551_v11  ;;  %2253 = vmatpush.bf16.msrb.mxu1 %v5582_v30 }
 0x593   :  { %2177 = vmatpush.bf16.msrb.mxu3 %v5587_v43 }
 0x594   :  { %2241 = vmatpush.bf16.msrb.mxu0 %v5554_v17  ;;  %2254 = vmatpush.bf16.msrb.mxu1 %v5590_v44 }
 0x597   :  { %2178 = vmatpush.bf16.msrb.mxu3 %v5593_v56 }
 0x598   :  { %2242 = vmatpush.bf16.msrb.mxu0 %v5557_v23  ;;  %2255 = vmatpush.bf16.msrb.mxu1 %v5596_v57 }
 0x59b   :  { %2179 = vmatpush.bf16.msrb.mxu3 %v5599_v5 }
 0x59c   :  { %2243 = vmatpush.bf16.msrb.mxu0 %v5560_v34  ;;  %2256 = vmatpush.bf16.msrb.mxu1 %v5602_v6 }
 0x59f   :  { %2180 = vmatpush.bf16.msrb.mxu3 %v5607_v19 }
 0x5a0   :  { %2244 = vmatpush.bf16.msrb.mxu0 %v5563_v45  ;;  %2257 = vmatpush.bf16.msrb.mxu1 %v5610_v20 }
 0x5a3   :  { %2181 = vmatpush.bf16.msrb.mxu3 %v5614_v32 }
 0x5a4   :  { %2245 = vmatpush.bf16.msrb.mxu0 %v5566_v58  ;;  %2258 = vmatpush.bf16.msrb.mxu1 %v5617_v33 }
 0x5a7   :  { %2182 = vmatpush.bf16.msrb.mxu3 %v5622_v39 }
 0x5a8   :  { %2246 = vmatpush.bf16.msrb.mxu0 %v5569_v10  ;;  %2259 = vmatpush.bf16.msrb.mxu1 %v5625_v41 }
 0x607   :  { %v1991_v50 = vpop.f32.mrf.mxu0 }
 0x608   :  { %v2028_v27 = vadd.f32 %v1991_v50, %v1467_v22  ;;  %v2004_v18 = vpop.f32.mrf.mxu1 }
 0x609   :  { %v2048_v48 = vadd.f32 %v5717_v53, %v2004_v18 }
 0x60a   :  { %v2849_v8 = vmul.f32 -1.442695, %v2028_v27  ;;  %v1496_v27 = vadd.f32 %v5755_v40, %v5712_v52 }
 0x60c   :  { %3053 = vpow2.f32 %v2849_v8 }
 0x60d   :  { %v1978_v21 = vpop.f32.mrf.mxu3 }
 0x60e   :  { %v2008_v38 = vadd.f32 %v1978_v21, %v5699_v1 }
 0x60f   :  { %v1993_v46 = vpop.f32.mrf.mxu0 }
 0x610   :  { %v2848_v51 = vmul.f32 -1.442695, %v2008_v38  ;;  %v2006_v0 = vpop.f32.mrf.mxu1 }
 0x612   :  { %3055 = vpow2.f32 %v2848_v51  ;;  %v3054_v42 = vpop.eup %3053 }
 0x613   :  { %v2032_v26 = vadd.f32 1.0, %v3054_v42 }
 0x615   :  { %v1980_v13 = vpop.f32.mrf.mxu3  ;;  %v2044_v51 = vand.u32 2147483648, %v2032_v26  ;;  %vm2038_vm13 = vweird.f32 %v2032_v26  ;;  %v2042_v0 = vand.u32 2147483647, %v2032_v26 }
 0x617   :  { %vm2043_vm15 = vcmp.eq.f32.partialorder %v2042_v0, 8.507059e+37 }
 0x618   :  { %v3056_v14 = vpop.eup %3055 }
 0x619   :  { %v2012_v29 = vadd.f32 1.0, %v3056_v14  ;;  %v2045_v14 = vor.u32 1.1754944e-38, %v2044_v51 }
 0x61b   :  { %3057 = vrcp.f32 %v2012_v29  ;;  %v2024_v4 = vand.u32 2147483648, %v2012_v29  ;;  %v2022_v1 = vand.u32 2147483647, %v2012_v29  ;;  %vm2018_vm9 = vweird.f32 %v2012_v29 }
 0x61c   :  { %3059 = vrcp.f32 %v2032_v26 }
 0x61d   :  { %v2025_v62 = vor.u32 1.1754944e-38, %v2024_v4  ;;  %vm2023_vm11 = vcmp.eq.f32.partialorder %v2022_v1, 8.507059e+37 }
 0x621   :  { %v3058_v49 = vpop.eup %3057 }
 0x622   :  { %v3060_v31 = vpop.eup %3059  ;;  %v2014_v36 = vmul.f32 %v3058_v49, %v2012_v29  ;;  %vm2019_vm8 = vweird.f32 %v3058_v49 }
 0x623   :  { %v2034_v35 = vmul.f32 %v3060_v31, %v2032_v26  ;;  %vm2020_vm10 = vmor %vm2018_vm9, %vm2019_vm8  ;;  %vm2039_vm12 = vweird.f32 %v3060_v31 }
 0x624   :  { %v2015_v54 = vsub.f32 1.0, %v2014_v36  ;;  %vm2040_vm14 = vmor %vm2038_vm13, %vm2039_vm12 }
 0x625   :  { %v2035_v24 = vsub.f32 1.0, %v2034_v35 }
 0x626   :  { %v2016_v47 = vmul.f32 %v3058_v49, %v2015_v54 }
 0x627   :  { %v2036_v21 = vmul.f32 %v3060_v31, %v2035_v24 }
 0x628   :  { %v2017_v16 = vadd.f32 %v3058_v49, %v2016_v47 }
 0x629   :  { %v2037_v46 = vadd.f32 %v3060_v31, %v2036_v21 }
 0x62a   :  { %v2021_v22 = vsel %vm2020_vm10, %v3058_v49, %v2017_v16 }
 0x62b   :  { %v2026_v50 = vsel %vm2023_vm11, %v2025_v62, %v2021_v22  ;;  %v2041_v42 = vsel %vm2040_vm14, %v3060_v31, %v2037_v46 }
 0x62c   :  { %v2049_v8 = vmul.f32 %v2048_v48, %v2026_v50  ;;  %v2046_v29 = vsel %vm2043_vm15, %v2045_v14, %v2041_v42  ;;  %v1499_v48 = vadd.f32 %v5759_v59, %v5712_v52 }
 0x62e   :  { %v2050_v38 = vadd.f32 %v2049_v8, %v1496_v27 }
 0x630   :  { %3061 = vtanh.f32 %v2050_v38 }
 0x636   :  { %v3062_v13 = vpop.eup %3061 }
 0x637   :  { %v2052_v18 = vsub.f32 %v5813_v3, %v3062_v13 }
 0x639   :  { %v2053_v49 = vmul.f32 %v2052_v18, %v2046_v29 }
 0x63b   :  { %v5848_v36 = vadd.f32 %v3062_v13, %v2053_v49 }
 0x63d   :  { %v2058_v40 = vpack.c.bf16 %v5848_v36, %v5848_v36 }
 0x63f   :  { %2067 = vmatmul.bf16.vlgmr.msrb.gmra.mxu2 %v2058_v40  ;;  %2080 = vmatmul.bf16.vlgmr.msra.gmra.mxu3 %v2058_v40 }
 0x640   :  { %2093 = vmatmul.bf16.vlgmr.msra.gmra.mxu0 %v2058_v40  ;;  %2265 = vmatpush.bf16.msrb.mxu2 %v5571_v12 }
 0x641   :  { %2329 = vmatpush.bf16.msra.mxu3 %v5548_v7  ;;  %2342 = vmatpush.bf16.msra.mxu0 %v5573_v15 }
 0x644   :  { %2266 = vmatpush.bf16.msrb.mxu2 %v5579_v28 }
 0x645   :  { %2330 = vmatpush.bf16.msra.mxu3 %v5551_v11  ;;  %2343 = vmatpush.bf16.msra.mxu0 %v5582_v30  ;;  %v1470_v11 = vadd.f32 %v5757_v55, %v5701_v2 }
 0x648   :  { %2267 = vmatpush.bf16.msrb.mxu2 %v5587_v43 }
 0x649   :  { %2331 = vmatpush.bf16.msra.mxu3 %v5554_v17  ;;  %2344 = vmatpush.bf16.msra.mxu0 %v5590_v44 }
 0x64c   :  { %2268 = vmatpush.bf16.msrb.mxu2 %v5593_v56 }
 0x64d   :  { %2332 = vmatpush.bf16.msra.mxu3 %v5557_v23  ;;  %2345 = vmatpush.bf16.msra.mxu0 %v5596_v57 }
 0x650   :  { %2269 = vmatpush.bf16.msrb.mxu2 %v5599_v5 }
 0x651   :  { %2333 = vmatpush.bf16.msra.mxu3 %v5560_v34  ;;  %2346 = vmatpush.bf16.msra.mxu0 %v5602_v6 }
 0x654   :  { %2270 = vmatpush.bf16.msrb.mxu2 %v5607_v19 }
 0x655   :  { %2334 = vmatpush.bf16.msra.mxu3 %v5563_v45  ;;  %2347 = vmatpush.bf16.msra.mxu0 %v5610_v20 }
 0x658   :  { %2271 = vmatpush.bf16.msrb.mxu2 %v5614_v32 }
 0x659   :  { %2335 = vmatpush.bf16.msra.mxu3 %v5566_v58  ;;  %2348 = vmatpush.bf16.msra.mxu0 %v5617_v33 }
 0x65c   :  { %2272 = vmatpush.bf16.msrb.mxu2 %v5622_v39 }
 0x65d   :  { %2336 = vmatpush.bf16.msra.mxu3 %v5569_v10  ;;  %2349 = vmatpush.bf16.msra.mxu0 %v5625_v41 }
 0x6bd   :  { %v2094_v7 = vpop.f32.mrf.mxu0 }
 0x6be   :  { %v2138_v16 = vadd.f32 %v5717_v53, %v2094_v7 }
 0x6c2   :  { %v2068_v17 = vpop.f32.mrf.mxu2  ;;  %v2081_v23 = vpop.f32.mrf.mxu3 }
 0x6c3   :  { %v2098_v34 = vadd.f32 %v2068_v17, %v5703_v9  ;;  %v2118_v45 = vadd.f32 %v2081_v23, %v1470_v11 }
 0x6c5   :  { %v2850_v15 = vmul.f32 -1.442695, %v2098_v34  ;;  %v2851_v30 = vmul.f32 -1.442695, %v2118_v45  ;;  %v2096_v58 = vpop.f32.mrf.mxu0 }
 0x6c7   :  { %3063 = vpow2.f32 %v2850_v15 }
 0x6c8   :  { %3065 = vpow2.f32 %v2851_v30 }
 0x6ca   :  { %v2070_v44 = vpop.f32.mrf.mxu2  ;;  %v2083_v57 = vpop.f32.mrf.mxu3 }
 0x6cd   :  { %v3064_v6 = vpop.eup %3063 }
 0x6ce   :  { %v3066_v10 = vpop.eup %3065  ;;  %v2102_v20 = vadd.f32 1.0, %v3064_v6 }
 0x6cf   :  { %v2122_v33 = vadd.f32 1.0, %v3066_v10 }
 0x6d0   :  { %3067 = vrcp.f32 %v2102_v20  ;;  %v2114_v31 = vand.u32 2147483648, %v2102_v20  ;;  %v2112_v35 = vand.u32 2147483647, %v2102_v20  ;;  %vm2108_vm1 = vweird.f32 %v2102_v20 }
 0x6d1   :  { %3069 = vrcp.f32 %v2122_v33  ;;  %v2134_v21 = vand.u32 2147483648, %v2122_v33  ;;  %vm2128_vm5 = vweird.f32 %v2122_v33  ;;  %v2132_v38 = vand.u32 2147483647, %v2122_v33 }
 0x6d2   :  { %v2115_v47 = vor.u32 1.1754944e-38, %v2114_v31  ;;  %vm2113_vm3 = vcmp.eq.f32.partialorder %v2112_v35, 8.507059e+37 }
 0x6d3   :  { %v2135_v0 = vor.u32 1.1754944e-38, %v2134_v21  ;;  %vm2133_vm7 = vcmp.eq.f32.partialorder %v2132_v38, 8.507059e+37 }
 0x6d6   :  { %v3068_v41 = vpop.eup %3067 }
 0x6d7   :  { %v3070_v55 = vpop.eup %3069  ;;  %v2104_v3 = vmul.f32 %v3068_v41, %v2102_v20  ;;  %vm2109_vm0 = vweird.f32 %v3068_v41 }
 0x6d8   :  { %v2124_v9 = vmul.f32 %v3070_v55, %v2122_v33  ;;  %vm2110_vm2 = vmor %vm2108_vm1, %vm2109_vm0  ;;  %vm2129_vm4 = vweird.f32 %v3070_v55 }
 0x6d9   :  { %v2105_v26 = vsub.f32 1.0, %v2104_v3  ;;  %vm2130_vm6 = vmor %vm2128_vm5, %vm2129_vm4 }
 0x6da   :  { %v2125_v1 = vsub.f32 1.0, %v2124_v9 }
 0x6db   :  { %v2106_v54 = vmul.f32 %v3068_v41, %v2105_v26 }
 0x6dc   :  { %v2126_v50 = vmul.f32 %v3070_v55, %v2125_v1 }
 0x6dd   :  { %v2107_v4 = vadd.f32 %v3068_v41, %v2106_v54 }
 0x6de   :  { %v2127_v8 = vadd.f32 %v3070_v55, %v2126_v50 }
 0x6df   :  { %v2111_v24 = vsel %vm2110_vm2, %v3068_v41, %v2107_v4  ;;  %v1501_v41 = vadd.f32 %v5763_v61, %v5712_v52 }
 0x6e0   :  { %v2116_v62 = vsel %vm2113_vm3, %v2115_v47, %v2111_v24  ;;  %v2131_v46 = vsel %vm2130_vm6, %v3070_v55, %v2127_v8 }
 0x6e1   :  { %v2139_v22 = vmul.f32 %v2138_v16, %v2116_v62  ;;  %v2136_v13 = vsel %vm2133_vm7, %v2135_v0, %v2131_v46 }
 0x6e3   :  { %v2140_v27 = vadd.f32 %v2139_v22, %v1499_v48  ;;  %v1475_v48 = vadd.f32 %v5765_v63, %v5701_v2 }
 0x6e5   :  { %3071 = vtanh.f32 %v2140_v27 }
 0x6eb   :  { %v3072_v51 = vpop.eup %3071 }
 0x6ec   :  { %v2142_v42 = vsub.f32 %v5848_v36, %v3072_v51 }
 0x6ee   :  { %v2143_v14 = vmul.f32 %v2142_v42, %v2136_v13 }
 0x6f0   :  { %v5883_v18 = vadd.f32 %v3072_v51, %v2143_v14 }
 0x6f2   :  { %v2148_v59 = vpack.c.bf16 %v5883_v18, %v5883_v18 }
 0x6f4   :  { %2157 = vmatmul.bf16.vlgmr.msra.gmra.mxu1 %v2148_v59  ;;  %2170 = vmatmul.bf16.vlgmr.msra.gmra.mxu2 %v2148_v59 }
 0x6f5   :  { %2183 = vmatmul.bf16.vlgmr.msrb.gmra.mxu3 %v2148_v59  ;;  %2355 = vmatpush.bf16.msra.mxu1 %v5571_v12  ;;  %v1472_v12 = vadd.f32 %v5761_v60, %v5701_v2 }
 0x6f9   :  { %2356 = vmatpush.bf16.msra.mxu1 %v5579_v28 }
 0x6fd   :  { %2357 = vmatpush.bf16.msra.mxu1 %v5587_v43 }
 0x701   :  { %2358 = vmatpush.bf16.msra.mxu1 %v5593_v56 }
 0x705   :  { %2359 = vmatpush.bf16.msra.mxu1 %v5599_v5 }
 0x709   :  { %2360 = vmatpush.bf16.msra.mxu1 %v5607_v19 }
 0x70d   :  { %2361 = vmatpush.bf16.msra.mxu1 %v5614_v32 }
 0x711   :  { %2362 = vmatpush.bf16.msra.mxu1 %v5622_v39 }
 0x771   :  { %v2158_v29 = vpop.f32.mrf.mxu1 }
 0x772   :  { %v2188_v49 = vadd.f32 %v2158_v29, %v5706_v25 }
 0x774   :  { %v2852_v36 = vmul.f32 -1.442695, %v2188_v49 }
 0x776   :  { %3073 = vpow2.f32 %v2852_v36 }
 0x777   :  { %v2171_v28 = vpop.f32.mrf.mxu2 }
 0x778   :  { %v2208_v43 = vadd.f32 %v2171_v28, %v1472_v12  ;;  %v2184_v40 = vpop.f32.mrf.mxu3 }
 0x779   :  { %v2160_v56 = vpop.f32.mrf.mxu1  ;;  %v2228_v20 = vadd.f32 %v5717_v53, %v2184_v40 }
 0x77a   :  { %v2853_v7 = vmul.f32 -1.442695, %v2208_v43 }
 0x77c   :  { %v3074_v5 = vpop.eup %3073  ;;  %3075 = vpow2.f32 %v2853_v7 }
 0x77d   :  { %v2192_v19 = vadd.f32 1.0, %v3074_v5 }
 0x77f   :  { %3077 = vrcp.f32 %v2192_v19  ;;  %v2173_v32 = vpop.f32.mrf.mxu2  ;;  %v2204_v45 = vand.u32 2147483648, %v2192_v19  ;;  %v2202_v15 = vand.u32 2147483647, %v2192_v19  ;;  %vm2198_vm9 = vweird.f32 %v2192_v19 }
 0x780   :  { %v2186_v11 = vpop.f32.mrf.mxu3 }
 0x781   :  { %v2205_v57 = vor.u32 1.1754944e-38, %v2204_v45  ;;  %vm2203_vm11 = vcmp.eq.f32.partialorder %v2202_v15, 8.507059e+37  ;;  %v5940_v11 = vld [vmem:[#allocation150_spill] sm:$0xff] }
 0x782   :  { %v3076_v39 = vpop.eup %3075 }
 0x783   :  { %v2212_v17 = vadd.f32 1.0, %v3076_v39  ;;  %v1504_v39 = vadd.f32 %v5940_v11, %v5712_v52 }
 0x785   :  { %v3078_v23 = vpop.eup %3077  ;;  %3079 = vrcp.f32 %v2212_v17  ;;  %v2224_v9 = vand.u32 2147483648, %v2212_v17  ;;  %vm2218_vm13 = vweird.f32 %v2212_v17  ;;  %v2222_v54 = vand.u32 2147483647, %v2212_v17 }
 0x786   :  { %v2194_v25 = vmul.f32 %v3078_v23, %v2192_v19  ;;  %vm2199_vm8 = vweird.f32 %v3078_v23 }
 0x787   :  { %vm2200_vm10 = vmor %vm2198_vm9, %vm2199_vm8  ;;  %v2225_v47 = vor.u32 1.1754944e-38, %v2224_v9  ;;  %vm2223_vm15 = vcmp.eq.f32.partialorder %v2222_v54, 8.507059e+37  ;;  %v2943_v54 = vld [vmem:[#allocation12 + $0x20] sm:$0xff] }
 0x788   :  { %v2195_v34 = vsub.f32 1.0, %v2194_v25 }
 0x78a   :  { %v2196_v60 = vmul.f32 %v3078_v23, %v2195_v34 }
 0x78b   :  { %v3080_v30 = vpop.eup %3079 }
 0x78c   :  { %v2214_v58 = vmul.f32 %v3080_v30, %v2212_v17  ;;  %v2197_v44 = vadd.f32 %v3078_v23, %v2196_v60  ;;  %vm2219_vm12 = vweird.f32 %v3080_v30 }
 0x78d   :  { %vm2220_vm14 = vmor %vm2218_vm13, %vm2219_vm12 }
 0x78e   :  { %v2215_v6 = vsub.f32 1.0, %v2214_v58  ;;  %v2201_v10 = vsel %vm2200_vm10, %v3078_v23, %v2197_v44 }
 0x78f   :  { %v2206_v33 = vsel %vm2203_vm11, %v2205_v57, %v2201_v10 }
 0x790   :  { %v2229_v55 = vmul.f32 %v2228_v20, %v2206_v33  ;;  %v2216_v3 = vmul.f32 %v3080_v30, %v2215_v6  ;;  %v2946_v20 = vld [vmem:[#allocation12 + $0x38] sm:$0xff]  ;;  %v2945_v33 = vld [vmem:[#allocation12 + $0x30] sm:$0xff] }
 0x791   :  { %2484 = vmatpush.bf16.msra.mxu2 %v2946_v20 }
 0x792   :  { %v2230_v26 = vadd.f32 %v2229_v55, %v1501_v41  ;;  %v2217_v31 = vadd.f32 %v3080_v30, %v2216_v3  ;;  %v5941_v41 = vld [vmem:[#allocation151_spill] sm:$0xff] }
 0x793   :  { %v1477_v55 = vadd.f32 %v5941_v41, %v5701_v2 }
 0x794   :  { %3081 = vtanh.f32 %v2230_v26  ;;  %v2221_v35 = vsel %vm2220_vm14, %v3080_v30, %v2217_v31  ;;  %v2944_v26 = vld [vmem:[#allocation12 + $0x28] sm:$0xff] }
 0x795   :  { %v2226_v16 = vsel %vm2223_vm15, %v2225_v47, %v2221_v35  ;;  %2485 = vmatpush.bf16.msra.mxu2 %v2945_v33  ;;  %v2942_v47 = vld [vmem:[#allocation12 + $0x18] sm:$0xff] }
 0x799   :  { %2486 = vmatpush.bf16.msra.mxu2 %v2944_v26 }
 0x79a   :  { %v3082_v4 = vpop.eup %3081 }
 0x79b   :  { %v2232_v1 = vsub.f32 %v5883_v18, %v3082_v4 }
 0x79d   :  { %v2233_v24 = vmul.f32 %v2232_v1, %v2226_v16  ;;  %2487 = vmatpush.bf16.msra.mxu2 %v2943_v54  ;;  %v5942_v1 = vld [vmem:[#allocation149_spill] sm:$0xff] }
 0x79f   :  { %v2234_v62 = vadd.f32 %v3082_v4, %v2233_v24 }
 0x7a1   :  { %v2238_v61 = vpack.c.bf16 %v2234_v62, %v2234_v62  ;;  %2488 = vmatpush.bf16.msra.mxu2 %v2942_v47 }
 0x7a3   :  { %2247 = vmatmul.bf16.vlgmr.msrb.gmra.mxu0 %v2238_v61  ;;  %2260 = vmatmul.bf16.vlgmr.msrb.gmra.mxu1 %v2238_v61 }
 0x7a4   :  { %2273 = vmatmul.bf16.vlgmr.msrb.gmra.mxu2 %v2238_v61 }
 0x820   :  { %v2248_v22 = vpop.f32.mrf.mxu0  ;;  %v2261_v50 = vpop.f32.mrf.mxu1 }
 0x821   :  { %v2278_v27 = vadd.f32 %v2248_v22, %v5708_v37  ;;  %v2298_v8 = vadd.f32 %v2261_v50, %v1475_v48  ;;  %v2941_v48 = vld [vmem:[#allocation12 + $0x10] sm:$0xff]  ;;  %v2940_v50 = vld [vmem:[#allocation12 + $0x8] sm:$0xff] }
 0x822   :  { %2489 = vmatpush.bf16.msra.mxu2 %v2941_v48 }
 0x823   :  { %v2854_v21 = vmul.f32 -1.442695, %v2278_v27  ;;  %v2855_v38 = vmul.f32 -1.442695, %v2298_v8 }
 0x825   :  { %3083 = vpow2.f32 %v2854_v21 }
 0x826   :  { %3085 = vpow2.f32 %v2855_v38  ;;  %2490 = vmatpush.bf16.msra.mxu2 %v2940_v50  ;;  %v2939_v38 = vld [vmem:[#allocation12] sm:$0xff] }
 0x827   :  { %v2274_v46 = vpop.f32.mrf.mxu2 }
 0x828   :  { %v2250_v51 = vpop.f32.mrf.mxu0  ;;  %v2263_v0 = vpop.f32.mrf.mxu1  ;;  %v2318_v19 = vadd.f32 %v5717_v53, %v2274_v46 }
 0x82a   :  { %2491 = vmatpush.bf16.msra.mxu2 %v2939_v38 }
 0x82b   :  { %v3084_v42 = vpop.eup %3083 }
 0x82c   :  { %v3086_v13 = vpop.eup %3085  ;;  %v2282_v14 = vadd.f32 1.0, %v3084_v42 }
 0x82d   :  { %v2302_v18 = vadd.f32 1.0, %v3086_v13 }
 0x82e   :  { %3087 = vrcp.f32 %v2282_v14  ;;  %v2294_v12 = vand.u32 2147483648, %v2282_v14  ;;  %v2292_v43 = vand.u32 2147483647, %v2282_v14  ;;  %vm2288_vm1 = vweird.f32 %v2282_v14 }
 0x82f   :  { %3089 = vrcp.f32 %v2302_v18  ;;  %v2276_v59 = vpop.f32.mrf.mxu2  ;;  %v2314_v45 = vand.u32 2147483648, %v2302_v18  ;;  %vm2308_vm5 = vweird.f32 %v2302_v18  ;;  %v2312_v60 = vand.u32 2147483647, %v2302_v18 }
 0x830   :  { %v2295_v7 = vor.u32 1.1754944e-38, %v2294_v12  ;;  %vm2293_vm3 = vcmp.eq.f32.partialorder %v2292_v43, 8.507059e+37  ;;  %v5943_v43 = vld [vmem:[#allocation152_spill] sm:$0xff] }
 0x831   :  { %v2315_v58 = vor.u32 1.1754944e-38, %v2314_v45  ;;  %vm2313_vm7 = vcmp.eq.f32.partialorder %v2312_v60, 8.507059e+37 }
 0x834   :  { %v3088_v63 = vpop.eup %3087 }
 0x835   :  { %v3090_v29 = vpop.eup %3089  ;;  %v2284_v49 = vmul.f32 %v3088_v63, %v2282_v14  ;;  %vm2289_vm0 = vweird.f32 %v3088_v63 }
 0x836   :  { %v2304_v37 = vmul.f32 %v3090_v29, %v2302_v18  ;;  %vm2290_vm2 = vmor %vm2288_vm1, %vm2289_vm0  ;;  %vm2309_vm4 = vweird.f32 %v3090_v29 }
 0x837   :  { %v2285_v36 = vsub.f32 1.0, %v2284_v49  ;;  %vm2310_vm6 = vmor %vm2308_vm5, %vm2309_vm4 }
 0x838   :  { %v2305_v56 = vsub.f32 1.0, %v2304_v37 }
 0x839   :  { %v2286_v28 = vmul.f32 %v3088_v63, %v2285_v36  ;;  %v3103_v36 = vld [vmem:[%s5932_s5] ss:$0 sm:$0xff] }
 0x83a   :  { %v2306_v23 = vmul.f32 %v3090_v29, %v2305_v56 }
 0x83b   :  { %v2287_v40 = vadd.f32 %v3088_v63, %v2286_v28 }
 0x83c   :  { %v2307_v34 = vadd.f32 %v3090_v29, %v2306_v23 }
 0x83d   :  { %v2291_v5 = vsel %vm2290_vm2, %v3088_v63, %v2287_v40  ;;  %v1506_v40 = vadd.f32 %v5943_v43, %v5712_v52 }
 0x83e   :  { %v2296_v32 = vsel %vm2293_vm3, %v2295_v7, %v2291_v5  ;;  %v2311_v15 = vsel %vm2310_vm6, %v3090_v29, %v2307_v34 }
 0x83f   :  { %v2319_v17 = vmul.f32 %v2318_v19, %v2296_v32  ;;  %v2316_v53 = vsel %vm2313_vm7, %v2315_v58, %v2311_v15  ;;  %v3022_v15 = vld [vmem:[%s5934_s7] ss:$0 sm:$0xff] }
 0x841   :  { %v2320_v25 = vadd.f32 %v2319_v17, %v1504_v39 }
 0x843   :  { %3091 = vtanh.f32 %v2320_v25 }
 0x849   :  { %v3092_v30 = vpop.eup %3091 }
 0x84a   :  { %v2322_v44 = vsub.f32 %v2234_v62, %v3092_v30 }
 0x84c   :  { %v2323_v57 = vmul.f32 %v2322_v44, %v2316_v53 }
 0x84e   :  { %v5908_v6 = vadd.f32 %v3092_v30, %v2323_v57 }
 0x850   :  { %v2328_v10 = vpack.c.bf16 %v5908_v6, %v5908_v6 }
 0x852   :  { %2337 = vmatmul.bf16.vlgmr.msra.gmra.mxu3 %v2328_v10  ;;  %2350 = vmatmul.bf16.vlgmr.msra.gmra.mxu0 %v2328_v10 }
 0x853   :  { %2363 = vmatmul.bf16.vlgmr.msra.gmra.mxu1 %v2328_v10 }
 0x8cf   :  { %v2351_v3 = vpop.f32.mrf.mxu0 }
 0x8d0   :  { %v2388_v31 = vadd.f32 %v2351_v3, %v1477_v55  ;;  %v2364_v9 = vpop.f32.mrf.mxu1 }
 0x8d1   :  { %v2408_v37 = vadd.f32 %v3103_v36, %v2364_v9 }
 0x8d2   :  { %v2857_v35 = vmul.f32 -1.442695, %v2388_v31 }
 0x8d4   :  { %3093 = vpow2.f32 %v2857_v35 }
 0x8d5   :  { %v2338_v4 = vpop.f32.mrf.mxu3 }
 0x8d6   :  { %v2368_v16 = vadd.f32 %v2338_v4, %v5942_v1 }
 0x8d7   :  { %v2353_v24 = vpop.f32.mrf.mxu0 }
 0x8d8   :  { %v2856_v62 = vmul.f32 -1.442695, %v2368_v16  ;;  %v2366_v61 = vpop.f32.mrf.mxu1 }
 0x8da   :  { %3095 = vpow2.f32 %v2856_v62  ;;  %v3094_v2 = vpop.eup %3093 }
 0x8db   :  { %v2392_v8 = vadd.f32 1.0, %v3094_v2 }
 0x8dd   :  { %v2340_v22 = vpop.f32.mrf.mxu3  ;;  %v2404_v32 = vand.u32 2147483648, %v2392_v8  ;;  %vm2398_vm13 = vweird.f32 %v2392_v8  ;;  %v2402_v11 = vand.u32 2147483647, %v2392_v8 }
 0x8df   :  { %v2405_v23 = vor.u32 1.1754944e-38, %v2404_v32  ;;  %vm2403_vm15 = vcmp.eq.f32.partialorder %v2402_v11, 8.507059e+37 }
 0x8e0   :  { %v3096_v27 = vpop.eup %3095 }
 0x8e1   :  { %v2372_v21 = vadd.f32 1.0, %v3096_v27 }
 0x8e3   :  { %3097 = vrcp.f32 %v2372_v21  ;;  %v2384_v14 = vand.u32 2147483648, %v2372_v21  ;;  %v2382_v59 = vand.u32 2147483647, %v2372_v21  ;;  %vm2378_vm9 = vweird.f32 %v2372_v21 }
 0x8e4   :  { %3099 = vrcp.f32 %v2392_v8 }
 0x8e5   :  { %v2385_v49 = vor.u32 1.1754944e-38, %v2384_v14  ;;  %vm2383_vm11 = vcmp.eq.f32.partialorder %v2382_v59, 8.507059e+37 }
 0x8e9   :  { %v3098_v46 = vpop.eup %3097 }
 0x8ea   :  { %v3100_v51 = vpop.eup %3099  ;;  %v2374_v0 = vmul.f32 %v3098_v46, %v2372_v21  ;;  %vm2379_vm8 = vweird.f32 %v3098_v46 }
 0x8eb   :  { %v2394_v13 = vmul.f32 %v3100_v51, %v2392_v8  ;;  %vm2380_vm10 = vmor %vm2378_vm9, %vm2379_vm8  ;;  %vm2399_vm12 = vweird.f32 %v3100_v51 }
 0x8ec   :  { %v2375_v42 = vsub.f32 1.0, %v2374_v0  ;;  %vm2400_vm14 = vmor %vm2398_vm13, %vm2399_vm12 }
 0x8ed   :  { %v2395_v29 = vsub.f32 1.0, %v2394_v13 }
 0x8ee   :  { %v2376_v18 = vmul.f32 %v3098_v46, %v2375_v42 }
 0x8ef   :  { %v2396_v7 = vmul.f32 %v3100_v51, %v2395_v29 }
 0x8f0   :  { %v2377_v63 = vadd.f32 %v3098_v46, %v2376_v18 }
 0x8f1   :  { %v2397_v19 = vadd.f32 %v3100_v51, %v2396_v7 }
 0x8f2   :  { %v2381_v12 = vsel %vm2380_vm10, %v3098_v46, %v2377_v63 }
 0x8f3   :  { %v2386_v28 = vsel %vm2383_vm11, %v2385_v49, %v2381_v12  ;;  %v2401_v39 = vsel %vm2400_vm14, %v3100_v51, %v2397_v19 }
 0x8f4   :  { %v2409_v56 = vmul.f32 %v2408_v37, %v2386_v28  ;;  %v2406_v34 = vsel %vm2403_vm15, %v2405_v23, %v2401_v39 }
 0x8f6   :  { %v2410_v5 = vadd.f32 %v2409_v56, %v1506_v40 }
 0x8f8   :  { %3101 = vtanh.f32 %v2410_v5 }
 0x8fe   :  { %v3102_v17 = vpop.eup %3101 }
 0x8ff   :  { %v2412_v25 = vsub.f32 %v5908_v6, %v3102_v17 }
 0x901   :  { %v2413_v45 = vmul.f32 %v2412_v25, %v2406_v34 }
 0x903   :  { %v2414_v60 = vadd.f32 %v3102_v17, %v2413_v45 }
 0x905   :  { %v2415_v52 = vpack.c.bf16 %v2414_v60, %v2414_v60 }
 0x907   :  { %2492 = vmatmul.bf16.vlgmr.msra.gmra.mxu2 %v2415_v52 }
 0x98a   :  { %v2493_v30 = vpop.f32.mrf.mxu2 }
 0x98b   :  { %v2494_v58 = vadd.f32 %v3022_v15, %v2493_v30 }
 0x98d   :  { %2497 = vst [vmem:[#allocation13] sm:$0xff] %v2494_v58 }
 0x98e   :  { %2508 = dma.vmem_to_hbm [thread:$0]  %s2504_s25, 128, %s2506_s3, [#allocation7]  }
 0x992   :  { %v2495_v44 = vpop.f32.mrf.mxu2 }
 0x993   :  { %4756 = dma.done.wait [#allocation7], 128  }
 0x994   :  { %4757 = vsyncadd [#allocation7], 4294967168 }
 0x995   :  { %2513 = vsyncpa [#allocation6], 1 }
 0x996   :  { %2514 = vsyncpa [#allocation11], 1 }
 0x997   :  { %2515 = vsyncpa [#allocation7], 1 }
 0x998   :  { %2516 = vsyncpa [#allocation8], 1 }
 0x999   :  { %2517 = vsyncmov [#allocation4] }
 0x99c   :  { %s2518_s7 = vpop.sfrf %2517 }
 0x99d   :  { %p2890_p12 = scmp.ne.s32.totalorder %s2518_s7, 0 }
 0x99f   :  { %2522 = shalt.err (%p2890_p12)  }

</bundles_post_ra>
